<compile_context>
chip_gen: v5e
topology: v5e:2x2
jax: 0.10.0
libtpu: 0.0.40
codegen_flags: <defaults>
</compile_context>

<pallas_src>
import jax
import jax.numpy as jnp
from jax.experimental import pallas as pl
from jax.experimental.pallas import tpu as pltpu


def _make_kernel(b_blk, C, H, W):
    HW = H * W

    def kernel(x_ref, w1_ref, b1_ref, w2_ref, b2_ref, out_ref):
        # x_ref/out_ref : (b_blk, C, H*W) VMEM, lane-dense flattened spatial
        # w*_ref        : (C*C*9,) SMEM f32, PyTorch OIHW order flattened
        # b*_ref        : (C,)     SMEM f32
        lane = jax.lax.broadcasted_iota(jnp.int32, (C, HW), 1)
        col = lane % W
        valid_up = lane >= W                  # tap reads row y-1
        valid_down = lane < (H - 1) * W       # tap reads row y+1
        valid_left = col >= 1                 # tap reads col x-1
        valid_right = col < (W - 1)           # tap reads col x+1

        def make_taps(planes):
            # planes: (C, HW) f32.  Returns the 9 shifted copies (one per
            # (ky, kx) tap): tap[p] == planes[p + dy*W + dx], zero outside the
            # image (masked instead of materializing a padded buffer).
            taps = []
            for dy in (-1, 0, 1):
                for dx in (-1, 0, 1):
                    s = dy * W + dx
                    if s == 0:
                        t = planes
                    else:
                        t = pltpu.roll(planes, shift=(-s) % HW, axis=1)
                    conds = []
                    if dy == -1:
                        conds.append(valid_up)
                    if dy == 1:
                        conds.append(valid_down)
                    if dx == -1:
                        conds.append(valid_left)
                    if dx == 1:
                        conds.append(valid_right)
                    if conds:
                        ok = conds[0]
                        for c in conds[1:]:
                            ok = jnp.logical_and(ok, c)
                        t = jnp.where(ok, t, 0.0)
                    taps.append(t)
            return taps

        def conv3x3(taps, w_ref, b_ref):
            # Scalar(SMEM) x vector FMAs; the tap slice is hoisted out of the
            # output-channel loop so each shifted row is loaded once.
            accs = [jnp.zeros((1, HW), jnp.float32) for _ in range(C)]
            for ci in range(C):
                for k in range(9):
                    tap = taps[k][ci:ci + 1, :]                    # (1, HW)
                    for co in range(C):
                        w = w_ref[co * C * 9 + ci * 9 + k]         # SMEM scalar
                        accs[co] = accs[co] + w * tap
            rows = [accs[co] + b_ref[co] for co in range(C)]
            return jnp.concatenate(rows, axis=0)                   # (C, HW)

        for b in range(b_blk):
            x = x_ref[b].astype(jnp.float32)                       # (C, HW)
            h = jnp.maximum(conv3x3(make_taps(x), w1_ref, b1_ref), 0.0)
            y = conv3x3(make_taps(h), w2_ref, b2_ref)
            out_ref[b] = (x + y).astype(out_ref.dtype)

    return kernel


def residual_block(x, w1, b1, w2, b2):
    """x: (B, C, H, W) NCHW; w*: (C, C, 3, 3) [PyTorch OIHW]; b*: (C,)."""
    B, C, H, W = x.shape
    HW = H * W
    assert HW % 128 == 0, "flattened spatial dim must be a multiple of 128"
    f32 = jnp.float32

    x_flat = x.reshape(B, C, HW)
    w1f = w1.astype(f32).reshape(C * C * 9)
    w2f = w2.astype(f32).reshape(C * C * 9)
    b1f = b1.astype(f32)
    b2f = b2.astype(f32)

    # Two "parallel" steps when possible: folds the batch (amortizes per-step
    # overhead on single-TC v5e/v6e) while keeping both v7x TensorCores busy.
    n_steps = 2 if (B >= 2 and B % 2 == 0) else B
    b_blk = B // n_steps

    grid_spec = pltpu.PrefetchScalarGridSpec(
        num_scalar_prefetch=0,
        grid=(n_steps,),
        in_specs=[
            pl.BlockSpec((b_blk, C, HW), lambda i: (i, 0, 0)),
            pl.BlockSpec(memory_space=pltpu.MemorySpace.SMEM),   # w1
            pl.BlockSpec(memory_space=pltpu.MemorySpace.SMEM),   # b1
            pl.BlockSpec(memory_space=pltpu.MemorySpace.SMEM),   # w2
            pl.BlockSpec(memory_space=pltpu.MemorySpace.SMEM),   # b2
        ],
        out_specs=pl.BlockSpec((b_blk, C, HW), lambda i: (i, 0, 0)),
    )

    flops = 2 * 2 * 9 * C * C * HW * B            # two 3x3 convs, MAC = 2 flops
    bytes_accessed = (2 * B * C * HW + 2 * (C * C * 9 + C)) * 4

    out_flat = pl.pallas_call(
        _make_kernel(b_blk, C, H, W),
        out_shape=jax.ShapeDtypeStruct((B, C, HW), x.dtype),
        grid_spec=grid_spec,
        compiler_params=pltpu.CompilerParams(
            dimension_semantics=("parallel",),
            vmem_limit_bytes=32 * 1024 * 1024,
        ),
        cost_estimate=pl.CostEstimate(
            flops=flops, transcendentals=0, bytes_accessed=bytes_accessed),
    )(x_flat, w1f, b1f, w2f, b2f)

    return out_flat.reshape(B, C, H, W)


def _reference(x, w1, b1, w2, b2):
    def conv(t, w, b):
        y = jax.lax.conv_general_dilated(
            t, w, window_strides=(1, 1), padding="SAME",
            dimension_numbers=("NCHW", "OIHW", "NCHW"))
        return y + b.reshape(1, -1, 1, 1)
    h = jnp.maximum(conv(x, w1, b1), 0.0)
    return x + conv(h, w2, b2)


if __name__ == "__main__":
    key = jax.random.PRNGKey(0)
    k1, k2, k3, k4, k5 = jax.random.split(key, 5)

    B, C, H, W = 2, 4, 16, 16
    x = jax.random.normal(k1, (B, C, H, W), jnp.float32)

    # Deterministic synthetic init matching nn.Conv2d parameter shapes
    # (weight: (C, C, 3, 3), bias: (C,)), U(-1/sqrt(fan_in), 1/sqrt(fan_in)).
    fan_in = C * 3 * 3
    bound = 1.0 / (fan_in ** 0.5)
    w1 = jax.random.uniform(k2, (C, C, 3, 3), jnp.float32, -bound, bound)
    b1 = jax.random.uniform(k3, (C,), jnp.float32, -bound, bound)
    w2 = jax.random.uniform(k4, (C, C, 3, 3), jnp.float32, -bound, bound)
    b2 = jax.random.uniform(k5, (C,), jnp.float32, -bound, bound)

    out = residual_block(x, w1, b1, w2, b2)
    out = jax.block_until_ready(out)

    ref = _reference(x, w1, b1, w2, b2)
    assert out.shape == ref.shape and out.dtype == ref.dtype
    assert jnp.allclose(out, ref, atol=1e-4, rtol=1e-4), float(jnp.max(jnp.abs(out - ref)))

    print("KERNEL_OK")
</pallas_src>

<mosaic_0001>
module attributes {stable_mosaic.version = 11 : i64} {
  func.func @kernel(%arg0: i32, %arg1: memref<1x4x256xf32, #tpu.memory_space<vmem>>, %arg2: memref<144xf32, #tpu.memory_space<smem>>, %arg3: memref<4xf32, #tpu.memory_space<smem>>, %arg4: memref<144xf32, #tpu.memory_space<smem>>, %arg5: memref<4xf32, #tpu.memory_space<smem>>, %arg6: memref<1x4x256xf32, #tpu.memory_space<vmem>>) attributes {dimension_semantics = [#tpu.dimension_semantics<parallel>], iteration_bounds = array<i64: 2>, scalar_prefetch = 0 : i64, scratch_operands = 0 : i64, tpu.core_type = #tpu.core_type<tc>, window_params = [{transform_indices = @transform_0, window_bounds = array<i64: 1, 4, 256>}, {transform_indices = @transform_1, window_bounds = array<i64: 144>}, {transform_indices = @transform_2, window_bounds = array<i64: 4>}, {transform_indices = @transform_3, window_bounds = array<i64: 144>}, {transform_indices = @transform_4, window_bounds = array<i64: 4>}, {transform_indices = @transform_5, window_bounds = array<i64: 1, 4, 256>}]} {
    %0 = tpu.iota {dimensions = array<i32: 1>} : vector<4x256xi32>
    %c16_i32 = arith.constant 16 : i32
    %c0_i32 = arith.constant 0 : i32
    %1 = arith.cmpi eq, %c16_i32, %c0_i32 : i32
    %c1_i32 = arith.constant 1 : i32
    %2 = arith.select %1, %c1_i32, %c16_i32 : i32
    %3 = vector.broadcast %2 : i32 to vector<4x256xi32>
    %4 = arith.remsi %0, %3 : vector<4x256xi32>
    %c0_i32_0 = arith.constant 0 : i32
    %5 = vector.broadcast %c0_i32_0 : i32 to vector<4x256xi32>
    %6 = arith.cmpi ne, %4, %5 : vector<4x256xi32>
    %c0_i32_1 = arith.constant 0 : i32
    %7 = vector.broadcast %c0_i32_1 : i32 to vector<4x256xi32>
    %8 = arith.cmpi slt, %4, %7 : vector<4x256xi32>
    %c0_i32_2 = arith.constant 0 : i32
    %9 = arith.cmpi slt, %2, %c0_i32_2 : i32
    %10 = vector.broadcast %9 : i1 to vector<4x256xi1>
    %11 = vector.broadcast %10 : vector<4x256xi1> to vector<4x256xi1>
    %12 = arith.xori %8, %11 : vector<4x256xi1>
    %13 = arith.andi %12, %6 : vector<4x256xi1>
    %14 = vector.broadcast %2 : i32 to vector<4x256xi32>
    %15 = arith.addi %4, %14 : vector<4x256xi32>
    %16 = arith.select %13, %15, %4 : vector<4x256xi1>, vector<4x256xi32>
    %c16_i32_3 = arith.constant 16 : i32
    %17 = vector.broadcast %c16_i32_3 : i32 to vector<4x256xi32>
    %18 = arith.cmpi sge, %0, %17 : vector<4x256xi32>
    %c240_i32 = arith.constant 240 : i32
    %19 = vector.broadcast %c240_i32 : i32 to vector<4x256xi32>
    %20 = arith.cmpi slt, %0, %19 : vector<4x256xi32>
    %c1_i32_4 = arith.constant 1 : i32
    %21 = vector.broadcast %c1_i32_4 : i32 to vector<4x256xi32>
    %22 = arith.cmpi sge, %16, %21 : vector<4x256xi32>
    %c15_i32 = arith.constant 15 : i32
    %23 = vector.broadcast %c15_i32 : i32 to vector<4x256xi32>
    %24 = arith.cmpi slt, %16, %23 : vector<4x256xi32>
    %c0 = arith.constant 0 : index
    %c0_5 = arith.constant 0 : index
    %c0_6 = arith.constant 0 : index
    %25 = vector.load %arg1[%c0, %c0_5, %c0_6] : memref<1x4x256xf32, #tpu.memory_space<vmem>>, vector<1x4x256xf32>
    %26 = vector.shape_cast %25 : vector<1x4x256xf32> to vector<4x256xf32>
    %c17_i32 = arith.constant 17 : i32
    %27 = tpu.dynamic_rotate %26 by %c17_i32 dim 1 : vector<4x256xf32>, i32 -> vector<4x256xf32>
    %28 = arith.andi %18, %22 : vector<4x256xi1>
    %cst = arith.constant 0.000000e+00 : f32
    %29 = vector.broadcast %cst : f32 to vector<4x256xf32>
    %30 = arith.select %28, %27, %29 : vector<4x256xi1>, vector<4x256xf32>
    %c16_i32_7 = arith.constant 16 : i32
    %31 = tpu.dynamic_rotate %26 by %c16_i32_7 dim 1 : vector<4x256xf32>, i32 -> vector<4x256xf32>
    %cst_8 = arith.constant 0.000000e+00 : f32
    %32 = vector.broadcast %cst_8 : f32 to vector<4x256xf32>
    %33 = arith.select %18, %31, %32 : vector<4x256xi1>, vector<4x256xf32>
    %c15_i32_9 = arith.constant 15 : i32
    %34 = tpu.dynamic_rotate %26 by %c15_i32_9 dim 1 : vector<4x256xf32>, i32 -> vector<4x256xf32>
    %35 = arith.andi %18, %24 : vector<4x256xi1>
    %cst_10 = arith.constant 0.000000e+00 : f32
    %36 = vector.broadcast %cst_10 : f32 to vector<4x256xf32>
    %37 = arith.select %35, %34, %36 : vector<4x256xi1>, vector<4x256xf32>
    %c1_i32_11 = arith.constant 1 : i32
    %38 = tpu.dynamic_rotate %26 by %c1_i32_11 dim 1 : vector<4x256xf32>, i32 -> vector<4x256xf32>
    %cst_12 = arith.constant 0.000000e+00 : f32
    %39 = vector.broadcast %cst_12 : f32 to vector<4x256xf32>
    %40 = arith.select %22, %38, %39 : vector<4x256xi1>, vector<4x256xf32>
    %c255_i32 = arith.constant 255 : i32
    %41 = tpu.dynamic_rotate %26 by %c255_i32 dim 1 : vector<4x256xf32>, i32 -> vector<4x256xf32>
    %cst_13 = arith.constant 0.000000e+00 : f32
    %42 = vector.broadcast %cst_13 : f32 to vector<4x256xf32>
    %43 = arith.select %24, %41, %42 : vector<4x256xi1>, vector<4x256xf32>
    %c241_i32 = arith.constant 241 : i32
    %44 = tpu.dynamic_rotate %26 by %c241_i32 dim 1 : vector<4x256xf32>, i32 -> vector<4x256xf32>
    %45 = arith.andi %20, %22 : vector<4x256xi1>
    %cst_14 = arith.constant 0.000000e+00 : f32
    %46 = vector.broadcast %cst_14 : f32 to vector<4x256xf32>
    %47 = arith.select %45, %44, %46 : vector<4x256xi1>, vector<4x256xf32>
    %c240_i32_15 = arith.constant 240 : i32
    %48 = tpu.dynamic_rotate %26 by %c240_i32_15 dim 1 : vector<4x256xf32>, i32 -> vector<4x256xf32>
    %cst_16 = arith.constant 0.000000e+00 : f32
    %49 = vector.broadcast %cst_16 : f32 to vector<4x256xf32>
    %50 = arith.select %20, %48, %49 : vector<4x256xi1>, vector<4x256xf32>
    %c239_i32 = arith.constant 239 : i32
    %51 = tpu.dynamic_rotate %26 by %c239_i32 dim 1 : vector<4x256xf32>, i32 -> vector<4x256xf32>
    %52 = arith.andi %20, %24 : vector<4x256xi1>
    %cst_17 = arith.constant 0.000000e+00 : f32
    %53 = vector.broadcast %cst_17 : f32 to vector<4x256xf32>
    %54 = arith.select %52, %51, %53 : vector<4x256xi1>, vector<4x256xf32>
    %cst_18 = arith.constant 0.000000e+00 : f32
    %55 = vector.broadcast %cst_18 : f32 to vector<1x256xf32>
    %cst_19 = arith.constant 0.000000e+00 : f32
    %56 = vector.broadcast %cst_19 : f32 to vector<1x256xf32>
    %cst_20 = arith.constant 0.000000e+00 : f32
    %57 = vector.broadcast %cst_20 : f32 to vector<1x256xf32>
    %cst_21 = arith.constant 0.000000e+00 : f32
    %58 = vector.broadcast %cst_21 : f32 to vector<1x256xf32>
    %59 = vector.extract_strided_slice %30 {offsets = [0, 0], sizes = [1, 256], strides = [1, 1]} : vector<4x256xf32> to vector<1x256xf32>
    %c0_22 = arith.constant 0 : index
    %60 = memref.load %arg2[%c0_22] : memref<144xf32, #tpu.memory_space<smem>>
    %61 = vector.broadcast %60 : f32 to vector<1x256xf32>
    %62 = arith.mulf %61, %59 : vector<1x256xf32>
    %63 = arith.addf %55, %62 : vector<1x256xf32>
    %c36 = arith.constant 36 : index
    %64 = memref.load %arg2[%c36] : memref<144xf32, #tpu.memory_space<smem>>
    %65 = vector.broadcast %64 : f32 to vector<1x256xf32>
    %66 = arith.mulf %65, %59 : vector<1x256xf32>
    %67 = arith.addf %56, %66 : vector<1x256xf32>
    %c72 = arith.constant 72 : index
    %68 = memref.load %arg2[%c72] : memref<144xf32, #tpu.memory_space<smem>>
    %69 = vector.broadcast %68 : f32 to vector<1x256xf32>
    %70 = arith.mulf %69, %59 : vector<1x256xf32>
    %71 = arith.addf %57, %70 : vector<1x256xf32>
    %c108 = arith.constant 108 : index
    %72 = memref.load %arg2[%c108] : memref<144xf32, #tpu.memory_space<smem>>
    %73 = vector.broadcast %72 : f32 to vector<1x256xf32>
    %74 = arith.mulf %73, %59 : vector<1x256xf32>
    %75 = arith.addf %58, %74 : vector<1x256xf32>
    %76 = vector.extract_strided_slice %33 {offsets = [0, 0], sizes = [1, 256], strides = [1, 1]} : vector<4x256xf32> to vector<1x256xf32>
    %c1 = arith.constant 1 : index
    %77 = memref.load %arg2[%c1] : memref<144xf32, #tpu.memory_space<smem>>
    %78 = vector.broadcast %77 : f32 to vector<1x256xf32>
    %79 = arith.mulf %78, %76 : vector<1x256xf32>
    %80 = arith.addf %63, %79 : vector<1x256xf32>
    %c37 = arith.constant 37 : index
    %81 = memref.load %arg2[%c37] : memref<144xf32, #tpu.memory_space<smem>>
    %82 = vector.broadcast %81 : f32 to vector<1x256xf32>
    %83 = arith.mulf %82, %76 : vector<1x256xf32>
    %84 = arith.addf %67, %83 : vector<1x256xf32>
    %c73 = arith.constant 73 : index
    %85 = memref.load %arg2[%c73] : memref<144xf32, #tpu.memory_space<smem>>
    %86 = vector.broadcast %85 : f32 to vector<1x256xf32>
    %87 = arith.mulf %86, %76 : vector<1x256xf32>
    %88 = arith.addf %71, %87 : vector<1x256xf32>
    %c109 = arith.constant 109 : index
    %89 = memref.load %arg2[%c109] : memref<144xf32, #tpu.memory_space<smem>>
    %90 = vector.broadcast %89 : f32 to vector<1x256xf32>
    %91 = arith.mulf %90, %76 : vector<1x256xf32>
    %92 = arith.addf %75, %91 : vector<1x256xf32>
    %93 = vector.extract_strided_slice %37 {offsets = [0, 0], sizes = [1, 256], strides = [1, 1]} : vector<4x256xf32> to vector<1x256xf32>
    %c2 = arith.constant 2 : index
    %94 = memref.load %arg2[%c2] : memref<144xf32, #tpu.memory_space<smem>>
    %95 = vector.broadcast %94 : f32 to vector<1x256xf32>
    %96 = arith.mulf %95, %93 : vector<1x256xf32>
    %97 = arith.addf %80, %96 : vector<1x256xf32>
    %c38 = arith.constant 38 : index
    %98 = memref.load %arg2[%c38] : memref<144xf32, #tpu.memory_space<smem>>
    %99 = vector.broadcast %98 : f32 to vector<1x256xf32>
    %100 = arith.mulf %99, %93 : vector<1x256xf32>
    %101 = arith.addf %84, %100 : vector<1x256xf32>
    %c74 = arith.constant 74 : index
    %102 = memref.load %arg2[%c74] : memref<144xf32, #tpu.memory_space<smem>>
    %103 = vector.broadcast %102 : f32 to vector<1x256xf32>
    %104 = arith.mulf %103, %93 : vector<1x256xf32>
    %105 = arith.addf %88, %104 : vector<1x256xf32>
    %c110 = arith.constant 110 : index
    %106 = memref.load %arg2[%c110] : memref<144xf32, #tpu.memory_space<smem>>
    %107 = vector.broadcast %106 : f32 to vector<1x256xf32>
    %108 = arith.mulf %107, %93 : vector<1x256xf32>
    %109 = arith.addf %92, %108 : vector<1x256xf32>
    %110 = vector.extract_strided_slice %40 {offsets = [0, 0], sizes = [1, 256], strides = [1, 1]} : vector<4x256xf32> to vector<1x256xf32>
    %c3 = arith.constant 3 : index
    %111 = memref.load %arg2[%c3] : memref<144xf32, #tpu.memory_space<smem>>
    %112 = vector.broadcast %111 : f32 to vector<1x256xf32>
    %113 = arith.mulf %112, %110 : vector<1x256xf32>
    %114 = arith.addf %97, %113 : vector<1x256xf32>
    %c39 = arith.constant 39 : index
    %115 = memref.load %arg2[%c39] : memref<144xf32, #tpu.memory_space<smem>>
    %116 = vector.broadcast %115 : f32 to vector<1x256xf32>
    %117 = arith.mulf %116, %110 : vector<1x256xf32>
    %118 = arith.addf %101, %117 : vector<1x256xf32>
    %c75 = arith.constant 75 : index
    %119 = memref.load %arg2[%c75] : memref<144xf32, #tpu.memory_space<smem>>
    %120 = vector.broadcast %119 : f32 to vector<1x256xf32>
    %121 = arith.mulf %120, %110 : vector<1x256xf32>
    %122 = arith.addf %105, %121 : vector<1x256xf32>
    %c111 = arith.constant 111 : index
    %123 = memref.load %arg2[%c111] : memref<144xf32, #tpu.memory_space<smem>>
    %124 = vector.broadcast %123 : f32 to vector<1x256xf32>
    %125 = arith.mulf %124, %110 : vector<1x256xf32>
    %126 = arith.addf %109, %125 : vector<1x256xf32>
    %127 = vector.extract_strided_slice %26 {offsets = [0, 0], sizes = [1, 256], strides = [1, 1]} : vector<4x256xf32> to vector<1x256xf32>
    %c4 = arith.constant 4 : index
    %128 = memref.load %arg2[%c4] : memref<144xf32, #tpu.memory_space<smem>>
    %129 = vector.broadcast %128 : f32 to vector<1x256xf32>
    %130 = arith.mulf %129, %127 : vector<1x256xf32>
    %131 = arith.addf %114, %130 : vector<1x256xf32>
    %c40 = arith.constant 40 : index
    %132 = memref.load %arg2[%c40] : memref<144xf32, #tpu.memory_space<smem>>
    %133 = vector.broadcast %132 : f32 to vector<1x256xf32>
    %134 = arith.mulf %133, %127 : vector<1x256xf32>
    %135 = arith.addf %118, %134 : vector<1x256xf32>
    %c76 = arith.constant 76 : index
    %136 = memref.load %arg2[%c76] : memref<144xf32, #tpu.memory_space<smem>>
    %137 = vector.broadcast %136 : f32 to vector<1x256xf32>
    %138 = arith.mulf %137, %127 : vector<1x256xf32>
    %139 = arith.addf %122, %138 : vector<1x256xf32>
    %c112 = arith.constant 112 : index
    %140 = memref.load %arg2[%c112] : memref<144xf32, #tpu.memory_space<smem>>
    %141 = vector.broadcast %140 : f32 to vector<1x256xf32>
    %142 = arith.mulf %141, %127 : vector<1x256xf32>
    %143 = arith.addf %126, %142 : vector<1x256xf32>
    %144 = vector.extract_strided_slice %43 {offsets = [0, 0], sizes = [1, 256], strides = [1, 1]} : vector<4x256xf32> to vector<1x256xf32>
    %c5 = arith.constant 5 : index
    %145 = memref.load %arg2[%c5] : memref<144xf32, #tpu.memory_space<smem>>
    %146 = vector.broadcast %145 : f32 to vector<1x256xf32>
    %147 = arith.mulf %146, %144 : vector<1x256xf32>
    %148 = arith.addf %131, %147 : vector<1x256xf32>
    %c41 = arith.constant 41 : index
    %149 = memref.load %arg2[%c41] : memref<144xf32, #tpu.memory_space<smem>>
    %150 = vector.broadcast %149 : f32 to vector<1x256xf32>
    %151 = arith.mulf %150, %144 : vector<1x256xf32>
    %152 = arith.addf %135, %151 : vector<1x256xf32>
    %c77 = arith.constant 77 : index
    %153 = memref.load %arg2[%c77] : memref<144xf32, #tpu.memory_space<smem>>
    %154 = vector.broadcast %153 : f32 to vector<1x256xf32>
    %155 = arith.mulf %154, %144 : vector<1x256xf32>
    %156 = arith.addf %139, %155 : vector<1x256xf32>
    %c113 = arith.constant 113 : index
    %157 = memref.load %arg2[%c113] : memref<144xf32, #tpu.memory_space<smem>>
    %158 = vector.broadcast %157 : f32 to vector<1x256xf32>
    %159 = arith.mulf %158, %144 : vector<1x256xf32>
    %160 = arith.addf %143, %159 : vector<1x256xf32>
    %161 = vector.extract_strided_slice %47 {offsets = [0, 0], sizes = [1, 256], strides = [1, 1]} : vector<4x256xf32> to vector<1x256xf32>
    %c6 = arith.constant 6 : index
    %162 = memref.load %arg2[%c6] : memref<144xf32, #tpu.memory_space<smem>>
    %163 = vector.broadcast %162 : f32 to vector<1x256xf32>
    %164 = arith.mulf %163, %161 : vector<1x256xf32>
    %165 = arith.addf %148, %164 : vector<1x256xf32>
    %c42 = arith.constant 42 : index
    %166 = memref.load %arg2[%c42] : memref<144xf32, #tpu.memory_space<smem>>
    %167 = vector.broadcast %166 : f32 to vector<1x256xf32>
    %168 = arith.mulf %167, %161 : vector<1x256xf32>
    %169 = arith.addf %152, %168 : vector<1x256xf32>
    %c78 = arith.constant 78 : index
    %170 = memref.load %arg2[%c78] : memref<144xf32, #tpu.memory_space<smem>>
    %171 = vector.broadcast %170 : f32 to vector<1x256xf32>
    %172 = arith.mulf %171, %161 : vector<1x256xf32>
    %173 = arith.addf %156, %172 : vector<1x256xf32>
    %c114 = arith.constant 114 : index
    %174 = memref.load %arg2[%c114] : memref<144xf32, #tpu.memory_space<smem>>
    %175 = vector.broadcast %174 : f32 to vector<1x256xf32>
    %176 = arith.mulf %175, %161 : vector<1x256xf32>
    %177 = arith.addf %160, %176 : vector<1x256xf32>
    %178 = vector.extract_strided_slice %50 {offsets = [0, 0], sizes = [1, 256], strides = [1, 1]} : vector<4x256xf32> to vector<1x256xf32>
    %c7 = arith.constant 7 : index
    %179 = memref.load %arg2[%c7] : memref<144xf32, #tpu.memory_space<smem>>
    %180 = vector.broadcast %179 : f32 to vector<1x256xf32>
    %181 = arith.mulf %180, %178 : vector<1x256xf32>
    %182 = arith.addf %165, %181 : vector<1x256xf32>
    %c43 = arith.constant 43 : index
    %183 = memref.load %arg2[%c43] : memref<144xf32, #tpu.memory_space<smem>>
    %184 = vector.broadcast %183 : f32 to vector<1x256xf32>
    %185 = arith.mulf %184, %178 : vector<1x256xf32>
    %186 = arith.addf %169, %185 : vector<1x256xf32>
    %c79 = arith.constant 79 : index
    %187 = memref.load %arg2[%c79] : memref<144xf32, #tpu.memory_space<smem>>
    %188 = vector.broadcast %187 : f32 to vector<1x256xf32>
    %189 = arith.mulf %188, %178 : vector<1x256xf32>
    %190 = arith.addf %173, %189 : vector<1x256xf32>
    %c115 = arith.constant 115 : index
    %191 = memref.load %arg2[%c115] : memref<144xf32, #tpu.memory_space<smem>>
    %192 = vector.broadcast %191 : f32 to vector<1x256xf32>
    %193 = arith.mulf %192, %178 : vector<1x256xf32>
    %194 = arith.addf %177, %193 : vector<1x256xf32>
    %195 = vector.extract_strided_slice %54 {offsets = [0, 0], sizes = [1, 256], strides = [1, 1]} : vector<4x256xf32> to vector<1x256xf32>
    %c8 = arith.constant 8 : index
    %196 = memref.load %arg2[%c8] : memref<144xf32, #tpu.memory_space<smem>>
    %197 = vector.broadcast %196 : f32 to vector<1x256xf32>
    %198 = arith.mulf %197, %195 : vector<1x256xf32>
    %199 = arith.addf %182, %198 : vector<1x256xf32>
    %c44 = arith.constant 44 : index
    %200 = memref.load %arg2[%c44] : memref<144xf32, #tpu.memory_space<smem>>
    %201 = vector.broadcast %200 : f32 to vector<1x256xf32>
    %202 = arith.mulf %201, %195 : vector<1x256xf32>
    %203 = arith.addf %186, %202 : vector<1x256xf32>
    %c80 = arith.constant 80 : index
    %204 = memref.load %arg2[%c80] : memref<144xf32, #tpu.memory_space<smem>>
    %205 = vector.broadcast %204 : f32 to vector<1x256xf32>
    %206 = arith.mulf %205, %195 : vector<1x256xf32>
    %207 = arith.addf %190, %206 : vector<1x256xf32>
    %c116 = arith.constant 116 : index
    %208 = memref.load %arg2[%c116] : memref<144xf32, #tpu.memory_space<smem>>
    %209 = vector.broadcast %208 : f32 to vector<1x256xf32>
    %210 = arith.mulf %209, %195 : vector<1x256xf32>
    %211 = arith.addf %194, %210 : vector<1x256xf32>
    %212 = vector.extract_strided_slice %30 {offsets = [1, 0], sizes = [1, 256], strides = [1, 1]} : vector<4x256xf32> to vector<1x256xf32>
    %c9 = arith.constant 9 : index
    %213 = memref.load %arg2[%c9] : memref<144xf32, #tpu.memory_space<smem>>
    %214 = vector.broadcast %213 : f32 to vector<1x256xf32>
    %215 = arith.mulf %214, %212 : vector<1x256xf32>
    %216 = arith.addf %199, %215 : vector<1x256xf32>
    %c45 = arith.constant 45 : index
    %217 = memref.load %arg2[%c45] : memref<144xf32, #tpu.memory_space<smem>>
    %218 = vector.broadcast %217 : f32 to vector<1x256xf32>
    %219 = arith.mulf %218, %212 : vector<1x256xf32>
    %220 = arith.addf %203, %219 : vector<1x256xf32>
    %c81 = arith.constant 81 : index
    %221 = memref.load %arg2[%c81] : memref<144xf32, #tpu.memory_space<smem>>
    %222 = vector.broadcast %221 : f32 to vector<1x256xf32>
    %223 = arith.mulf %222, %212 : vector<1x256xf32>
    %224 = arith.addf %207, %223 : vector<1x256xf32>
    %c117 = arith.constant 117 : index
    %225 = memref.load %arg2[%c117] : memref<144xf32, #tpu.memory_space<smem>>
    %226 = vector.broadcast %225 : f32 to vector<1x256xf32>
    %227 = arith.mulf %226, %212 : vector<1x256xf32>
    %228 = arith.addf %211, %227 : vector<1x256xf32>
    %229 = vector.extract_strided_slice %33 {offsets = [1, 0], sizes = [1, 256], strides = [1, 1]} : vector<4x256xf32> to vector<1x256xf32>
    %c10 = arith.constant 10 : index
    %230 = memref.load %arg2[%c10] : memref<144xf32, #tpu.memory_space<smem>>
    %231 = vector.broadcast %230 : f32 to vector<1x256xf32>
    %232 = arith.mulf %231, %229 : vector<1x256xf32>
    %233 = arith.addf %216, %232 : vector<1x256xf32>
    %c46 = arith.constant 46 : index
    %234 = memref.load %arg2[%c46] : memref<144xf32, #tpu.memory_space<smem>>
    %235 = vector.broadcast %234 : f32 to vector<1x256xf32>
    %236 = arith.mulf %235, %229 : vector<1x256xf32>
    %237 = arith.addf %220, %236 : vector<1x256xf32>
    %c82 = arith.constant 82 : index
    %238 = memref.load %arg2[%c82] : memref<144xf32, #tpu.memory_space<smem>>
    %239 = vector.broadcast %238 : f32 to vector<1x256xf32>
    %240 = arith.mulf %239, %229 : vector<1x256xf32>
    %241 = arith.addf %224, %240 : vector<1x256xf32>
    %c118 = arith.constant 118 : index
    %242 = memref.load %arg2[%c118] : memref<144xf32, #tpu.memory_space<smem>>
    %243 = vector.broadcast %242 : f32 to vector<1x256xf32>
    %244 = arith.mulf %243, %229 : vector<1x256xf32>
    %245 = arith.addf %228, %244 : vector<1x256xf32>
    %246 = vector.extract_strided_slice %37 {offsets = [1, 0], sizes = [1, 256], strides = [1, 1]} : vector<4x256xf32> to vector<1x256xf32>
    %c11 = arith.constant 11 : index
    %247 = memref.load %arg2[%c11] : memref<144xf32, #tpu.memory_space<smem>>
    %248 = vector.broadcast %247 : f32 to vector<1x256xf32>
    %249 = arith.mulf %248, %246 : vector<1x256xf32>
    %250 = arith.addf %233, %249 : vector<1x256xf32>
    %c47 = arith.constant 47 : index
    %251 = memref.load %arg2[%c47] : memref<144xf32, #tpu.memory_space<smem>>
    %252 = vector.broadcast %251 : f32 to vector<1x256xf32>
    %253 = arith.mulf %252, %246 : vector<1x256xf32>
    %254 = arith.addf %237, %253 : vector<1x256xf32>
    %c83 = arith.constant 83 : index
    %255 = memref.load %arg2[%c83] : memref<144xf32, #tpu.memory_space<smem>>
    %256 = vector.broadcast %255 : f32 to vector<1x256xf32>
    %257 = arith.mulf %256, %246 : vector<1x256xf32>
    %258 = arith.addf %241, %257 : vector<1x256xf32>
    %c119 = arith.constant 119 : index
    %259 = memref.load %arg2[%c119] : memref<144xf32, #tpu.memory_space<smem>>
    %260 = vector.broadcast %259 : f32 to vector<1x256xf32>
    %261 = arith.mulf %260, %246 : vector<1x256xf32>
    %262 = arith.addf %245, %261 : vector<1x256xf32>
    %263 = vector.extract_strided_slice %40 {offsets = [1, 0], sizes = [1, 256], strides = [1, 1]} : vector<4x256xf32> to vector<1x256xf32>
    %c12 = arith.constant 12 : index
    %264 = memref.load %arg2[%c12] : memref<144xf32, #tpu.memory_space<smem>>
    %265 = vector.broadcast %264 : f32 to vector<1x256xf32>
    %266 = arith.mulf %265, %263 : vector<1x256xf32>
    %267 = arith.addf %250, %266 : vector<1x256xf32>
    %c48 = arith.constant 48 : index
    %268 = memref.load %arg2[%c48] : memref<144xf32, #tpu.memory_space<smem>>
    %269 = vector.broadcast %268 : f32 to vector<1x256xf32>
    %270 = arith.mulf %269, %263 : vector<1x256xf32>
    %271 = arith.addf %254, %270 : vector<1x256xf32>
    %c84 = arith.constant 84 : index
    %272 = memref.load %arg2[%c84] : memref<144xf32, #tpu.memory_space<smem>>
    %273 = vector.broadcast %272 : f32 to vector<1x256xf32>
    %274 = arith.mulf %273, %263 : vector<1x256xf32>
    %275 = arith.addf %258, %274 : vector<1x256xf32>
    %c120 = arith.constant 120 : index
    %276 = memref.load %arg2[%c120] : memref<144xf32, #tpu.memory_space<smem>>
    %277 = vector.broadcast %276 : f32 to vector<1x256xf32>
    %278 = arith.mulf %277, %263 : vector<1x256xf32>
    %279 = arith.addf %262, %278 : vector<1x256xf32>
    %280 = vector.extract_strided_slice %26 {offsets = [1, 0], sizes = [1, 256], strides = [1, 1]} : vector<4x256xf32> to vector<1x256xf32>
    %c13 = arith.constant 13 : index
    %281 = memref.load %arg2[%c13] : memref<144xf32, #tpu.memory_space<smem>>
    %282 = vector.broadcast %281 : f32 to vector<1x256xf32>
    %283 = arith.mulf %282, %280 : vector<1x256xf32>
    %284 = arith.addf %267, %283 : vector<1x256xf32>
    %c49 = arith.constant 49 : index
    %285 = memref.load %arg2[%c49] : memref<144xf32, #tpu.memory_space<smem>>
    %286 = vector.broadcast %285 : f32 to vector<1x256xf32>
    %287 = arith.mulf %286, %280 : vector<1x256xf32>
    %288 = arith.addf %271, %287 : vector<1x256xf32>
    %c85 = arith.constant 85 : index
    %289 = memref.load %arg2[%c85] : memref<144xf32, #tpu.memory_space<smem>>
    %290 = vector.broadcast %289 : f32 to vector<1x256xf32>
    %291 = arith.mulf %290, %280 : vector<1x256xf32>
    %292 = arith.addf %275, %291 : vector<1x256xf32>
    %c121 = arith.constant 121 : index
    %293 = memref.load %arg2[%c121] : memref<144xf32, #tpu.memory_space<smem>>
    %294 = vector.broadcast %293 : f32 to vector<1x256xf32>
    %295 = arith.mulf %294, %280 : vector<1x256xf32>
    %296 = arith.addf %279, %295 : vector<1x256xf32>
    %297 = vector.extract_strided_slice %43 {offsets = [1, 0], sizes = [1, 256], strides = [1, 1]} : vector<4x256xf32> to vector<1x256xf32>
    %c14 = arith.constant 14 : index
    %298 = memref.load %arg2[%c14] : memref<144xf32, #tpu.memory_space<smem>>
    %299 = vector.broadcast %298 : f32 to vector<1x256xf32>
    %300 = arith.mulf %299, %297 : vector<1x256xf32>
    %301 = arith.addf %284, %300 : vector<1x256xf32>
    %c50 = arith.constant 50 : index
    %302 = memref.load %arg2[%c50] : memref<144xf32, #tpu.memory_space<smem>>
    %303 = vector.broadcast %302 : f32 to vector<1x256xf32>
    %304 = arith.mulf %303, %297 : vector<1x256xf32>
    %305 = arith.addf %288, %304 : vector<1x256xf32>
    %c86 = arith.constant 86 : index
    %306 = memref.load %arg2[%c86] : memref<144xf32, #tpu.memory_space<smem>>
    %307 = vector.broadcast %306 : f32 to vector<1x256xf32>
    %308 = arith.mulf %307, %297 : vector<1x256xf32>
    %309 = arith.addf %292, %308 : vector<1x256xf32>
    %c122 = arith.constant 122 : index
    %310 = memref.load %arg2[%c122] : memref<144xf32, #tpu.memory_space<smem>>
    %311 = vector.broadcast %310 : f32 to vector<1x256xf32>
    %312 = arith.mulf %311, %297 : vector<1x256xf32>
    %313 = arith.addf %296, %312 : vector<1x256xf32>
    %314 = vector.extract_strided_slice %47 {offsets = [1, 0], sizes = [1, 256], strides = [1, 1]} : vector<4x256xf32> to vector<1x256xf32>
    %c15 = arith.constant 15 : index
    %315 = memref.load %arg2[%c15] : memref<144xf32, #tpu.memory_space<smem>>
    %316 = vector.broadcast %315 : f32 to vector<1x256xf32>
    %317 = arith.mulf %316, %314 : vector<1x256xf32>
    %318 = arith.addf %301, %317 : vector<1x256xf32>
    %c51 = arith.constant 51 : index
    %319 = memref.load %arg2[%c51] : memref<144xf32, #tpu.memory_space<smem>>
    %320 = vector.broadcast %319 : f32 to vector<1x256xf32>
    %321 = arith.mulf %320, %314 : vector<1x256xf32>
    %322 = arith.addf %305, %321 : vector<1x256xf32>
    %c87 = arith.constant 87 : index
    %323 = memref.load %arg2[%c87] : memref<144xf32, #tpu.memory_space<smem>>
    %324 = vector.broadcast %323 : f32 to vector<1x256xf32>
    %325 = arith.mulf %324, %314 : vector<1x256xf32>
    %326 = arith.addf %309, %325 : vector<1x256xf32>
    %c123 = arith.constant 123 : index
    %327 = memref.load %arg2[%c123] : memref<144xf32, #tpu.memory_space<smem>>
    %328 = vector.broadcast %327 : f32 to vector<1x256xf32>
    %329 = arith.mulf %328, %314 : vector<1x256xf32>
    %330 = arith.addf %313, %329 : vector<1x256xf32>
    %331 = vector.extract_strided_slice %50 {offsets = [1, 0], sizes = [1, 256], strides = [1, 1]} : vector<4x256xf32> to vector<1x256xf32>
    %c16 = arith.constant 16 : index
    %332 = memref.load %arg2[%c16] : memref<144xf32, #tpu.memory_space<smem>>
    %333 = vector.broadcast %332 : f32 to vector<1x256xf32>
    %334 = arith.mulf %333, %331 : vector<1x256xf32>
    %335 = arith.addf %318, %334 : vector<1x256xf32>
    %c52 = arith.constant 52 : index
    %336 = memref.load %arg2[%c52] : memref<144xf32, #tpu.memory_space<smem>>
    %337 = vector.broadcast %336 : f32 to vector<1x256xf32>
    %338 = arith.mulf %337, %331 : vector<1x256xf32>
    %339 = arith.addf %322, %338 : vector<1x256xf32>
    %c88 = arith.constant 88 : index
    %340 = memref.load %arg2[%c88] : memref<144xf32, #tpu.memory_space<smem>>
    %341 = vector.broadcast %340 : f32 to vector<1x256xf32>
    %342 = arith.mulf %341, %331 : vector<1x256xf32>
    %343 = arith.addf %326, %342 : vector<1x256xf32>
    %c124 = arith.constant 124 : index
    %344 = memref.load %arg2[%c124] : memref<144xf32, #tpu.memory_space<smem>>
    %345 = vector.broadcast %344 : f32 to vector<1x256xf32>
    %346 = arith.mulf %345, %331 : vector<1x256xf32>
    %347 = arith.addf %330, %346 : vector<1x256xf32>
    %348 = vector.extract_strided_slice %54 {offsets = [1, 0], sizes = [1, 256], strides = [1, 1]} : vector<4x256xf32> to vector<1x256xf32>
    %c17 = arith.constant 17 : index
    %349 = memref.load %arg2[%c17] : memref<144xf32, #tpu.memory_space<smem>>
    %350 = vector.broadcast %349 : f32 to vector<1x256xf32>
    %351 = arith.mulf %350, %348 : vector<1x256xf32>
    %352 = arith.addf %335, %351 : vector<1x256xf32>
    %c53 = arith.constant 53 : index
    %353 = memref.load %arg2[%c53] : memref<144xf32, #tpu.memory_space<smem>>
    %354 = vector.broadcast %353 : f32 to vector<1x256xf32>
    %355 = arith.mulf %354, %348 : vector<1x256xf32>
    %356 = arith.addf %339, %355 : vector<1x256xf32>
    %c89 = arith.constant 89 : index
    %357 = memref.load %arg2[%c89] : memref<144xf32, #tpu.memory_space<smem>>
    %358 = vector.broadcast %357 : f32 to vector<1x256xf32>
    %359 = arith.mulf %358, %348 : vector<1x256xf32>
    %360 = arith.addf %343, %359 : vector<1x256xf32>
    %c125 = arith.constant 125 : index
    %361 = memref.load %arg2[%c125] : memref<144xf32, #tpu.memory_space<smem>>
    %362 = vector.broadcast %361 : f32 to vector<1x256xf32>
    %363 = arith.mulf %362, %348 : vector<1x256xf32>
    %364 = arith.addf %347, %363 : vector<1x256xf32>
    %365 = vector.extract_strided_slice %30 {offsets = [2, 0], sizes = [1, 256], strides = [1, 1]} : vector<4x256xf32> to vector<1x256xf32>
    %c18 = arith.constant 18 : index
    %366 = memref.load %arg2[%c18] : memref<144xf32, #tpu.memory_space<smem>>
    %367 = vector.broadcast %366 : f32 to vector<1x256xf32>
    %368 = arith.mulf %367, %365 : vector<1x256xf32>
    %369 = arith.addf %352, %368 : vector<1x256xf32>
    %c54 = arith.constant 54 : index
    %370 = memref.load %arg2[%c54] : memref<144xf32, #tpu.memory_space<smem>>
    %371 = vector.broadcast %370 : f32 to vector<1x256xf32>
    %372 = arith.mulf %371, %365 : vector<1x256xf32>
    %373 = arith.addf %356, %372 : vector<1x256xf32>
    %c90 = arith.constant 90 : index
    %374 = memref.load %arg2[%c90] : memref<144xf32, #tpu.memory_space<smem>>
    %375 = vector.broadcast %374 : f32 to vector<1x256xf32>
    %376 = arith.mulf %375, %365 : vector<1x256xf32>
    %377 = arith.addf %360, %376 : vector<1x256xf32>
    %c126 = arith.constant 126 : index
    %378 = memref.load %arg2[%c126] : memref<144xf32, #tpu.memory_space<smem>>
    %379 = vector.broadcast %378 : f32 to vector<1x256xf32>
    %380 = arith.mulf %379, %365 : vector<1x256xf32>
    %381 = arith.addf %364, %380 : vector<1x256xf32>
    %382 = vector.extract_strided_slice %33 {offsets = [2, 0], sizes = [1, 256], strides = [1, 1]} : vector<4x256xf32> to vector<1x256xf32>
    %c19 = arith.constant 19 : index
    %383 = memref.load %arg2[%c19] : memref<144xf32, #tpu.memory_space<smem>>
    %384 = vector.broadcast %383 : f32 to vector<1x256xf32>
    %385 = arith.mulf %384, %382 : vector<1x256xf32>
    %386 = arith.addf %369, %385 : vector<1x256xf32>
    %c55 = arith.constant 55 : index
    %387 = memref.load %arg2[%c55] : memref<144xf32, #tpu.memory_space<smem>>
    %388 = vector.broadcast %387 : f32 to vector<1x256xf32>
    %389 = arith.mulf %388, %382 : vector<1x256xf32>
    %390 = arith.addf %373, %389 : vector<1x256xf32>
    %c91 = arith.constant 91 : index
    %391 = memref.load %arg2[%c91] : memref<144xf32, #tpu.memory_space<smem>>
    %392 = vector.broadcast %391 : f32 to vector<1x256xf32>
    %393 = arith.mulf %392, %382 : vector<1x256xf32>
    %394 = arith.addf %377, %393 : vector<1x256xf32>
    %c127 = arith.constant 127 : index
    %395 = memref.load %arg2[%c127] : memref<144xf32, #tpu.memory_space<smem>>
    %396 = vector.broadcast %395 : f32 to vector<1x256xf32>
    %397 = arith.mulf %396, %382 : vector<1x256xf32>
    %398 = arith.addf %381, %397 : vector<1x256xf32>
    %399 = vector.extract_strided_slice %37 {offsets = [2, 0], sizes = [1, 256], strides = [1, 1]} : vector<4x256xf32> to vector<1x256xf32>
    %c20 = arith.constant 20 : index
    %400 = memref.load %arg2[%c20] : memref<144xf32, #tpu.memory_space<smem>>
    %401 = vector.broadcast %400 : f32 to vector<1x256xf32>
    %402 = arith.mulf %401, %399 : vector<1x256xf32>
    %403 = arith.addf %386, %402 : vector<1x256xf32>
    %c56 = arith.constant 56 : index
    %404 = memref.load %arg2[%c56] : memref<144xf32, #tpu.memory_space<smem>>
    %405 = vector.broadcast %404 : f32 to vector<1x256xf32>
    %406 = arith.mulf %405, %399 : vector<1x256xf32>
    %407 = arith.addf %390, %406 : vector<1x256xf32>
    %c92 = arith.constant 92 : index
    %408 = memref.load %arg2[%c92] : memref<144xf32, #tpu.memory_space<smem>>
    %409 = vector.broadcast %408 : f32 to vector<1x256xf32>
    %410 = arith.mulf %409, %399 : vector<1x256xf32>
    %411 = arith.addf %394, %410 : vector<1x256xf32>
    %c128 = arith.constant 128 : index
    %412 = memref.load %arg2[%c128] : memref<144xf32, #tpu.memory_space<smem>>
    %413 = vector.broadcast %412 : f32 to vector<1x256xf32>
    %414 = arith.mulf %413, %399 : vector<1x256xf32>
    %415 = arith.addf %398, %414 : vector<1x256xf32>
    %416 = vector.extract_strided_slice %40 {offsets = [2, 0], sizes = [1, 256], strides = [1, 1]} : vector<4x256xf32> to vector<1x256xf32>
    %c21 = arith.constant 21 : index
    %417 = memref.load %arg2[%c21] : memref<144xf32, #tpu.memory_space<smem>>
    %418 = vector.broadcast %417 : f32 to vector<1x256xf32>
    %419 = arith.mulf %418, %416 : vector<1x256xf32>
    %420 = arith.addf %403, %419 : vector<1x256xf32>
    %c57 = arith.constant 57 : index
    %421 = memref.load %arg2[%c57] : memref<144xf32, #tpu.memory_space<smem>>
    %422 = vector.broadcast %421 : f32 to vector<1x256xf32>
    %423 = arith.mulf %422, %416 : vector<1x256xf32>
    %424 = arith.addf %407, %423 : vector<1x256xf32>
    %c93 = arith.constant 93 : index
    %425 = memref.load %arg2[%c93] : memref<144xf32, #tpu.memory_space<smem>>
    %426 = vector.broadcast %425 : f32 to vector<1x256xf32>
    %427 = arith.mulf %426, %416 : vector<1x256xf32>
    %428 = arith.addf %411, %427 : vector<1x256xf32>
    %c129 = arith.constant 129 : index
    %429 = memref.load %arg2[%c129] : memref<144xf32, #tpu.memory_space<smem>>
    %430 = vector.broadcast %429 : f32 to vector<1x256xf32>
    %431 = arith.mulf %430, %416 : vector<1x256xf32>
    %432 = arith.addf %415, %431 : vector<1x256xf32>
    %433 = vector.extract_strided_slice %26 {offsets = [2, 0], sizes = [1, 256], strides = [1, 1]} : vector<4x256xf32> to vector<1x256xf32>
    %c22 = arith.constant 22 : index
    %434 = memref.load %arg2[%c22] : memref<144xf32, #tpu.memory_space<smem>>
    %435 = vector.broadcast %434 : f32 to vector<1x256xf32>
    %436 = arith.mulf %435, %433 : vector<1x256xf32>
    %437 = arith.addf %420, %436 : vector<1x256xf32>
    %c58 = arith.constant 58 : index
    %438 = memref.load %arg2[%c58] : memref<144xf32, #tpu.memory_space<smem>>
    %439 = vector.broadcast %438 : f32 to vector<1x256xf32>
    %440 = arith.mulf %439, %433 : vector<1x256xf32>
    %441 = arith.addf %424, %440 : vector<1x256xf32>
    %c94 = arith.constant 94 : index
    %442 = memref.load %arg2[%c94] : memref<144xf32, #tpu.memory_space<smem>>
    %443 = vector.broadcast %442 : f32 to vector<1x256xf32>
    %444 = arith.mulf %443, %433 : vector<1x256xf32>
    %445 = arith.addf %428, %444 : vector<1x256xf32>
    %c130 = arith.constant 130 : index
    %446 = memref.load %arg2[%c130] : memref<144xf32, #tpu.memory_space<smem>>
    %447 = vector.broadcast %446 : f32 to vector<1x256xf32>
    %448 = arith.mulf %447, %433 : vector<1x256xf32>
    %449 = arith.addf %432, %448 : vector<1x256xf32>
    %450 = vector.extract_strided_slice %43 {offsets = [2, 0], sizes = [1, 256], strides = [1, 1]} : vector<4x256xf32> to vector<1x256xf32>
    %c23 = arith.constant 23 : index
    %451 = memref.load %arg2[%c23] : memref<144xf32, #tpu.memory_space<smem>>
    %452 = vector.broadcast %451 : f32 to vector<1x256xf32>
    %453 = arith.mulf %452, %450 : vector<1x256xf32>
    %454 = arith.addf %437, %453 : vector<1x256xf32>
    %c59 = arith.constant 59 : index
    %455 = memref.load %arg2[%c59] : memref<144xf32, #tpu.memory_space<smem>>
    %456 = vector.broadcast %455 : f32 to vector<1x256xf32>
    %457 = arith.mulf %456, %450 : vector<1x256xf32>
    %458 = arith.addf %441, %457 : vector<1x256xf32>
    %c95 = arith.constant 95 : index
    %459 = memref.load %arg2[%c95] : memref<144xf32, #tpu.memory_space<smem>>
    %460 = vector.broadcast %459 : f32 to vector<1x256xf32>
    %461 = arith.mulf %460, %450 : vector<1x256xf32>
    %462 = arith.addf %445, %461 : vector<1x256xf32>
    %c131 = arith.constant 131 : index
    %463 = memref.load %arg2[%c131] : memref<144xf32, #tpu.memory_space<smem>>
    %464 = vector.broadcast %463 : f32 to vector<1x256xf32>
    %465 = arith.mulf %464, %450 : vector<1x256xf32>
    %466 = arith.addf %449, %465 : vector<1x256xf32>
    %467 = vector.extract_strided_slice %47 {offsets = [2, 0], sizes = [1, 256], strides = [1, 1]} : vector<4x256xf32> to vector<1x256xf32>
    %c24 = arith.constant 24 : index
    %468 = memref.load %arg2[%c24] : memref<144xf32, #tpu.memory_space<smem>>
    %469 = vector.broadcast %468 : f32 to vector<1x256xf32>
    %470 = arith.mulf %469, %467 : vector<1x256xf32>
    %471 = arith.addf %454, %470 : vector<1x256xf32>
    %c60 = arith.constant 60 : index
    %472 = memref.load %arg2[%c60] : memref<144xf32, #tpu.memory_space<smem>>
    %473 = vector.broadcast %472 : f32 to vector<1x256xf32>
    %474 = arith.mulf %473, %467 : vector<1x256xf32>
    %475 = arith.addf %458, %474 : vector<1x256xf32>
    %c96 = arith.constant 96 : index
    %476 = memref.load %arg2[%c96] : memref<144xf32, #tpu.memory_space<smem>>
    %477 = vector.broadcast %476 : f32 to vector<1x256xf32>
    %478 = arith.mulf %477, %467 : vector<1x256xf32>
    %479 = arith.addf %462, %478 : vector<1x256xf32>
    %c132 = arith.constant 132 : index
    %480 = memref.load %arg2[%c132] : memref<144xf32, #tpu.memory_space<smem>>
    %481 = vector.broadcast %480 : f32 to vector<1x256xf32>
    %482 = arith.mulf %481, %467 : vector<1x256xf32>
    %483 = arith.addf %466, %482 : vector<1x256xf32>
    %484 = vector.extract_strided_slice %50 {offsets = [2, 0], sizes = [1, 256], strides = [1, 1]} : vector<4x256xf32> to vector<1x256xf32>
    %c25 = arith.constant 25 : index
    %485 = memref.load %arg2[%c25] : memref<144xf32, #tpu.memory_space<smem>>
    %486 = vector.broadcast %485 : f32 to vector<1x256xf32>
    %487 = arith.mulf %486, %484 : vector<1x256xf32>
    %488 = arith.addf %471, %487 : vector<1x256xf32>
    %c61 = arith.constant 61 : index
    %489 = memref.load %arg2[%c61] : memref<144xf32, #tpu.memory_space<smem>>
    %490 = vector.broadcast %489 : f32 to vector<1x256xf32>
    %491 = arith.mulf %490, %484 : vector<1x256xf32>
    %492 = arith.addf %475, %491 : vector<1x256xf32>
    %c97 = arith.constant 97 : index
    %493 = memref.load %arg2[%c97] : memref<144xf32, #tpu.memory_space<smem>>
    %494 = vector.broadcast %493 : f32 to vector<1x256xf32>
    %495 = arith.mulf %494, %484 : vector<1x256xf32>
    %496 = arith.addf %479, %495 : vector<1x256xf32>
    %c133 = arith.constant 133 : index
    %497 = memref.load %arg2[%c133] : memref<144xf32, #tpu.memory_space<smem>>
    %498 = vector.broadcast %497 : f32 to vector<1x256xf32>
    %499 = arith.mulf %498, %484 : vector<1x256xf32>
    %500 = arith.addf %483, %499 : vector<1x256xf32>
    %501 = vector.extract_strided_slice %54 {offsets = [2, 0], sizes = [1, 256], strides = [1, 1]} : vector<4x256xf32> to vector<1x256xf32>
    %c26 = arith.constant 26 : index
    %502 = memref.load %arg2[%c26] : memref<144xf32, #tpu.memory_space<smem>>
    %503 = vector.broadcast %502 : f32 to vector<1x256xf32>
    %504 = arith.mulf %503, %501 : vector<1x256xf32>
    %505 = arith.addf %488, %504 : vector<1x256xf32>
    %c62 = arith.constant 62 : index
    %506 = memref.load %arg2[%c62] : memref<144xf32, #tpu.memory_space<smem>>
    %507 = vector.broadcast %506 : f32 to vector<1x256xf32>
    %508 = arith.mulf %507, %501 : vector<1x256xf32>
    %509 = arith.addf %492, %508 : vector<1x256xf32>
    %c98 = arith.constant 98 : index
    %510 = memref.load %arg2[%c98] : memref<144xf32, #tpu.memory_space<smem>>
    %511 = vector.broadcast %510 : f32 to vector<1x256xf32>
    %512 = arith.mulf %511, %501 : vector<1x256xf32>
    %513 = arith.addf %496, %512 : vector<1x256xf32>
    %c134 = arith.constant 134 : index
    %514 = memref.load %arg2[%c134] : memref<144xf32, #tpu.memory_space<smem>>
    %515 = vector.broadcast %514 : f32 to vector<1x256xf32>
    %516 = arith.mulf %515, %501 : vector<1x256xf32>
    %517 = arith.addf %500, %516 : vector<1x256xf32>
    %518 = vector.extract_strided_slice %30 {offsets = [3, 0], sizes = [1, 256], strides = [1, 1]} : vector<4x256xf32> to vector<1x256xf32>
    %c27 = arith.constant 27 : index
    %519 = memref.load %arg2[%c27] : memref<144xf32, #tpu.memory_space<smem>>
    %520 = vector.broadcast %519 : f32 to vector<1x256xf32>
    %521 = arith.mulf %520, %518 : vector<1x256xf32>
    %522 = arith.addf %505, %521 : vector<1x256xf32>
    %c63 = arith.constant 63 : index
    %523 = memref.load %arg2[%c63] : memref<144xf32, #tpu.memory_space<smem>>
    %524 = vector.broadcast %523 : f32 to vector<1x256xf32>
    %525 = arith.mulf %524, %518 : vector<1x256xf32>
    %526 = arith.addf %509, %525 : vector<1x256xf32>
    %c99 = arith.constant 99 : index
    %527 = memref.load %arg2[%c99] : memref<144xf32, #tpu.memory_space<smem>>
    %528 = vector.broadcast %527 : f32 to vector<1x256xf32>
    %529 = arith.mulf %528, %518 : vector<1x256xf32>
    %530 = arith.addf %513, %529 : vector<1x256xf32>
    %c135 = arith.constant 135 : index
    %531 = memref.load %arg2[%c135] : memref<144xf32, #tpu.memory_space<smem>>
    %532 = vector.broadcast %531 : f32 to vector<1x256xf32>
    %533 = arith.mulf %532, %518 : vector<1x256xf32>
    %534 = arith.addf %517, %533 : vector<1x256xf32>
    %535 = vector.extract_strided_slice %33 {offsets = [3, 0], sizes = [1, 256], strides = [1, 1]} : vector<4x256xf32> to vector<1x256xf32>
    %c28 = arith.constant 28 : index
    %536 = memref.load %arg2[%c28] : memref<144xf32, #tpu.memory_space<smem>>
    %537 = vector.broadcast %536 : f32 to vector<1x256xf32>
    %538 = arith.mulf %537, %535 : vector<1x256xf32>
    %539 = arith.addf %522, %538 : vector<1x256xf32>
    %c64 = arith.constant 64 : index
    %540 = memref.load %arg2[%c64] : memref<144xf32, #tpu.memory_space<smem>>
    %541 = vector.broadcast %540 : f32 to vector<1x256xf32>
    %542 = arith.mulf %541, %535 : vector<1x256xf32>
    %543 = arith.addf %526, %542 : vector<1x256xf32>
    %c100 = arith.constant 100 : index
    %544 = memref.load %arg2[%c100] : memref<144xf32, #tpu.memory_space<smem>>
    %545 = vector.broadcast %544 : f32 to vector<1x256xf32>
    %546 = arith.mulf %545, %535 : vector<1x256xf32>
    %547 = arith.addf %530, %546 : vector<1x256xf32>
    %c136 = arith.constant 136 : index
    %548 = memref.load %arg2[%c136] : memref<144xf32, #tpu.memory_space<smem>>
    %549 = vector.broadcast %548 : f32 to vector<1x256xf32>
    %550 = arith.mulf %549, %535 : vector<1x256xf32>
    %551 = arith.addf %534, %550 : vector<1x256xf32>
    %552 = vector.extract_strided_slice %37 {offsets = [3, 0], sizes = [1, 256], strides = [1, 1]} : vector<4x256xf32> to vector<1x256xf32>
    %c29 = arith.constant 29 : index
    %553 = memref.load %arg2[%c29] : memref<144xf32, #tpu.memory_space<smem>>
    %554 = vector.broadcast %553 : f32 to vector<1x256xf32>
    %555 = arith.mulf %554, %552 : vector<1x256xf32>
    %556 = arith.addf %539, %555 : vector<1x256xf32>
    %c65 = arith.constant 65 : index
    %557 = memref.load %arg2[%c65] : memref<144xf32, #tpu.memory_space<smem>>
    %558 = vector.broadcast %557 : f32 to vector<1x256xf32>
    %559 = arith.mulf %558, %552 : vector<1x256xf32>
    %560 = arith.addf %543, %559 : vector<1x256xf32>
    %c101 = arith.constant 101 : index
    %561 = memref.load %arg2[%c101] : memref<144xf32, #tpu.memory_space<smem>>
    %562 = vector.broadcast %561 : f32 to vector<1x256xf32>
    %563 = arith.mulf %562, %552 : vector<1x256xf32>
    %564 = arith.addf %547, %563 : vector<1x256xf32>
    %c137 = arith.constant 137 : index
    %565 = memref.load %arg2[%c137] : memref<144xf32, #tpu.memory_space<smem>>
    %566 = vector.broadcast %565 : f32 to vector<1x256xf32>
    %567 = arith.mulf %566, %552 : vector<1x256xf32>
    %568 = arith.addf %551, %567 : vector<1x256xf32>
    %569 = vector.extract_strided_slice %40 {offsets = [3, 0], sizes = [1, 256], strides = [1, 1]} : vector<4x256xf32> to vector<1x256xf32>
    %c30 = arith.constant 30 : index
    %570 = memref.load %arg2[%c30] : memref<144xf32, #tpu.memory_space<smem>>
    %571 = vector.broadcast %570 : f32 to vector<1x256xf32>
    %572 = arith.mulf %571, %569 : vector<1x256xf32>
    %573 = arith.addf %556, %572 : vector<1x256xf32>
    %c66 = arith.constant 66 : index
    %574 = memref.load %arg2[%c66] : memref<144xf32, #tpu.memory_space<smem>>
    %575 = vector.broadcast %574 : f32 to vector<1x256xf32>
    %576 = arith.mulf %575, %569 : vector<1x256xf32>
    %577 = arith.addf %560, %576 : vector<1x256xf32>
    %c102 = arith.constant 102 : index
    %578 = memref.load %arg2[%c102] : memref<144xf32, #tpu.memory_space<smem>>
    %579 = vector.broadcast %578 : f32 to vector<1x256xf32>
    %580 = arith.mulf %579, %569 : vector<1x256xf32>
    %581 = arith.addf %564, %580 : vector<1x256xf32>
    %c138 = arith.constant 138 : index
    %582 = memref.load %arg2[%c138] : memref<144xf32, #tpu.memory_space<smem>>
    %583 = vector.broadcast %582 : f32 to vector<1x256xf32>
    %584 = arith.mulf %583, %569 : vector<1x256xf32>
    %585 = arith.addf %568, %584 : vector<1x256xf32>
    %586 = vector.extract_strided_slice %26 {offsets = [3, 0], sizes = [1, 256], strides = [1, 1]} : vector<4x256xf32> to vector<1x256xf32>
    %c31 = arith.constant 31 : index
    %587 = memref.load %arg2[%c31] : memref<144xf32, #tpu.memory_space<smem>>
    %588 = vector.broadcast %587 : f32 to vector<1x256xf32>
    %589 = arith.mulf %588, %586 : vector<1x256xf32>
    %590 = arith.addf %573, %589 : vector<1x256xf32>
    %c67 = arith.constant 67 : index
    %591 = memref.load %arg2[%c67] : memref<144xf32, #tpu.memory_space<smem>>
    %592 = vector.broadcast %591 : f32 to vector<1x256xf32>
    %593 = arith.mulf %592, %586 : vector<1x256xf32>
    %594 = arith.addf %577, %593 : vector<1x256xf32>
    %c103 = arith.constant 103 : index
    %595 = memref.load %arg2[%c103] : memref<144xf32, #tpu.memory_space<smem>>
    %596 = vector.broadcast %595 : f32 to vector<1x256xf32>
    %597 = arith.mulf %596, %586 : vector<1x256xf32>
    %598 = arith.addf %581, %597 : vector<1x256xf32>
    %c139 = arith.constant 139 : index
    %599 = memref.load %arg2[%c139] : memref<144xf32, #tpu.memory_space<smem>>
    %600 = vector.broadcast %599 : f32 to vector<1x256xf32>
    %601 = arith.mulf %600, %586 : vector<1x256xf32>
    %602 = arith.addf %585, %601 : vector<1x256xf32>
    %603 = vector.extract_strided_slice %43 {offsets = [3, 0], sizes = [1, 256], strides = [1, 1]} : vector<4x256xf32> to vector<1x256xf32>
    %c32 = arith.constant 32 : index
    %604 = memref.load %arg2[%c32] : memref<144xf32, #tpu.memory_space<smem>>
    %605 = vector.broadcast %604 : f32 to vector<1x256xf32>
    %606 = arith.mulf %605, %603 : vector<1x256xf32>
    %607 = arith.addf %590, %606 : vector<1x256xf32>
    %c68 = arith.constant 68 : index
    %608 = memref.load %arg2[%c68] : memref<144xf32, #tpu.memory_space<smem>>
    %609 = vector.broadcast %608 : f32 to vector<1x256xf32>
    %610 = arith.mulf %609, %603 : vector<1x256xf32>
    %611 = arith.addf %594, %610 : vector<1x256xf32>
    %c104 = arith.constant 104 : index
    %612 = memref.load %arg2[%c104] : memref<144xf32, #tpu.memory_space<smem>>
    %613 = vector.broadcast %612 : f32 to vector<1x256xf32>
    %614 = arith.mulf %613, %603 : vector<1x256xf32>
    %615 = arith.addf %598, %614 : vector<1x256xf32>
    %c140 = arith.constant 140 : index
    %616 = memref.load %arg2[%c140] : memref<144xf32, #tpu.memory_space<smem>>
    %617 = vector.broadcast %616 : f32 to vector<1x256xf32>
    %618 = arith.mulf %617, %603 : vector<1x256xf32>
    %619 = arith.addf %602, %618 : vector<1x256xf32>
    %620 = vector.extract_strided_slice %47 {offsets = [3, 0], sizes = [1, 256], strides = [1, 1]} : vector<4x256xf32> to vector<1x256xf32>
    %c33 = arith.constant 33 : index
    %621 = memref.load %arg2[%c33] : memref<144xf32, #tpu.memory_space<smem>>
    %622 = vector.broadcast %621 : f32 to vector<1x256xf32>
    %623 = arith.mulf %622, %620 : vector<1x256xf32>
    %624 = arith.addf %607, %623 : vector<1x256xf32>
    %c69 = arith.constant 69 : index
    %625 = memref.load %arg2[%c69] : memref<144xf32, #tpu.memory_space<smem>>
    %626 = vector.broadcast %625 : f32 to vector<1x256xf32>
    %627 = arith.mulf %626, %620 : vector<1x256xf32>
    %628 = arith.addf %611, %627 : vector<1x256xf32>
    %c105 = arith.constant 105 : index
    %629 = memref.load %arg2[%c105] : memref<144xf32, #tpu.memory_space<smem>>
    %630 = vector.broadcast %629 : f32 to vector<1x256xf32>
    %631 = arith.mulf %630, %620 : vector<1x256xf32>
    %632 = arith.addf %615, %631 : vector<1x256xf32>
    %c141 = arith.constant 141 : index
    %633 = memref.load %arg2[%c141] : memref<144xf32, #tpu.memory_space<smem>>
    %634 = vector.broadcast %633 : f32 to vector<1x256xf32>
    %635 = arith.mulf %634, %620 : vector<1x256xf32>
    %636 = arith.addf %619, %635 : vector<1x256xf32>
    %637 = vector.extract_strided_slice %50 {offsets = [3, 0], sizes = [1, 256], strides = [1, 1]} : vector<4x256xf32> to vector<1x256xf32>
    %c34 = arith.constant 34 : index
    %638 = memref.load %arg2[%c34] : memref<144xf32, #tpu.memory_space<smem>>
    %639 = vector.broadcast %638 : f32 to vector<1x256xf32>
    %640 = arith.mulf %639, %637 : vector<1x256xf32>
    %641 = arith.addf %624, %640 : vector<1x256xf32>
    %c70 = arith.constant 70 : index
    %642 = memref.load %arg2[%c70] : memref<144xf32, #tpu.memory_space<smem>>
    %643 = vector.broadcast %642 : f32 to vector<1x256xf32>
    %644 = arith.mulf %643, %637 : vector<1x256xf32>
    %645 = arith.addf %628, %644 : vector<1x256xf32>
    %c106 = arith.constant 106 : index
    %646 = memref.load %arg2[%c106] : memref<144xf32, #tpu.memory_space<smem>>
    %647 = vector.broadcast %646 : f32 to vector<1x256xf32>
    %648 = arith.mulf %647, %637 : vector<1x256xf32>
    %649 = arith.addf %632, %648 : vector<1x256xf32>
    %c142 = arith.constant 142 : index
    %650 = memref.load %arg2[%c142] : memref<144xf32, #tpu.memory_space<smem>>
    %651 = vector.broadcast %650 : f32 to vector<1x256xf32>
    %652 = arith.mulf %651, %637 : vector<1x256xf32>
    %653 = arith.addf %636, %652 : vector<1x256xf32>
    %654 = vector.extract_strided_slice %54 {offsets = [3, 0], sizes = [1, 256], strides = [1, 1]} : vector<4x256xf32> to vector<1x256xf32>
    %c35 = arith.constant 35 : index
    %655 = memref.load %arg2[%c35] : memref<144xf32, #tpu.memory_space<smem>>
    %656 = vector.broadcast %655 : f32 to vector<1x256xf32>
    %657 = arith.mulf %656, %654 : vector<1x256xf32>
    %658 = arith.addf %641, %657 : vector<1x256xf32>
    %c71 = arith.constant 71 : index
    %659 = memref.load %arg2[%c71] : memref<144xf32, #tpu.memory_space<smem>>
    %660 = vector.broadcast %659 : f32 to vector<1x256xf32>
    %661 = arith.mulf %660, %654 : vector<1x256xf32>
    %662 = arith.addf %645, %661 : vector<1x256xf32>
    %c107 = arith.constant 107 : index
    %663 = memref.load %arg2[%c107] : memref<144xf32, #tpu.memory_space<smem>>
    %664 = vector.broadcast %663 : f32 to vector<1x256xf32>
    %665 = arith.mulf %664, %654 : vector<1x256xf32>
    %666 = arith.addf %649, %665 : vector<1x256xf32>
    %c143 = arith.constant 143 : index
    %667 = memref.load %arg2[%c143] : memref<144xf32, #tpu.memory_space<smem>>
    %668 = vector.broadcast %667 : f32 to vector<1x256xf32>
    %669 = arith.mulf %668, %654 : vector<1x256xf32>
    %670 = arith.addf %653, %669 : vector<1x256xf32>
    %c0_23 = arith.constant 0 : index
    %671 = memref.load %arg3[%c0_23] : memref<4xf32, #tpu.memory_space<smem>>
    %672 = vector.broadcast %671 : f32 to vector<1x256xf32>
    %673 = arith.addf %658, %672 : vector<1x256xf32>
    %c1_24 = arith.constant 1 : index
    %674 = memref.load %arg3[%c1_24] : memref<4xf32, #tpu.memory_space<smem>>
    %675 = vector.broadcast %674 : f32 to vector<1x256xf32>
    %676 = arith.addf %662, %675 : vector<1x256xf32>
    %c2_25 = arith.constant 2 : index
    %677 = memref.load %arg3[%c2_25] : memref<4xf32, #tpu.memory_space<smem>>
    %678 = vector.broadcast %677 : f32 to vector<1x256xf32>
    %679 = arith.addf %666, %678 : vector<1x256xf32>
    %c3_26 = arith.constant 3 : index
    %680 = memref.load %arg3[%c3_26] : memref<4xf32, #tpu.memory_space<smem>>
    %681 = vector.broadcast %680 : f32 to vector<1x256xf32>
    %682 = arith.addf %670, %681 : vector<1x256xf32>
    %683 = tpu.concatenate %673, %676, %679, %682 in 0 : vector<1x256xf32>, vector<1x256xf32>, vector<1x256xf32>, vector<1x256xf32> -> vector<4x256xf32>
    %cst_27 = arith.constant 0.000000e+00 : f32
    %684 = vector.broadcast %cst_27 : f32 to vector<4x256xf32>
    %685 = arith.maximumf %683, %684 : vector<4x256xf32>
    %c17_i32_28 = arith.constant 17 : i32
    %686 = tpu.dynamic_rotate %685 by %c17_i32_28 dim 1 : vector<4x256xf32>, i32 -> vector<4x256xf32>
    %687 = arith.andi %18, %22 : vector<4x256xi1>
    %cst_29 = arith.constant 0.000000e+00 : f32
    %688 = vector.broadcast %cst_29 : f32 to vector<4x256xf32>
    %689 = arith.select %687, %686, %688 : vector<4x256xi1>, vector<4x256xf32>
    %c16_i32_30 = arith.constant 16 : i32
    %690 = tpu.dynamic_rotate %685 by %c16_i32_30 dim 1 : vector<4x256xf32>, i32 -> vector<4x256xf32>
    %cst_31 = arith.constant 0.000000e+00 : f32
    %691 = vector.broadcast %cst_31 : f32 to vector<4x256xf32>
    %692 = arith.select %18, %690, %691 : vector<4x256xi1>, vector<4x256xf32>
    %c15_i32_32 = arith.constant 15 : i32
    %693 = tpu.dynamic_rotate %685 by %c15_i32_32 dim 1 : vector<4x256xf32>, i32 -> vector<4x256xf32>
    %694 = arith.andi %18, %24 : vector<4x256xi1>
    %cst_33 = arith.constant 0.000000e+00 : f32
    %695 = vector.broadcast %cst_33 : f32 to vector<4x256xf32>
    %696 = arith.select %694, %693, %695 : vector<4x256xi1>, vector<4x256xf32>
    %c1_i32_34 = arith.constant 1 : i32
    %697 = tpu.dynamic_rotate %685 by %c1_i32_34 dim 1 : vector<4x256xf32>, i32 -> vector<4x256xf32>
    %cst_35 = arith.constant 0.000000e+00 : f32
    %698 = vector.broadcast %cst_35 : f32 to vector<4x256xf32>
    %699 = arith.select %22, %697, %698 : vector<4x256xi1>, vector<4x256xf32>
    %c255_i32_36 = arith.constant 255 : i32
    %700 = tpu.dynamic_rotate %685 by %c255_i32_36 dim 1 : vector<4x256xf32>, i32 -> vector<4x256xf32>
    %cst_37 = arith.constant 0.000000e+00 : f32
    %701 = vector.broadcast %cst_37 : f32 to vector<4x256xf32>
    %702 = arith.select %24, %700, %701 : vector<4x256xi1>, vector<4x256xf32>
    %c241_i32_38 = arith.constant 241 : i32
    %703 = tpu.dynamic_rotate %685 by %c241_i32_38 dim 1 : vector<4x256xf32>, i32 -> vector<4x256xf32>
    %704 = arith.andi %20, %22 : vector<4x256xi1>
    %cst_39 = arith.constant 0.000000e+00 : f32
    %705 = vector.broadcast %cst_39 : f32 to vector<4x256xf32>
    %706 = arith.select %704, %703, %705 : vector<4x256xi1>, vector<4x256xf32>
    %c240_i32_40 = arith.constant 240 : i32
    %707 = tpu.dynamic_rotate %685 by %c240_i32_40 dim 1 : vector<4x256xf32>, i32 -> vector<4x256xf32>
    %cst_41 = arith.constant 0.000000e+00 : f32
    %708 = vector.broadcast %cst_41 : f32 to vector<4x256xf32>
    %709 = arith.select %20, %707, %708 : vector<4x256xi1>, vector<4x256xf32>
    %c239_i32_42 = arith.constant 239 : i32
    %710 = tpu.dynamic_rotate %685 by %c239_i32_42 dim 1 : vector<4x256xf32>, i32 -> vector<4x256xf32>
    %711 = arith.andi %20, %24 : vector<4x256xi1>
    %cst_43 = arith.constant 0.000000e+00 : f32
    %712 = vector.broadcast %cst_43 : f32 to vector<4x256xf32>
    %713 = arith.select %711, %710, %712 : vector<4x256xi1>, vector<4x256xf32>
    %cst_44 = arith.constant 0.000000e+00 : f32
    %714 = vector.broadcast %cst_44 : f32 to vector<1x256xf32>
    %cst_45 = arith.constant 0.000000e+00 : f32
    %715 = vector.broadcast %cst_45 : f32 to vector<1x256xf32>
    %cst_46 = arith.constant 0.000000e+00 : f32
    %716 = vector.broadcast %cst_46 : f32 to vector<1x256xf32>
    %cst_47 = arith.constant 0.000000e+00 : f32
    %717 = vector.broadcast %cst_47 : f32 to vector<1x256xf32>
    %718 = vector.extract_strided_slice %689 {offsets = [0, 0], sizes = [1, 256], strides = [1, 1]} : vector<4x256xf32> to vector<1x256xf32>
    %c0_48 = arith.constant 0 : index
    %719 = memref.load %arg4[%c0_48] : memref<144xf32, #tpu.memory_space<smem>>
    %720 = vector.broadcast %719 : f32 to vector<1x256xf32>
    %721 = arith.mulf %720, %718 : vector<1x256xf32>
    %722 = arith.addf %714, %721 : vector<1x256xf32>
    %c36_49 = arith.constant 36 : index
    %723 = memref.load %arg4[%c36_49] : memref<144xf32, #tpu.memory_space<smem>>
    %724 = vector.broadcast %723 : f32 to vector<1x256xf32>
    %725 = arith.mulf %724, %718 : vector<1x256xf32>
    %726 = arith.addf %715, %725 : vector<1x256xf32>
    %c72_50 = arith.constant 72 : index
    %727 = memref.load %arg4[%c72_50] : memref<144xf32, #tpu.memory_space<smem>>
    %728 = vector.broadcast %727 : f32 to vector<1x256xf32>
    %729 = arith.mulf %728, %718 : vector<1x256xf32>
    %730 = arith.addf %716, %729 : vector<1x256xf32>
    %c108_51 = arith.constant 108 : index
    %731 = memref.load %arg4[%c108_51] : memref<144xf32, #tpu.memory_space<smem>>
    %732 = vector.broadcast %731 : f32 to vector<1x256xf32>
    %733 = arith.mulf %732, %718 : vector<1x256xf32>
    %734 = arith.addf %717, %733 : vector<1x256xf32>
    %735 = vector.extract_strided_slice %692 {offsets = [0, 0], sizes = [1, 256], strides = [1, 1]} : vector<4x256xf32> to vector<1x256xf32>
    %c1_52 = arith.constant 1 : index
    %736 = memref.load %arg4[%c1_52] : memref<144xf32, #tpu.memory_space<smem>>
    %737 = vector.broadcast %736 : f32 to vector<1x256xf32>
    %738 = arith.mulf %737, %735 : vector<1x256xf32>
    %739 = arith.addf %722, %738 : vector<1x256xf32>
    %c37_53 = arith.constant 37 : index
    %740 = memref.load %arg4[%c37_53] : memref<144xf32, #tpu.memory_space<smem>>
    %741 = vector.broadcast %740 : f32 to vector<1x256xf32>
    %742 = arith.mulf %741, %735 : vector<1x256xf32>
    %743 = arith.addf %726, %742 : vector<1x256xf32>
    %c73_54 = arith.constant 73 : index
    %744 = memref.load %arg4[%c73_54] : memref<144xf32, #tpu.memory_space<smem>>
    %745 = vector.broadcast %744 : f32 to vector<1x256xf32>
    %746 = arith.mulf %745, %735 : vector<1x256xf32>
    %747 = arith.addf %730, %746 : vector<1x256xf32>
    %c109_55 = arith.constant 109 : index
    %748 = memref.load %arg4[%c109_55] : memref<144xf32, #tpu.memory_space<smem>>
    %749 = vector.broadcast %748 : f32 to vector<1x256xf32>
    %750 = arith.mulf %749, %735 : vector<1x256xf32>
    %751 = arith.addf %734, %750 : vector<1x256xf32>
    %752 = vector.extract_strided_slice %696 {offsets = [0, 0], sizes = [1, 256], strides = [1, 1]} : vector<4x256xf32> to vector<1x256xf32>
    %c2_56 = arith.constant 2 : index
    %753 = memref.load %arg4[%c2_56] : memref<144xf32, #tpu.memory_space<smem>>
    %754 = vector.broadcast %753 : f32 to vector<1x256xf32>
    %755 = arith.mulf %754, %752 : vector<1x256xf32>
    %756 = arith.addf %739, %755 : vector<1x256xf32>
    %c38_57 = arith.constant 38 : index
    %757 = memref.load %arg4[%c38_57] : memref<144xf32, #tpu.memory_space<smem>>
    %758 = vector.broadcast %757 : f32 to vector<1x256xf32>
    %759 = arith.mulf %758, %752 : vector<1x256xf32>
    %760 = arith.addf %743, %759 : vector<1x256xf32>
    %c74_58 = arith.constant 74 : index
    %761 = memref.load %arg4[%c74_58] : memref<144xf32, #tpu.memory_space<smem>>
    %762 = vector.broadcast %761 : f32 to vector<1x256xf32>
    %763 = arith.mulf %762, %752 : vector<1x256xf32>
    %764 = arith.addf %747, %763 : vector<1x256xf32>
    %c110_59 = arith.constant 110 : index
    %765 = memref.load %arg4[%c110_59] : memref<144xf32, #tpu.memory_space<smem>>
    %766 = vector.broadcast %765 : f32 to vector<1x256xf32>
    %767 = arith.mulf %766, %752 : vector<1x256xf32>
    %768 = arith.addf %751, %767 : vector<1x256xf32>
    %769 = vector.extract_strided_slice %699 {offsets = [0, 0], sizes = [1, 256], strides = [1, 1]} : vector<4x256xf32> to vector<1x256xf32>
    %c3_60 = arith.constant 3 : index
    %770 = memref.load %arg4[%c3_60] : memref<144xf32, #tpu.memory_space<smem>>
    %771 = vector.broadcast %770 : f32 to vector<1x256xf32>
    %772 = arith.mulf %771, %769 : vector<1x256xf32>
    %773 = arith.addf %756, %772 : vector<1x256xf32>
    %c39_61 = arith.constant 39 : index
    %774 = memref.load %arg4[%c39_61] : memref<144xf32, #tpu.memory_space<smem>>
    %775 = vector.broadcast %774 : f32 to vector<1x256xf32>
    %776 = arith.mulf %775, %769 : vector<1x256xf32>
    %777 = arith.addf %760, %776 : vector<1x256xf32>
    %c75_62 = arith.constant 75 : index
    %778 = memref.load %arg4[%c75_62] : memref<144xf32, #tpu.memory_space<smem>>
    %779 = vector.broadcast %778 : f32 to vector<1x256xf32>
    %780 = arith.mulf %779, %769 : vector<1x256xf32>
    %781 = arith.addf %764, %780 : vector<1x256xf32>
    %c111_63 = arith.constant 111 : index
    %782 = memref.load %arg4[%c111_63] : memref<144xf32, #tpu.memory_space<smem>>
    %783 = vector.broadcast %782 : f32 to vector<1x256xf32>
    %784 = arith.mulf %783, %769 : vector<1x256xf32>
    %785 = arith.addf %768, %784 : vector<1x256xf32>
    %786 = vector.extract_strided_slice %685 {offsets = [0, 0], sizes = [1, 256], strides = [1, 1]} : vector<4x256xf32> to vector<1x256xf32>
    %c4_64 = arith.constant 4 : index
    %787 = memref.load %arg4[%c4_64] : memref<144xf32, #tpu.memory_space<smem>>
    %788 = vector.broadcast %787 : f32 to vector<1x256xf32>
    %789 = arith.mulf %788, %786 : vector<1x256xf32>
    %790 = arith.addf %773, %789 : vector<1x256xf32>
    %c40_65 = arith.constant 40 : index
    %791 = memref.load %arg4[%c40_65] : memref<144xf32, #tpu.memory_space<smem>>
    %792 = vector.broadcast %791 : f32 to vector<1x256xf32>
    %793 = arith.mulf %792, %786 : vector<1x256xf32>
    %794 = arith.addf %777, %793 : vector<1x256xf32>
    %c76_66 = arith.constant 76 : index
    %795 = memref.load %arg4[%c76_66] : memref<144xf32, #tpu.memory_space<smem>>
    %796 = vector.broadcast %795 : f32 to vector<1x256xf32>
    %797 = arith.mulf %796, %786 : vector<1x256xf32>
    %798 = arith.addf %781, %797 : vector<1x256xf32>
    %c112_67 = arith.constant 112 : index
    %799 = memref.load %arg4[%c112_67] : memref<144xf32, #tpu.memory_space<smem>>
    %800 = vector.broadcast %799 : f32 to vector<1x256xf32>
    %801 = arith.mulf %800, %786 : vector<1x256xf32>
    %802 = arith.addf %785, %801 : vector<1x256xf32>
    %803 = vector.extract_strided_slice %702 {offsets = [0, 0], sizes = [1, 256], strides = [1, 1]} : vector<4x256xf32> to vector<1x256xf32>
    %c5_68 = arith.constant 5 : index
    %804 = memref.load %arg4[%c5_68] : memref<144xf32, #tpu.memory_space<smem>>
    %805 = vector.broadcast %804 : f32 to vector<1x256xf32>
    %806 = arith.mulf %805, %803 : vector<1x256xf32>
    %807 = arith.addf %790, %806 : vector<1x256xf32>
    %c41_69 = arith.constant 41 : index
    %808 = memref.load %arg4[%c41_69] : memref<144xf32, #tpu.memory_space<smem>>
    %809 = vector.broadcast %808 : f32 to vector<1x256xf32>
    %810 = arith.mulf %809, %803 : vector<1x256xf32>
    %811 = arith.addf %794, %810 : vector<1x256xf32>
    %c77_70 = arith.constant 77 : index
    %812 = memref.load %arg4[%c77_70] : memref<144xf32, #tpu.memory_space<smem>>
    %813 = vector.broadcast %812 : f32 to vector<1x256xf32>
    %814 = arith.mulf %813, %803 : vector<1x256xf32>
    %815 = arith.addf %798, %814 : vector<1x256xf32>
    %c113_71 = arith.constant 113 : index
    %816 = memref.load %arg4[%c113_71] : memref<144xf32, #tpu.memory_space<smem>>
    %817 = vector.broadcast %816 : f32 to vector<1x256xf32>
    %818 = arith.mulf %817, %803 : vector<1x256xf32>
    %819 = arith.addf %802, %818 : vector<1x256xf32>
    %820 = vector.extract_strided_slice %706 {offsets = [0, 0], sizes = [1, 256], strides = [1, 1]} : vector<4x256xf32> to vector<1x256xf32>
    %c6_72 = arith.constant 6 : index
    %821 = memref.load %arg4[%c6_72] : memref<144xf32, #tpu.memory_space<smem>>
    %822 = vector.broadcast %821 : f32 to vector<1x256xf32>
    %823 = arith.mulf %822, %820 : vector<1x256xf32>
    %824 = arith.addf %807, %823 : vector<1x256xf32>
    %c42_73 = arith.constant 42 : index
    %825 = memref.load %arg4[%c42_73] : memref<144xf32, #tpu.memory_space<smem>>
    %826 = vector.broadcast %825 : f32 to vector<1x256xf32>
    %827 = arith.mulf %826, %820 : vector<1x256xf32>
    %828 = arith.addf %811, %827 : vector<1x256xf32>
    %c78_74 = arith.constant 78 : index
    %829 = memref.load %arg4[%c78_74] : memref<144xf32, #tpu.memory_space<smem>>
    %830 = vector.broadcast %829 : f32 to vector<1x256xf32>
    %831 = arith.mulf %830, %820 : vector<1x256xf32>
    %832 = arith.addf %815, %831 : vector<1x256xf32>
    %c114_75 = arith.constant 114 : index
    %833 = memref.load %arg4[%c114_75] : memref<144xf32, #tpu.memory_space<smem>>
    %834 = vector.broadcast %833 : f32 to vector<1x256xf32>
    %835 = arith.mulf %834, %820 : vector<1x256xf32>
    %836 = arith.addf %819, %835 : vector<1x256xf32>
    %837 = vector.extract_strided_slice %709 {offsets = [0, 0], sizes = [1, 256], strides = [1, 1]} : vector<4x256xf32> to vector<1x256xf32>
    %c7_76 = arith.constant 7 : index
    %838 = memref.load %arg4[%c7_76] : memref<144xf32, #tpu.memory_space<smem>>
    %839 = vector.broadcast %838 : f32 to vector<1x256xf32>
    %840 = arith.mulf %839, %837 : vector<1x256xf32>
    %841 = arith.addf %824, %840 : vector<1x256xf32>
    %c43_77 = arith.constant 43 : index
    %842 = memref.load %arg4[%c43_77] : memref<144xf32, #tpu.memory_space<smem>>
    %843 = vector.broadcast %842 : f32 to vector<1x256xf32>
    %844 = arith.mulf %843, %837 : vector<1x256xf32>
    %845 = arith.addf %828, %844 : vector<1x256xf32>
    %c79_78 = arith.constant 79 : index
    %846 = memref.load %arg4[%c79_78] : memref<144xf32, #tpu.memory_space<smem>>
    %847 = vector.broadcast %846 : f32 to vector<1x256xf32>
    %848 = arith.mulf %847, %837 : vector<1x256xf32>
    %849 = arith.addf %832, %848 : vector<1x256xf32>
    %c115_79 = arith.constant 115 : index
    %850 = memref.load %arg4[%c115_79] : memref<144xf32, #tpu.memory_space<smem>>
    %851 = vector.broadcast %850 : f32 to vector<1x256xf32>
    %852 = arith.mulf %851, %837 : vector<1x256xf32>
    %853 = arith.addf %836, %852 : vector<1x256xf32>
    %854 = vector.extract_strided_slice %713 {offsets = [0, 0], sizes = [1, 256], strides = [1, 1]} : vector<4x256xf32> to vector<1x256xf32>
    %c8_80 = arith.constant 8 : index
    %855 = memref.load %arg4[%c8_80] : memref<144xf32, #tpu.memory_space<smem>>
    %856 = vector.broadcast %855 : f32 to vector<1x256xf32>
    %857 = arith.mulf %856, %854 : vector<1x256xf32>
    %858 = arith.addf %841, %857 : vector<1x256xf32>
    %c44_81 = arith.constant 44 : index
    %859 = memref.load %arg4[%c44_81] : memref<144xf32, #tpu.memory_space<smem>>
    %860 = vector.broadcast %859 : f32 to vector<1x256xf32>
    %861 = arith.mulf %860, %854 : vector<1x256xf32>
    %862 = arith.addf %845, %861 : vector<1x256xf32>
    %c80_82 = arith.constant 80 : index
    %863 = memref.load %arg4[%c80_82] : memref<144xf32, #tpu.memory_space<smem>>
    %864 = vector.broadcast %863 : f32 to vector<1x256xf32>
    %865 = arith.mulf %864, %854 : vector<1x256xf32>
    %866 = arith.addf %849, %865 : vector<1x256xf32>
    %c116_83 = arith.constant 116 : index
    %867 = memref.load %arg4[%c116_83] : memref<144xf32, #tpu.memory_space<smem>>
    %868 = vector.broadcast %867 : f32 to vector<1x256xf32>
    %869 = arith.mulf %868, %854 : vector<1x256xf32>
    %870 = arith.addf %853, %869 : vector<1x256xf32>
    %871 = vector.extract_strided_slice %689 {offsets = [1, 0], sizes = [1, 256], strides = [1, 1]} : vector<4x256xf32> to vector<1x256xf32>
    %c9_84 = arith.constant 9 : index
    %872 = memref.load %arg4[%c9_84] : memref<144xf32, #tpu.memory_space<smem>>
    %873 = vector.broadcast %872 : f32 to vector<1x256xf32>
    %874 = arith.mulf %873, %871 : vector<1x256xf32>
    %875 = arith.addf %858, %874 : vector<1x256xf32>
    %c45_85 = arith.constant 45 : index
    %876 = memref.load %arg4[%c45_85] : memref<144xf32, #tpu.memory_space<smem>>
    %877 = vector.broadcast %876 : f32 to vector<1x256xf32>
    %878 = arith.mulf %877, %871 : vector<1x256xf32>
    %879 = arith.addf %862, %878 : vector<1x256xf32>
    %c81_86 = arith.constant 81 : index
    %880 = memref.load %arg4[%c81_86] : memref<144xf32, #tpu.memory_space<smem>>
    %881 = vector.broadcast %880 : f32 to vector<1x256xf32>
    %882 = arith.mulf %881, %871 : vector<1x256xf32>
    %883 = arith.addf %866, %882 : vector<1x256xf32>
    %c117_87 = arith.constant 117 : index
    %884 = memref.load %arg4[%c117_87] : memref<144xf32, #tpu.memory_space<smem>>
    %885 = vector.broadcast %884 : f32 to vector<1x256xf32>
    %886 = arith.mulf %885, %871 : vector<1x256xf32>
    %887 = arith.addf %870, %886 : vector<1x256xf32>
    %888 = vector.extract_strided_slice %692 {offsets = [1, 0], sizes = [1, 256], strides = [1, 1]} : vector<4x256xf32> to vector<1x256xf32>
    %c10_88 = arith.constant 10 : index
    %889 = memref.load %arg4[%c10_88] : memref<144xf32, #tpu.memory_space<smem>>
    %890 = vector.broadcast %889 : f32 to vector<1x256xf32>
    %891 = arith.mulf %890, %888 : vector<1x256xf32>
    %892 = arith.addf %875, %891 : vector<1x256xf32>
    %c46_89 = arith.constant 46 : index
    %893 = memref.load %arg4[%c46_89] : memref<144xf32, #tpu.memory_space<smem>>
    %894 = vector.broadcast %893 : f32 to vector<1x256xf32>
    %895 = arith.mulf %894, %888 : vector<1x256xf32>
    %896 = arith.addf %879, %895 : vector<1x256xf32>
    %c82_90 = arith.constant 82 : index
    %897 = memref.load %arg4[%c82_90] : memref<144xf32, #tpu.memory_space<smem>>
    %898 = vector.broadcast %897 : f32 to vector<1x256xf32>
    %899 = arith.mulf %898, %888 : vector<1x256xf32>
    %900 = arith.addf %883, %899 : vector<1x256xf32>
    %c118_91 = arith.constant 118 : index
    %901 = memref.load %arg4[%c118_91] : memref<144xf32, #tpu.memory_space<smem>>
    %902 = vector.broadcast %901 : f32 to vector<1x256xf32>
    %903 = arith.mulf %902, %888 : vector<1x256xf32>
    %904 = arith.addf %887, %903 : vector<1x256xf32>
    %905 = vector.extract_strided_slice %696 {offsets = [1, 0], sizes = [1, 256], strides = [1, 1]} : vector<4x256xf32> to vector<1x256xf32>
    %c11_92 = arith.constant 11 : index
    %906 = memref.load %arg4[%c11_92] : memref<144xf32, #tpu.memory_space<smem>>
    %907 = vector.broadcast %906 : f32 to vector<1x256xf32>
    %908 = arith.mulf %907, %905 : vector<1x256xf32>
    %909 = arith.addf %892, %908 : vector<1x256xf32>
    %c47_93 = arith.constant 47 : index
    %910 = memref.load %arg4[%c47_93] : memref<144xf32, #tpu.memory_space<smem>>
    %911 = vector.broadcast %910 : f32 to vector<1x256xf32>
    %912 = arith.mulf %911, %905 : vector<1x256xf32>
    %913 = arith.addf %896, %912 : vector<1x256xf32>
    %c83_94 = arith.constant 83 : index
    %914 = memref.load %arg4[%c83_94] : memref<144xf32, #tpu.memory_space<smem>>
    %915 = vector.broadcast %914 : f32 to vector<1x256xf32>
    %916 = arith.mulf %915, %905 : vector<1x256xf32>
    %917 = arith.addf %900, %916 : vector<1x256xf32>
    %c119_95 = arith.constant 119 : index
    %918 = memref.load %arg4[%c119_95] : memref<144xf32, #tpu.memory_space<smem>>
    %919 = vector.broadcast %918 : f32 to vector<1x256xf32>
    %920 = arith.mulf %919, %905 : vector<1x256xf32>
    %921 = arith.addf %904, %920 : vector<1x256xf32>
    %922 = vector.extract_strided_slice %699 {offsets = [1, 0], sizes = [1, 256], strides = [1, 1]} : vector<4x256xf32> to vector<1x256xf32>
    %c12_96 = arith.constant 12 : index
    %923 = memref.load %arg4[%c12_96] : memref<144xf32, #tpu.memory_space<smem>>
    %924 = vector.broadcast %923 : f32 to vector<1x256xf32>
    %925 = arith.mulf %924, %922 : vector<1x256xf32>
    %926 = arith.addf %909, %925 : vector<1x256xf32>
    %c48_97 = arith.constant 48 : index
    %927 = memref.load %arg4[%c48_97] : memref<144xf32, #tpu.memory_space<smem>>
    %928 = vector.broadcast %927 : f32 to vector<1x256xf32>
    %929 = arith.mulf %928, %922 : vector<1x256xf32>
    %930 = arith.addf %913, %929 : vector<1x256xf32>
    %c84_98 = arith.constant 84 : index
    %931 = memref.load %arg4[%c84_98] : memref<144xf32, #tpu.memory_space<smem>>
    %932 = vector.broadcast %931 : f32 to vector<1x256xf32>
    %933 = arith.mulf %932, %922 : vector<1x256xf32>
    %934 = arith.addf %917, %933 : vector<1x256xf32>
    %c120_99 = arith.constant 120 : index
    %935 = memref.load %arg4[%c120_99] : memref<144xf32, #tpu.memory_space<smem>>
    %936 = vector.broadcast %935 : f32 to vector<1x256xf32>
    %937 = arith.mulf %936, %922 : vector<1x256xf32>
    %938 = arith.addf %921, %937 : vector<1x256xf32>
    %939 = vector.extract_strided_slice %685 {offsets = [1, 0], sizes = [1, 256], strides = [1, 1]} : vector<4x256xf32> to vector<1x256xf32>
    %c13_100 = arith.constant 13 : index
    %940 = memref.load %arg4[%c13_100] : memref<144xf32, #tpu.memory_space<smem>>
    %941 = vector.broadcast %940 : f32 to vector<1x256xf32>
    %942 = arith.mulf %941, %939 : vector<1x256xf32>
    %943 = arith.addf %926, %942 : vector<1x256xf32>
    %c49_101 = arith.constant 49 : index
    %944 = memref.load %arg4[%c49_101] : memref<144xf32, #tpu.memory_space<smem>>
    %945 = vector.broadcast %944 : f32 to vector<1x256xf32>
    %946 = arith.mulf %945, %939 : vector<1x256xf32>
    %947 = arith.addf %930, %946 : vector<1x256xf32>
    %c85_102 = arith.constant 85 : index
    %948 = memref.load %arg4[%c85_102] : memref<144xf32, #tpu.memory_space<smem>>
    %949 = vector.broadcast %948 : f32 to vector<1x256xf32>
    %950 = arith.mulf %949, %939 : vector<1x256xf32>
    %951 = arith.addf %934, %950 : vector<1x256xf32>
    %c121_103 = arith.constant 121 : index
    %952 = memref.load %arg4[%c121_103] : memref<144xf32, #tpu.memory_space<smem>>
    %953 = vector.broadcast %952 : f32 to vector<1x256xf32>
    %954 = arith.mulf %953, %939 : vector<1x256xf32>
    %955 = arith.addf %938, %954 : vector<1x256xf32>
    %956 = vector.extract_strided_slice %702 {offsets = [1, 0], sizes = [1, 256], strides = [1, 1]} : vector<4x256xf32> to vector<1x256xf32>
    %c14_104 = arith.constant 14 : index
    %957 = memref.load %arg4[%c14_104] : memref<144xf32, #tpu.memory_space<smem>>
    %958 = vector.broadcast %957 : f32 to vector<1x256xf32>
    %959 = arith.mulf %958, %956 : vector<1x256xf32>
    %960 = arith.addf %943, %959 : vector<1x256xf32>
    %c50_105 = arith.constant 50 : index
    %961 = memref.load %arg4[%c50_105] : memref<144xf32, #tpu.memory_space<smem>>
    %962 = vector.broadcast %961 : f32 to vector<1x256xf32>
    %963 = arith.mulf %962, %956 : vector<1x256xf32>
    %964 = arith.addf %947, %963 : vector<1x256xf32>
    %c86_106 = arith.constant 86 : index
    %965 = memref.load %arg4[%c86_106] : memref<144xf32, #tpu.memory_space<smem>>
    %966 = vector.broadcast %965 : f32 to vector<1x256xf32>
    %967 = arith.mulf %966, %956 : vector<1x256xf32>
    %968 = arith.addf %951, %967 : vector<1x256xf32>
    %c122_107 = arith.constant 122 : index
    %969 = memref.load %arg4[%c122_107] : memref<144xf32, #tpu.memory_space<smem>>
    %970 = vector.broadcast %969 : f32 to vector<1x256xf32>
    %971 = arith.mulf %970, %956 : vector<1x256xf32>
    %972 = arith.addf %955, %971 : vector<1x256xf32>
    %973 = vector.extract_strided_slice %706 {offsets = [1, 0], sizes = [1, 256], strides = [1, 1]} : vector<4x256xf32> to vector<1x256xf32>
    %c15_108 = arith.constant 15 : index
    %974 = memref.load %arg4[%c15_108] : memref<144xf32, #tpu.memory_space<smem>>
    %975 = vector.broadcast %974 : f32 to vector<1x256xf32>
    %976 = arith.mulf %975, %973 : vector<1x256xf32>
    %977 = arith.addf %960, %976 : vector<1x256xf32>
    %c51_109 = arith.constant 51 : index
    %978 = memref.load %arg4[%c51_109] : memref<144xf32, #tpu.memory_space<smem>>
    %979 = vector.broadcast %978 : f32 to vector<1x256xf32>
    %980 = arith.mulf %979, %973 : vector<1x256xf32>
    %981 = arith.addf %964, %980 : vector<1x256xf32>
    %c87_110 = arith.constant 87 : index
    %982 = memref.load %arg4[%c87_110] : memref<144xf32, #tpu.memory_space<smem>>
    %983 = vector.broadcast %982 : f32 to vector<1x256xf32>
    %984 = arith.mulf %983, %973 : vector<1x256xf32>
    %985 = arith.addf %968, %984 : vector<1x256xf32>
    %c123_111 = arith.constant 123 : index
    %986 = memref.load %arg4[%c123_111] : memref<144xf32, #tpu.memory_space<smem>>
    %987 = vector.broadcast %986 : f32 to vector<1x256xf32>
    %988 = arith.mulf %987, %973 : vector<1x256xf32>
    %989 = arith.addf %972, %988 : vector<1x256xf32>
    %990 = vector.extract_strided_slice %709 {offsets = [1, 0], sizes = [1, 256], strides = [1, 1]} : vector<4x256xf32> to vector<1x256xf32>
    %c16_112 = arith.constant 16 : index
    %991 = memref.load %arg4[%c16_112] : memref<144xf32, #tpu.memory_space<smem>>
    %992 = vector.broadcast %991 : f32 to vector<1x256xf32>
    %993 = arith.mulf %992, %990 : vector<1x256xf32>
    %994 = arith.addf %977, %993 : vector<1x256xf32>
    %c52_113 = arith.constant 52 : index
    %995 = memref.load %arg4[%c52_113] : memref<144xf32, #tpu.memory_space<smem>>
    %996 = vector.broadcast %995 : f32 to vector<1x256xf32>
    %997 = arith.mulf %996, %990 : vector<1x256xf32>
    %998 = arith.addf %981, %997 : vector<1x256xf32>
    %c88_114 = arith.constant 88 : index
    %999 = memref.load %arg4[%c88_114] : memref<144xf32, #tpu.memory_space<smem>>
    %1000 = vector.broadcast %999 : f32 to vector<1x256xf32>
    %1001 = arith.mulf %1000, %990 : vector<1x256xf32>
    %1002 = arith.addf %985, %1001 : vector<1x256xf32>
    %c124_115 = arith.constant 124 : index
    %1003 = memref.load %arg4[%c124_115] : memref<144xf32, #tpu.memory_space<smem>>
    %1004 = vector.broadcast %1003 : f32 to vector<1x256xf32>
    %1005 = arith.mulf %1004, %990 : vector<1x256xf32>
    %1006 = arith.addf %989, %1005 : vector<1x256xf32>
    %1007 = vector.extract_strided_slice %713 {offsets = [1, 0], sizes = [1, 256], strides = [1, 1]} : vector<4x256xf32> to vector<1x256xf32>
    %c17_116 = arith.constant 17 : index
    %1008 = memref.load %arg4[%c17_116] : memref<144xf32, #tpu.memory_space<smem>>
    %1009 = vector.broadcast %1008 : f32 to vector<1x256xf32>
    %1010 = arith.mulf %1009, %1007 : vector<1x256xf32>
    %1011 = arith.addf %994, %1010 : vector<1x256xf32>
    %c53_117 = arith.constant 53 : index
    %1012 = memref.load %arg4[%c53_117] : memref<144xf32, #tpu.memory_space<smem>>
    %1013 = vector.broadcast %1012 : f32 to vector<1x256xf32>
    %1014 = arith.mulf %1013, %1007 : vector<1x256xf32>
    %1015 = arith.addf %998, %1014 : vector<1x256xf32>
    %c89_118 = arith.constant 89 : index
    %1016 = memref.load %arg4[%c89_118] : memref<144xf32, #tpu.memory_space<smem>>
    %1017 = vector.broadcast %1016 : f32 to vector<1x256xf32>
    %1018 = arith.mulf %1017, %1007 : vector<1x256xf32>
    %1019 = arith.addf %1002, %1018 : vector<1x256xf32>
    %c125_119 = arith.constant 125 : index
    %1020 = memref.load %arg4[%c125_119] : memref<144xf32, #tpu.memory_space<smem>>
    %1021 = vector.broadcast %1020 : f32 to vector<1x256xf32>
    %1022 = arith.mulf %1021, %1007 : vector<1x256xf32>
    %1023 = arith.addf %1006, %1022 : vector<1x256xf32>
    %1024 = vector.extract_strided_slice %689 {offsets = [2, 0], sizes = [1, 256], strides = [1, 1]} : vector<4x256xf32> to vector<1x256xf32>
    %c18_120 = arith.constant 18 : index
    %1025 = memref.load %arg4[%c18_120] : memref<144xf32, #tpu.memory_space<smem>>
    %1026 = vector.broadcast %1025 : f32 to vector<1x256xf32>
    %1027 = arith.mulf %1026, %1024 : vector<1x256xf32>
    %1028 = arith.addf %1011, %1027 : vector<1x256xf32>
    %c54_121 = arith.constant 54 : index
    %1029 = memref.load %arg4[%c54_121] : memref<144xf32, #tpu.memory_space<smem>>
    %1030 = vector.broadcast %1029 : f32 to vector<1x256xf32>
    %1031 = arith.mulf %1030, %1024 : vector<1x256xf32>
    %1032 = arith.addf %1015, %1031 : vector<1x256xf32>
    %c90_122 = arith.constant 90 : index
    %1033 = memref.load %arg4[%c90_122] : memref<144xf32, #tpu.memory_space<smem>>
    %1034 = vector.broadcast %1033 : f32 to vector<1x256xf32>
    %1035 = arith.mulf %1034, %1024 : vector<1x256xf32>
    %1036 = arith.addf %1019, %1035 : vector<1x256xf32>
    %c126_123 = arith.constant 126 : index
    %1037 = memref.load %arg4[%c126_123] : memref<144xf32, #tpu.memory_space<smem>>
    %1038 = vector.broadcast %1037 : f32 to vector<1x256xf32>
    %1039 = arith.mulf %1038, %1024 : vector<1x256xf32>
    %1040 = arith.addf %1023, %1039 : vector<1x256xf32>
    %1041 = vector.extract_strided_slice %692 {offsets = [2, 0], sizes = [1, 256], strides = [1, 1]} : vector<4x256xf32> to vector<1x256xf32>
    %c19_124 = arith.constant 19 : index
    %1042 = memref.load %arg4[%c19_124] : memref<144xf32, #tpu.memory_space<smem>>
    %1043 = vector.broadcast %1042 : f32 to vector<1x256xf32>
    %1044 = arith.mulf %1043, %1041 : vector<1x256xf32>
    %1045 = arith.addf %1028, %1044 : vector<1x256xf32>
    %c55_125 = arith.constant 55 : index
    %1046 = memref.load %arg4[%c55_125] : memref<144xf32, #tpu.memory_space<smem>>
    %1047 = vector.broadcast %1046 : f32 to vector<1x256xf32>
    %1048 = arith.mulf %1047, %1041 : vector<1x256xf32>
    %1049 = arith.addf %1032, %1048 : vector<1x256xf32>
    %c91_126 = arith.constant 91 : index
    %1050 = memref.load %arg4[%c91_126] : memref<144xf32, #tpu.memory_space<smem>>
    %1051 = vector.broadcast %1050 : f32 to vector<1x256xf32>
    %1052 = arith.mulf %1051, %1041 : vector<1x256xf32>
    %1053 = arith.addf %1036, %1052 : vector<1x256xf32>
    %c127_127 = arith.constant 127 : index
    %1054 = memref.load %arg4[%c127_127] : memref<144xf32, #tpu.memory_space<smem>>
    %1055 = vector.broadcast %1054 : f32 to vector<1x256xf32>
    %1056 = arith.mulf %1055, %1041 : vector<1x256xf32>
    %1057 = arith.addf %1040, %1056 : vector<1x256xf32>
    %1058 = vector.extract_strided_slice %696 {offsets = [2, 0], sizes = [1, 256], strides = [1, 1]} : vector<4x256xf32> to vector<1x256xf32>
    %c20_128 = arith.constant 20 : index
    %1059 = memref.load %arg4[%c20_128] : memref<144xf32, #tpu.memory_space<smem>>
    %1060 = vector.broadcast %1059 : f32 to vector<1x256xf32>
    %1061 = arith.mulf %1060, %1058 : vector<1x256xf32>
    %1062 = arith.addf %1045, %1061 : vector<1x256xf32>
    %c56_129 = arith.constant 56 : index
    %1063 = memref.load %arg4[%c56_129] : memref<144xf32, #tpu.memory_space<smem>>
    %1064 = vector.broadcast %1063 : f32 to vector<1x256xf32>
    %1065 = arith.mulf %1064, %1058 : vector<1x256xf32>
    %1066 = arith.addf %1049, %1065 : vector<1x256xf32>
    %c92_130 = arith.constant 92 : index
    %1067 = memref.load %arg4[%c92_130] : memref<144xf32, #tpu.memory_space<smem>>
    %1068 = vector.broadcast %1067 : f32 to vector<1x256xf32>
    %1069 = arith.mulf %1068, %1058 : vector<1x256xf32>
    %1070 = arith.addf %1053, %1069 : vector<1x256xf32>
    %c128_131 = arith.constant 128 : index
    %1071 = memref.load %arg4[%c128_131] : memref<144xf32, #tpu.memory_space<smem>>
    %1072 = vector.broadcast %1071 : f32 to vector<1x256xf32>
    %1073 = arith.mulf %1072, %1058 : vector<1x256xf32>
    %1074 = arith.addf %1057, %1073 : vector<1x256xf32>
    %1075 = vector.extract_strided_slice %699 {offsets = [2, 0], sizes = [1, 256], strides = [1, 1]} : vector<4x256xf32> to vector<1x256xf32>
    %c21_132 = arith.constant 21 : index
    %1076 = memref.load %arg4[%c21_132] : memref<144xf32, #tpu.memory_space<smem>>
    %1077 = vector.broadcast %1076 : f32 to vector<1x256xf32>
    %1078 = arith.mulf %1077, %1075 : vector<1x256xf32>
    %1079 = arith.addf %1062, %1078 : vector<1x256xf32>
    %c57_133 = arith.constant 57 : index
    %1080 = memref.load %arg4[%c57_133] : memref<144xf32, #tpu.memory_space<smem>>
    %1081 = vector.broadcast %1080 : f32 to vector<1x256xf32>
    %1082 = arith.mulf %1081, %1075 : vector<1x256xf32>
    %1083 = arith.addf %1066, %1082 : vector<1x256xf32>
    %c93_134 = arith.constant 93 : index
    %1084 = memref.load %arg4[%c93_134] : memref<144xf32, #tpu.memory_space<smem>>
    %1085 = vector.broadcast %1084 : f32 to vector<1x256xf32>
    %1086 = arith.mulf %1085, %1075 : vector<1x256xf32>
    %1087 = arith.addf %1070, %1086 : vector<1x256xf32>
    %c129_135 = arith.constant 129 : index
    %1088 = memref.load %arg4[%c129_135] : memref<144xf32, #tpu.memory_space<smem>>
    %1089 = vector.broadcast %1088 : f32 to vector<1x256xf32>
    %1090 = arith.mulf %1089, %1075 : vector<1x256xf32>
    %1091 = arith.addf %1074, %1090 : vector<1x256xf32>
    %1092 = vector.extract_strided_slice %685 {offsets = [2, 0], sizes = [1, 256], strides = [1, 1]} : vector<4x256xf32> to vector<1x256xf32>
    %c22_136 = arith.constant 22 : index
    %1093 = memref.load %arg4[%c22_136] : memref<144xf32, #tpu.memory_space<smem>>
    %1094 = vector.broadcast %1093 : f32 to vector<1x256xf32>
    %1095 = arith.mulf %1094, %1092 : vector<1x256xf32>
    %1096 = arith.addf %1079, %1095 : vector<1x256xf32>
    %c58_137 = arith.constant 58 : index
    %1097 = memref.load %arg4[%c58_137] : memref<144xf32, #tpu.memory_space<smem>>
    %1098 = vector.broadcast %1097 : f32 to vector<1x256xf32>
    %1099 = arith.mulf %1098, %1092 : vector<1x256xf32>
    %1100 = arith.addf %1083, %1099 : vector<1x256xf32>
    %c94_138 = arith.constant 94 : index
    %1101 = memref.load %arg4[%c94_138] : memref<144xf32, #tpu.memory_space<smem>>
    %1102 = vector.broadcast %1101 : f32 to vector<1x256xf32>
    %1103 = arith.mulf %1102, %1092 : vector<1x256xf32>
    %1104 = arith.addf %1087, %1103 : vector<1x256xf32>
    %c130_139 = arith.constant 130 : index
    %1105 = memref.load %arg4[%c130_139] : memref<144xf32, #tpu.memory_space<smem>>
    %1106 = vector.broadcast %1105 : f32 to vector<1x256xf32>
    %1107 = arith.mulf %1106, %1092 : vector<1x256xf32>
    %1108 = arith.addf %1091, %1107 : vector<1x256xf32>
    %1109 = vector.extract_strided_slice %702 {offsets = [2, 0], sizes = [1, 256], strides = [1, 1]} : vector<4x256xf32> to vector<1x256xf32>
    %c23_140 = arith.constant 23 : index
    %1110 = memref.load %arg4[%c23_140] : memref<144xf32, #tpu.memory_space<smem>>
    %1111 = vector.broadcast %1110 : f32 to vector<1x256xf32>
    %1112 = arith.mulf %1111, %1109 : vector<1x256xf32>
    %1113 = arith.addf %1096, %1112 : vector<1x256xf32>
    %c59_141 = arith.constant 59 : index
    %1114 = memref.load %arg4[%c59_141] : memref<144xf32, #tpu.memory_space<smem>>
    %1115 = vector.broadcast %1114 : f32 to vector<1x256xf32>
    %1116 = arith.mulf %1115, %1109 : vector<1x256xf32>
    %1117 = arith.addf %1100, %1116 : vector<1x256xf32>
    %c95_142 = arith.constant 95 : index
    %1118 = memref.load %arg4[%c95_142] : memref<144xf32, #tpu.memory_space<smem>>
    %1119 = vector.broadcast %1118 : f32 to vector<1x256xf32>
    %1120 = arith.mulf %1119, %1109 : vector<1x256xf32>
    %1121 = arith.addf %1104, %1120 : vector<1x256xf32>
    %c131_143 = arith.constant 131 : index
    %1122 = memref.load %arg4[%c131_143] : memref<144xf32, #tpu.memory_space<smem>>
    %1123 = vector.broadcast %1122 : f32 to vector<1x256xf32>
    %1124 = arith.mulf %1123, %1109 : vector<1x256xf32>
    %1125 = arith.addf %1108, %1124 : vector<1x256xf32>
    %1126 = vector.extract_strided_slice %706 {offsets = [2, 0], sizes = [1, 256], strides = [1, 1]} : vector<4x256xf32> to vector<1x256xf32>
    %c24_144 = arith.constant 24 : index
    %1127 = memref.load %arg4[%c24_144] : memref<144xf32, #tpu.memory_space<smem>>
    %1128 = vector.broadcast %1127 : f32 to vector<1x256xf32>
    %1129 = arith.mulf %1128, %1126 : vector<1x256xf32>
    %1130 = arith.addf %1113, %1129 : vector<1x256xf32>
    %c60_145 = arith.constant 60 : index
    %1131 = memref.load %arg4[%c60_145] : memref<144xf32, #tpu.memory_space<smem>>
    %1132 = vector.broadcast %1131 : f32 to vector<1x256xf32>
    %1133 = arith.mulf %1132, %1126 : vector<1x256xf32>
    %1134 = arith.addf %1117, %1133 : vector<1x256xf32>
    %c96_146 = arith.constant 96 : index
    %1135 = memref.load %arg4[%c96_146] : memref<144xf32, #tpu.memory_space<smem>>
    %1136 = vector.broadcast %1135 : f32 to vector<1x256xf32>
    %1137 = arith.mulf %1136, %1126 : vector<1x256xf32>
    %1138 = arith.addf %1121, %1137 : vector<1x256xf32>
    %c132_147 = arith.constant 132 : index
    %1139 = memref.load %arg4[%c132_147] : memref<144xf32, #tpu.memory_space<smem>>
    %1140 = vector.broadcast %1139 : f32 to vector<1x256xf32>
    %1141 = arith.mulf %1140, %1126 : vector<1x256xf32>
    %1142 = arith.addf %1125, %1141 : vector<1x256xf32>
    %1143 = vector.extract_strided_slice %709 {offsets = [2, 0], sizes = [1, 256], strides = [1, 1]} : vector<4x256xf32> to vector<1x256xf32>
    %c25_148 = arith.constant 25 : index
    %1144 = memref.load %arg4[%c25_148] : memref<144xf32, #tpu.memory_space<smem>>
    %1145 = vector.broadcast %1144 : f32 to vector<1x256xf32>
    %1146 = arith.mulf %1145, %1143 : vector<1x256xf32>
    %1147 = arith.addf %1130, %1146 : vector<1x256xf32>
    %c61_149 = arith.constant 61 : index
    %1148 = memref.load %arg4[%c61_149] : memref<144xf32, #tpu.memory_space<smem>>
    %1149 = vector.broadcast %1148 : f32 to vector<1x256xf32>
    %1150 = arith.mulf %1149, %1143 : vector<1x256xf32>
    %1151 = arith.addf %1134, %1150 : vector<1x256xf32>
    %c97_150 = arith.constant 97 : index
    %1152 = memref.load %arg4[%c97_150] : memref<144xf32, #tpu.memory_space<smem>>
    %1153 = vector.broadcast %1152 : f32 to vector<1x256xf32>
    %1154 = arith.mulf %1153, %1143 : vector<1x256xf32>
    %1155 = arith.addf %1138, %1154 : vector<1x256xf32>
    %c133_151 = arith.constant 133 : index
    %1156 = memref.load %arg4[%c133_151] : memref<144xf32, #tpu.memory_space<smem>>
    %1157 = vector.broadcast %1156 : f32 to vector<1x256xf32>
    %1158 = arith.mulf %1157, %1143 : vector<1x256xf32>
    %1159 = arith.addf %1142, %1158 : vector<1x256xf32>
    %1160 = vector.extract_strided_slice %713 {offsets = [2, 0], sizes = [1, 256], strides = [1, 1]} : vector<4x256xf32> to vector<1x256xf32>
    %c26_152 = arith.constant 26 : index
    %1161 = memref.load %arg4[%c26_152] : memref<144xf32, #tpu.memory_space<smem>>
    %1162 = vector.broadcast %1161 : f32 to vector<1x256xf32>
    %1163 = arith.mulf %1162, %1160 : vector<1x256xf32>
    %1164 = arith.addf %1147, %1163 : vector<1x256xf32>
    %c62_153 = arith.constant 62 : index
    %1165 = memref.load %arg4[%c62_153] : memref<144xf32, #tpu.memory_space<smem>>
    %1166 = vector.broadcast %1165 : f32 to vector<1x256xf32>
    %1167 = arith.mulf %1166, %1160 : vector<1x256xf32>
    %1168 = arith.addf %1151, %1167 : vector<1x256xf32>
    %c98_154 = arith.constant 98 : index
    %1169 = memref.load %arg4[%c98_154] : memref<144xf32, #tpu.memory_space<smem>>
    %1170 = vector.broadcast %1169 : f32 to vector<1x256xf32>
    %1171 = arith.mulf %1170, %1160 : vector<1x256xf32>
    %1172 = arith.addf %1155, %1171 : vector<1x256xf32>
    %c134_155 = arith.constant 134 : index
    %1173 = memref.load %arg4[%c134_155] : memref<144xf32, #tpu.memory_space<smem>>
    %1174 = vector.broadcast %1173 : f32 to vector<1x256xf32>
    %1175 = arith.mulf %1174, %1160 : vector<1x256xf32>
    %1176 = arith.addf %1159, %1175 : vector<1x256xf32>
    %1177 = vector.extract_strided_slice %689 {offsets = [3, 0], sizes = [1, 256], strides = [1, 1]} : vector<4x256xf32> to vector<1x256xf32>
    %c27_156 = arith.constant 27 : index
    %1178 = memref.load %arg4[%c27_156] : memref<144xf32, #tpu.memory_space<smem>>
    %1179 = vector.broadcast %1178 : f32 to vector<1x256xf32>
    %1180 = arith.mulf %1179, %1177 : vector<1x256xf32>
    %1181 = arith.addf %1164, %1180 : vector<1x256xf32>
    %c63_157 = arith.constant 63 : index
    %1182 = memref.load %arg4[%c63_157] : memref<144xf32, #tpu.memory_space<smem>>
    %1183 = vector.broadcast %1182 : f32 to vector<1x256xf32>
    %1184 = arith.mulf %1183, %1177 : vector<1x256xf32>
    %1185 = arith.addf %1168, %1184 : vector<1x256xf32>
    %c99_158 = arith.constant 99 : index
    %1186 = memref.load %arg4[%c99_158] : memref<144xf32, #tpu.memory_space<smem>>
    %1187 = vector.broadcast %1186 : f32 to vector<1x256xf32>
    %1188 = arith.mulf %1187, %1177 : vector<1x256xf32>
    %1189 = arith.addf %1172, %1188 : vector<1x256xf32>
    %c135_159 = arith.constant 135 : index
    %1190 = memref.load %arg4[%c135_159] : memref<144xf32, #tpu.memory_space<smem>>
    %1191 = vector.broadcast %1190 : f32 to vector<1x256xf32>
    %1192 = arith.mulf %1191, %1177 : vector<1x256xf32>
    %1193 = arith.addf %1176, %1192 : vector<1x256xf32>
    %1194 = vector.extract_strided_slice %692 {offsets = [3, 0], sizes = [1, 256], strides = [1, 1]} : vector<4x256xf32> to vector<1x256xf32>
    %c28_160 = arith.constant 28 : index
    %1195 = memref.load %arg4[%c28_160] : memref<144xf32, #tpu.memory_space<smem>>
    %1196 = vector.broadcast %1195 : f32 to vector<1x256xf32>
    %1197 = arith.mulf %1196, %1194 : vector<1x256xf32>
    %1198 = arith.addf %1181, %1197 : vector<1x256xf32>
    %c64_161 = arith.constant 64 : index
    %1199 = memref.load %arg4[%c64_161] : memref<144xf32, #tpu.memory_space<smem>>
    %1200 = vector.broadcast %1199 : f32 to vector<1x256xf32>
    %1201 = arith.mulf %1200, %1194 : vector<1x256xf32>
    %1202 = arith.addf %1185, %1201 : vector<1x256xf32>
    %c100_162 = arith.constant 100 : index
    %1203 = memref.load %arg4[%c100_162] : memref<144xf32, #tpu.memory_space<smem>>
    %1204 = vector.broadcast %1203 : f32 to vector<1x256xf32>
    %1205 = arith.mulf %1204, %1194 : vector<1x256xf32>
    %1206 = arith.addf %1189, %1205 : vector<1x256xf32>
    %c136_163 = arith.constant 136 : index
    %1207 = memref.load %arg4[%c136_163] : memref<144xf32, #tpu.memory_space<smem>>
    %1208 = vector.broadcast %1207 : f32 to vector<1x256xf32>
    %1209 = arith.mulf %1208, %1194 : vector<1x256xf32>
    %1210 = arith.addf %1193, %1209 : vector<1x256xf32>
    %1211 = vector.extract_strided_slice %696 {offsets = [3, 0], sizes = [1, 256], strides = [1, 1]} : vector<4x256xf32> to vector<1x256xf32>
    %c29_164 = arith.constant 29 : index
    %1212 = memref.load %arg4[%c29_164] : memref<144xf32, #tpu.memory_space<smem>>
    %1213 = vector.broadcast %1212 : f32 to vector<1x256xf32>
    %1214 = arith.mulf %1213, %1211 : vector<1x256xf32>
    %1215 = arith.addf %1198, %1214 : vector<1x256xf32>
    %c65_165 = arith.constant 65 : index
    %1216 = memref.load %arg4[%c65_165] : memref<144xf32, #tpu.memory_space<smem>>
    %1217 = vector.broadcast %1216 : f32 to vector<1x256xf32>
    %1218 = arith.mulf %1217, %1211 : vector<1x256xf32>
    %1219 = arith.addf %1202, %1218 : vector<1x256xf32>
    %c101_166 = arith.constant 101 : index
    %1220 = memref.load %arg4[%c101_166] : memref<144xf32, #tpu.memory_space<smem>>
    %1221 = vector.broadcast %1220 : f32 to vector<1x256xf32>
    %1222 = arith.mulf %1221, %1211 : vector<1x256xf32>
    %1223 = arith.addf %1206, %1222 : vector<1x256xf32>
    %c137_167 = arith.constant 137 : index
    %1224 = memref.load %arg4[%c137_167] : memref<144xf32, #tpu.memory_space<smem>>
    %1225 = vector.broadcast %1224 : f32 to vector<1x256xf32>
    %1226 = arith.mulf %1225, %1211 : vector<1x256xf32>
    %1227 = arith.addf %1210, %1226 : vector<1x256xf32>
    %1228 = vector.extract_strided_slice %699 {offsets = [3, 0], sizes = [1, 256], strides = [1, 1]} : vector<4x256xf32> to vector<1x256xf32>
    %c30_168 = arith.constant 30 : index
    %1229 = memref.load %arg4[%c30_168] : memref<144xf32, #tpu.memory_space<smem>>
    %1230 = vector.broadcast %1229 : f32 to vector<1x256xf32>
    %1231 = arith.mulf %1230, %1228 : vector<1x256xf32>
    %1232 = arith.addf %1215, %1231 : vector<1x256xf32>
    %c66_169 = arith.constant 66 : index
    %1233 = memref.load %arg4[%c66_169] : memref<144xf32, #tpu.memory_space<smem>>
    %1234 = vector.broadcast %1233 : f32 to vector<1x256xf32>
    %1235 = arith.mulf %1234, %1228 : vector<1x256xf32>
    %1236 = arith.addf %1219, %1235 : vector<1x256xf32>
    %c102_170 = arith.constant 102 : index
    %1237 = memref.load %arg4[%c102_170] : memref<144xf32, #tpu.memory_space<smem>>
    %1238 = vector.broadcast %1237 : f32 to vector<1x256xf32>
    %1239 = arith.mulf %1238, %1228 : vector<1x256xf32>
    %1240 = arith.addf %1223, %1239 : vector<1x256xf32>
    %c138_171 = arith.constant 138 : index
    %1241 = memref.load %arg4[%c138_171] : memref<144xf32, #tpu.memory_space<smem>>
    %1242 = vector.broadcast %1241 : f32 to vector<1x256xf32>
    %1243 = arith.mulf %1242, %1228 : vector<1x256xf32>
    %1244 = arith.addf %1227, %1243 : vector<1x256xf32>
    %1245 = vector.extract_strided_slice %685 {offsets = [3, 0], sizes = [1, 256], strides = [1, 1]} : vector<4x256xf32> to vector<1x256xf32>
    %c31_172 = arith.constant 31 : index
    %1246 = memref.load %arg4[%c31_172] : memref<144xf32, #tpu.memory_space<smem>>
    %1247 = vector.broadcast %1246 : f32 to vector<1x256xf32>
    %1248 = arith.mulf %1247, %1245 : vector<1x256xf32>
    %1249 = arith.addf %1232, %1248 : vector<1x256xf32>
    %c67_173 = arith.constant 67 : index
    %1250 = memref.load %arg4[%c67_173] : memref<144xf32, #tpu.memory_space<smem>>
    %1251 = vector.broadcast %1250 : f32 to vector<1x256xf32>
    %1252 = arith.mulf %1251, %1245 : vector<1x256xf32>
    %1253 = arith.addf %1236, %1252 : vector<1x256xf32>
    %c103_174 = arith.constant 103 : index
    %1254 = memref.load %arg4[%c103_174] : memref<144xf32, #tpu.memory_space<smem>>
    %1255 = vector.broadcast %1254 : f32 to vector<1x256xf32>
    %1256 = arith.mulf %1255, %1245 : vector<1x256xf32>
    %1257 = arith.addf %1240, %1256 : vector<1x256xf32>
    %c139_175 = arith.constant 139 : index
    %1258 = memref.load %arg4[%c139_175] : memref<144xf32, #tpu.memory_space<smem>>
    %1259 = vector.broadcast %1258 : f32 to vector<1x256xf32>
    %1260 = arith.mulf %1259, %1245 : vector<1x256xf32>
    %1261 = arith.addf %1244, %1260 : vector<1x256xf32>
    %1262 = vector.extract_strided_slice %702 {offsets = [3, 0], sizes = [1, 256], strides = [1, 1]} : vector<4x256xf32> to vector<1x256xf32>
    %c32_176 = arith.constant 32 : index
    %1263 = memref.load %arg4[%c32_176] : memref<144xf32, #tpu.memory_space<smem>>
    %1264 = vector.broadcast %1263 : f32 to vector<1x256xf32>
    %1265 = arith.mulf %1264, %1262 : vector<1x256xf32>
    %1266 = arith.addf %1249, %1265 : vector<1x256xf32>
    %c68_177 = arith.constant 68 : index
    %1267 = memref.load %arg4[%c68_177] : memref<144xf32, #tpu.memory_space<smem>>
    %1268 = vector.broadcast %1267 : f32 to vector<1x256xf32>
    %1269 = arith.mulf %1268, %1262 : vector<1x256xf32>
    %1270 = arith.addf %1253, %1269 : vector<1x256xf32>
    %c104_178 = arith.constant 104 : index
    %1271 = memref.load %arg4[%c104_178] : memref<144xf32, #tpu.memory_space<smem>>
    %1272 = vector.broadcast %1271 : f32 to vector<1x256xf32>
    %1273 = arith.mulf %1272, %1262 : vector<1x256xf32>
    %1274 = arith.addf %1257, %1273 : vector<1x256xf32>
    %c140_179 = arith.constant 140 : index
    %1275 = memref.load %arg4[%c140_179] : memref<144xf32, #tpu.memory_space<smem>>
    %1276 = vector.broadcast %1275 : f32 to vector<1x256xf32>
    %1277 = arith.mulf %1276, %1262 : vector<1x256xf32>
    %1278 = arith.addf %1261, %1277 : vector<1x256xf32>
    %1279 = vector.extract_strided_slice %706 {offsets = [3, 0], sizes = [1, 256], strides = [1, 1]} : vector<4x256xf32> to vector<1x256xf32>
    %c33_180 = arith.constant 33 : index
    %1280 = memref.load %arg4[%c33_180] : memref<144xf32, #tpu.memory_space<smem>>
    %1281 = vector.broadcast %1280 : f32 to vector<1x256xf32>
    %1282 = arith.mulf %1281, %1279 : vector<1x256xf32>
    %1283 = arith.addf %1266, %1282 : vector<1x256xf32>
    %c69_181 = arith.constant 69 : index
    %1284 = memref.load %arg4[%c69_181] : memref<144xf32, #tpu.memory_space<smem>>
    %1285 = vector.broadcast %1284 : f32 to vector<1x256xf32>
    %1286 = arith.mulf %1285, %1279 : vector<1x256xf32>
    %1287 = arith.addf %1270, %1286 : vector<1x256xf32>
    %c105_182 = arith.constant 105 : index
    %1288 = memref.load %arg4[%c105_182] : memref<144xf32, #tpu.memory_space<smem>>
    %1289 = vector.broadcast %1288 : f32 to vector<1x256xf32>
    %1290 = arith.mulf %1289, %1279 : vector<1x256xf32>
    %1291 = arith.addf %1274, %1290 : vector<1x256xf32>
    %c141_183 = arith.constant 141 : index
    %1292 = memref.load %arg4[%c141_183] : memref<144xf32, #tpu.memory_space<smem>>
    %1293 = vector.broadcast %1292 : f32 to vector<1x256xf32>
    %1294 = arith.mulf %1293, %1279 : vector<1x256xf32>
    %1295 = arith.addf %1278, %1294 : vector<1x256xf32>
    %1296 = vector.extract_strided_slice %709 {offsets = [3, 0], sizes = [1, 256], strides = [1, 1]} : vector<4x256xf32> to vector<1x256xf32>
    %c34_184 = arith.constant 34 : index
    %1297 = memref.load %arg4[%c34_184] : memref<144xf32, #tpu.memory_space<smem>>
    %1298 = vector.broadcast %1297 : f32 to vector<1x256xf32>
    %1299 = arith.mulf %1298, %1296 : vector<1x256xf32>
    %1300 = arith.addf %1283, %1299 : vector<1x256xf32>
    %c70_185 = arith.constant 70 : index
    %1301 = memref.load %arg4[%c70_185] : memref<144xf32, #tpu.memory_space<smem>>
    %1302 = vector.broadcast %1301 : f32 to vector<1x256xf32>
    %1303 = arith.mulf %1302, %1296 : vector<1x256xf32>
    %1304 = arith.addf %1287, %1303 : vector<1x256xf32>
    %c106_186 = arith.constant 106 : index
    %1305 = memref.load %arg4[%c106_186] : memref<144xf32, #tpu.memory_space<smem>>
    %1306 = vector.broadcast %1305 : f32 to vector<1x256xf32>
    %1307 = arith.mulf %1306, %1296 : vector<1x256xf32>
    %1308 = arith.addf %1291, %1307 : vector<1x256xf32>
    %c142_187 = arith.constant 142 : index
    %1309 = memref.load %arg4[%c142_187] : memref<144xf32, #tpu.memory_space<smem>>
    %1310 = vector.broadcast %1309 : f32 to vector<1x256xf32>
    %1311 = arith.mulf %1310, %1296 : vector<1x256xf32>
    %1312 = arith.addf %1295, %1311 : vector<1x256xf32>
    %1313 = vector.extract_strided_slice %713 {offsets = [3, 0], sizes = [1, 256], strides = [1, 1]} : vector<4x256xf32> to vector<1x256xf32>
    %c35_188 = arith.constant 35 : index
    %1314 = memref.load %arg4[%c35_188] : memref<144xf32, #tpu.memory_space<smem>>
    %1315 = vector.broadcast %1314 : f32 to vector<1x256xf32>
    %1316 = arith.mulf %1315, %1313 : vector<1x256xf32>
    %1317 = arith.addf %1300, %1316 : vector<1x256xf32>
    %c71_189 = arith.constant 71 : index
    %1318 = memref.load %arg4[%c71_189] : memref<144xf32, #tpu.memory_space<smem>>
    %1319 = vector.broadcast %1318 : f32 to vector<1x256xf32>
    %1320 = arith.mulf %1319, %1313 : vector<1x256xf32>
    %1321 = arith.addf %1304, %1320 : vector<1x256xf32>
    %c107_190 = arith.constant 107 : index
    %1322 = memref.load %arg4[%c107_190] : memref<144xf32, #tpu.memory_space<smem>>
    %1323 = vector.broadcast %1322 : f32 to vector<1x256xf32>
    %1324 = arith.mulf %1323, %1313 : vector<1x256xf32>
    %1325 = arith.addf %1308, %1324 : vector<1x256xf32>
    %c143_191 = arith.constant 143 : index
    %1326 = memref.load %arg4[%c143_191] : memref<144xf32, #tpu.memory_space<smem>>
    %1327 = vector.broadcast %1326 : f32 to vector<1x256xf32>
    %1328 = arith.mulf %1327, %1313 : vector<1x256xf32>
    %1329 = arith.addf %1312, %1328 : vector<1x256xf32>
    %c0_192 = arith.constant 0 : index
    %1330 = memref.load %arg5[%c0_192] : memref<4xf32, #tpu.memory_space<smem>>
    %1331 = vector.broadcast %1330 : f32 to vector<1x256xf32>
    %1332 = arith.addf %1317, %1331 : vector<1x256xf32>
    %c1_193 = arith.constant 1 : index
    %1333 = memref.load %arg5[%c1_193] : memref<4xf32, #tpu.memory_space<smem>>
    %1334 = vector.broadcast %1333 : f32 to vector<1x256xf32>
    %1335 = arith.addf %1321, %1334 : vector<1x256xf32>
    %c2_194 = arith.constant 2 : index
    %1336 = memref.load %arg5[%c2_194] : memref<4xf32, #tpu.memory_space<smem>>
    %1337 = vector.broadcast %1336 : f32 to vector<1x256xf32>
    %1338 = arith.addf %1325, %1337 : vector<1x256xf32>
    %c3_195 = arith.constant 3 : index
    %1339 = memref.load %arg5[%c3_195] : memref<4xf32, #tpu.memory_space<smem>>
    %1340 = vector.broadcast %1339 : f32 to vector<1x256xf32>
    %1341 = arith.addf %1329, %1340 : vector<1x256xf32>
    %1342 = tpu.concatenate %1332, %1335, %1338, %1341 in 0 : vector<1x256xf32>, vector<1x256xf32>, vector<1x256xf32>, vector<1x256xf32> -> vector<4x256xf32>
    %1343 = arith.addf %26, %1342 : vector<4x256xf32>
    %c0_196 = arith.constant 0 : index
    %c0_197 = arith.constant 0 : index
    %c0_198 = arith.constant 0 : index
    %1344 = vector.load %arg6[%c0_196, %c0_197, %c0_198] : memref<1x4x256xf32, #tpu.memory_space<vmem>>, vector<1x4x256xf32>
    %1345 = vector.shape_cast %1344 : vector<1x4x256xf32> to vector<4x256xf32>
    %1346 = vector.shape_cast %1343 : vector<4x256xf32> to vector<1x4x256xf32>
    tpu.vector_store %arg6[%c0_196, %c0_197, %c0_198], %1346 {strides = array<i32>} : memref<1x4x256xf32, #tpu.memory_space<vmem>>, vector<1x4x256xf32>,
    return
  }
  func.func @transform_0(%arg0: i32) -> (i32, i32, i32) {
    %c0_i32 = arith.constant 0 : i32
    %c0_i32_0 = arith.constant 0 : i32
    %c0_i32_1 = arith.constant 0 : i32
    return %arg0, %c0_i32, %c0_i32_0 : i32, i32, i32
  }
  func.func @transform_1(%arg0: i32) -> i32 {
    %c0_i32 = arith.constant 0 : i32
    %c0_i32_0 = arith.constant 0 : i32
    return %c0_i32 : i32
  }
  func.func @transform_2(%arg0: i32) -> i32 {
    %c0_i32 = arith.constant 0 : i32
    %c0_i32_0 = arith.constant 0 : i32
    return %c0_i32 : i32
  }
  func.func @transform_3(%arg0: i32) -> i32 {
    %c0_i32 = arith.constant 0 : i32
    %c0_i32_0 = arith.constant 0 : i32
    return %c0_i32 : i32
  }
  func.func @transform_4(%arg0: i32) -> i32 {
    %c0_i32 = arith.constant 0 : i32
    %c0_i32_0 = arith.constant 0 : i32
    return %c0_i32 : i32
  }
  func.func @transform_5(%arg0: i32) -> (i32, i32, i32) {
    %c0_i32 = arith.constant 0 : i32
    %c0_i32_0 = arith.constant 0 : i32
    %c0_i32_1 = arith.constant 0 : i32
    return %arg0, %c0_i32, %c0_i32_0 : i32, i32, i32
  }
}

</mosaic_0001>

<bundles_post_ra>
// kernel: tpu_custom_call.1
= control target key start
LH: loop header
LB: loop body
LE: loop exit
PB: predicated region body
PF: predicated region fallthrough
CT: control target
= control target key end

     0   :  { %s8127_s0 = inlined_call_operand.hbm [shape: f32[2,4,256], index: 0, kind: input, shape index: {}]   ;;  %s8128_s1 = inlined_call_operand.hbm [shape: f32[144], index: 1, kind: input, shape index: {}]   ;;  %s8129_s2 = inlined_call_operand.hbm [shape: f32[4], index: 2, kind: input, shape index: {}]   ;;  %s8130_s3 = inlined_call_operand.vmem [shape: f32[144], index: 3, kind: input, shape index: {}]   ;;  %s8131_s4 = inlined_call_operand.vmem [shape: f32[4], index: 4, kind: input, shape index: {}]   ;;  %s8132_s5 = inlined_call_operand.hbm [shape: f32[2,4,256], index: 5, kind: output, shape index: {}]  }
   0x1   :  { %8407 = sst [smem:[#allocation200_spill]] %s8127_s0 }
   0x2   :  { %8408 = sst [smem:[#allocation201_spill]] %s8128_s1 }
   0x3   :  { %8409 = sst [smem:[#allocation202_spill]] %s8129_s2 }
   0x4   :  { %8410 = sst [smem:[#allocation203_spill]] %s8130_s3 }
   0x5   :  { %8411 = sst [smem:[#allocation204_spill]] %s8131_s4 }
   0x6   :  { %8412 = sst [smem:[#allocation205_spill]] %s8132_s5 }
   0x7   :  { %10 = vsyncpa [#allocation3], 0 }
   0x8   :  { %12 = vsyncpa [#allocation3 + $0x1], 0 }
   0x9   :  { %13 = vsyncpa [#allocation5], 0 }
   0xa   :  { %14 = vsyncpa [#allocation9], 0 }
   0xb   :  { %15 = vsyncpa [#allocation6], 0 }
   0xc   :  { %16 = vsyncpa [#allocation12], 0 }
   0xd   :  { %17 = vsyncpa [#allocation4], 0 }
   0xe   :  { %19 = vsyncpa [#allocation4 + $0x1], 0  ;;  %s4384_s18 = smov 0   ;;  %s4386_s19 = smov 0  }
   0xf   :  { %s4388_s20 = smov 0   ;;  %s4390_s21 = smov 0  }
  0x10 LB: > { %8413 = sst [smem:[#allocation20_spill]] %s4328_s18  ;;  %s4408_s25 = sadd.s32 4294967295, %s4340_s21   ;;  %s4340_s21 = sphi %s4390_s21, %s9283_s21   ;;  %s4336_s20 = sphi %s4388_s20, %s9286_s20   ;;  %s4332_s19 = sphi %s4386_s19, %s9285_s19   ;;  %s4328_s18 = sphi %s4384_s18, %s9284_s18  }
  0x11   : > { %8414 = sst [smem:[#allocation21_spill]] %s4332_s19  ;;  %p3758_p0 = scmp.ge.s32.totalorder %s4340_s21, 1 }
  0x12   : > { %8415 = sst [smem:[#allocation22_spill]] %s4336_s20  ;;  %p46_p1 = scmp.eq.s32.totalorder %s4408_s25, 0 }
  0x13   : > { %8416 = sst [smem:[#allocation23_spill]] %s4340_s21  ;;  %p166_p2 = scmp.lt.s32.totalorder %s4340_s21, 3 }
  0x14   : > { %s8417_s1 = sld [smem:[#allocation201_spill]]  ;;  %s4342_s11 = smov [#allocation7]  }
  0x15   : > { %8418 = sst [smem:[#allocation24_spill]] %s4408_s25  ;;  %p4413_p3 = pnand %p3758_p0, %p166_p2 }
  0x16   : > { %s8420_s2 = sld [smem:[#allocation202_spill]]  ;;  %s4343_s12 = smov [#allocation8]  }
  0x17   : > { %p4093_p5 = pneg %p4413_p3  ;;  %s8421_s3 = sld [smem:[#allocation203_spill]] }
  0x18   : > { %s8422_s4 = sld [smem:[#allocation204_spill]]  ;;  %s4344_s13 = smov [#allocation10]  }
  0x19   : > { %p4094_p6 = pnand %p4093_p5, %p46_p1  ;;  %s4345_s14 = smov [#allocation11]  }
  0x1a   : > { %s178_s24 = sshll.u32 %s8417_s1, 4  ;;  %s3757_s15 = sadd.s32 4294967294, %s4340_s21   ;;  %s179_s24 = int_to_ptr.hbm [resolvable:$true] %s178_s24 }
  0x1b   : > { %4096 = dma.hbm_to_smem (!%p4094_p6), %s179_s24, 32, %s4342_s11, [#allocation5]  }
  0x1c   : > { %s188_s29 = sshll.u32 %s8420_s2, 4  ;;  %s4433_s16 = sadd.s32 1, %s4340_s21   ;;  %s189_s29 = int_to_ptr.hbm [resolvable:$true] %s188_s29 }
  0x1d   : > { %s198_s7 = sshll.u32 %s8421_s3, 4  ;;  %8423 = sst [smem:[#allocation25_spill]] %s4433_s16  ;;  %s199_s7 = int_to_ptr.vmem [resolvable:$true] %s198_s7 }
  0x1e   : > { %s208_s10 = sshll.u32 %s8422_s4, 4  ;;  %s29_s17 = ssub.s32 %s4340_s21, %s4433_s16  ;;  %s209_s10 = int_to_ptr.vmem [resolvable:$true] %s208_s10 }
  0x1f   : > { %4099 = dma.hbm_to_smem (!%p4094_p6), %s189_s29, 16, %s4343_s12, [#allocation9]  }
  0x20   : > { %4102 = dma.vmem_to_smem (!%p4094_p6), %s199_s7, 32, %s4344_s13, [#allocation6]  }
  0x21   : > { %4105 = dma.vmem_to_smem (!%p4094_p6), %s209_s10, 16, %s4345_s14, [#allocation12]  }
  0x22   : > { %s32_s22 = sadd.s32 1, %s4336_s20  ;;  %p30_p7 = scmp.eq.s32.totalorder %s29_s17, 0 }
  0x23   : > { %p39_p8 = scmp.ne.s32.totalorder %s4336_s20, %s4332_s19  ;;  %p40_p9 = scmp.eq.s32.totalorder %s4340_s21, 0 }
  0x24   : > { %p45_p10 = scmp.ne.s32.totalorder %s4332_s19, %s4328_s18  ;;  %p153_p13 = scmp.eq.s32.totalorder %s4408_s25, 1 }
  0x25   : > { %s4444_s23 = scalar_select %p30_p7, %s4336_s20, %s32_s22  }
  0x26   : > { %p4446_p11 = por %p40_p9, %p39_p8  ;;  %p4452_p12 = por %p46_p1, %p45_p10 }
  0x27   : > { %8424 = sst [smem:[#allocation26_spill]] %s4444_s23  ;;  %p159_p0 = scmp.eq.s32.totalorder %s3757_s15, 1 }
  0x28   : > { %p4118_p2 = scmp.lt.s32.totalorder %s4340_s21, 2  ;;  %s219_s28 = sand.u32 1, %s4336_s20  }
  0x29   : > { %p4459_p5 = por %p153_p13, %p39_p8  ;;  %p4463_p6 = por %p159_p0, %p45_p10 }
  0x2a   : > { %s3764_s6 = sshll.u32 %s219_s28, 3  ;;  %s4071_s7 = sshll.u32 %s4340_s21, 3 }
  0x2b   : > { %s8427_s29 = scalar_select %p4459_p5, 1, 0 }
  0x2c   : > { %s8429_s30 = scalar_select %p4463_p6, 1, 0 }
  0x2d   : > { %8428 = sst [smem:[#allocation27_spill]] %s8427_s29  ;;  %s223_s11 = scalar_lea.vmem [#allocation2], %s3764_s6 }
  0x2e   : > { %8430 = sst [smem:[#allocation28_spill]] %s8429_s30  ;;  %s232_s12 = sshll.u32 %s223_s11, 4  ;;  %s233_s12 = int_to_ptr.vmem [resolvable:$true] %s232_s12 }
  0x2f   : > { %s8431_s0 = sld [smem:[#allocation200_spill]]  ;;  %p4473_p7 = pnand %p4118_p2, %p4446_p11 }
  0x30   : > { %s220_s15 = scalar_lea.sflag [#allocation3], %s219_s28 }
  0x31   : > { %p4232_p9 = pneg %p4473_p7 }
  0x35   : > { %s228_s10 = scalar_lea.hbm %s8431_s0, %s4071_s7  ;;  %s4235_s8 = scalar_lea.hbm %s8431_s0, 16 }
  0x36   : > { %s230_s13 = sshll.u32 %s228_s10, 4  ;;  %s231_s13 = int_to_ptr.hbm [resolvable:$true] %s230_s13 }
  0x37   : > { %s4228_s17 = sshra.s32 %s231_s13, 4  ;;  %s4229_s17 = int_to_ptr.hbm [resolvable:$true] %s4228_s17 }
  0x38   : > { %s4230_s22 = scalar_lea.hbm %s4229_s17, 8  ;;  %p4236_p11 = scmp.lt.s32.totalorder %s4229_s17, %s8431_s0 }
  0x39   : > { %p4231_p8 = scmp.ne.s32.totalorder %s4229_s17, %s4230_s22  ;;  %p4237_p0 = scmp.lt.s32.totalorder %s4235_s8, %s4230_s22 }
  0x3b   : > { %p4233_p10 = pnand %p4232_p9, %p4231_p8  ;;  %p4238_p2 = por %p4237_p0, %p4236_p11 }
  0x3d   : > { %p4234_p13 = pneg %p4233_p10 }
  0x3f   : > { %p4239_p4 = pnand %p4238_p2, %p4234_p13 }
  0x41   : > { %4242 = shalt.err (!%p4239_p4)
}
  0x42   : > { %4109 = dma.hbm_to_vmem [thread:$0]  (!%p4473_p7), %s231_s13, 128, %s233_s12, %s220_s15  }
  0x43   : > { %241 = sbr.rel (%p4413_p3) target bundleno = 880 (0x370), region = 40 }
  0x48   : > { %s4490_s28 = sand.u32 1, %s4332_s19  }
  0x49   : > { %8433 = sst [smem:[#allocation29_spill]] %s4490_s28  ;;  %s8133_s10 = sshll.u32 %s4490_s28, 3 }
  0x4a   : > { %s244_s11 = scalar_lea.sflag [#allocation3], %s4490_s28  ;;  %s247_s17 = scalar_lea.vmem [#allocation2], %s8133_s10 }
  0x4b   : > { %4303 = dma.done.wait (%p4452_p12), %s244_s11, 128  }
  0x4c   : > { %4305 = vsyncadd (%p4452_p12), %s244_s11, 4294967168 }
  0x4d   : > { %4307 = dma.done.wait (%p46_p1), [#allocation5], 32  }
  0x4e   : > { %4309 = vsyncadd (%p46_p1), [#allocation5], 4294967264 }
  0x4f   : > { %4311 = dma.done.wait (%p46_p1), [#allocation9], 16  }
  0x50   : > { %4313 = vsyncadd (%p46_p1), [#allocation9], 4294967280 }
  0x51   : > { %4315 = dma.done.wait (%p46_p1), [#allocation6], 32  }
  0x52   : > { %4317 = vsyncadd (%p46_p1), [#allocation6], 4294967264 }
  0x53   : > { %4319 = dma.done.wait (%p46_p1), [#allocation12], 16  }
  0x54   : > { %4321 = vsyncadd (%p46_p1), [#allocation12], 4294967280 }
  0x55   : > { %273 = sfence }
  0x56   : > { %v4516_v0 = vld [vmem:[%s247_s17] sm:$0xff]  ;;  %s8146_s26 = smov 17   ;;  %s8148_s27 = smov 16   ;;  %v296_v17 = vlaneseq  ;;  %v8451_v40 = vmov 0  ;;  %v8454_v42 = vmov 0  ;;  %v8457_v44 = vmov 0 }
  0x57   : > { %8434 = vst [vmem:[#allocation30_spill] sm:$0xff] %v4516_v0  ;;  %s8144_s12 = smov 15   ;;  %s8138_s13 = smov 1   ;;  %v8462_v50 = vmov 0  ;;  %v8465_v53 = vmov 0  ;;  %v8468_v54 = vmov 0 }
  0x58   : > { %333 = vst [vmem:[#allocation1] ss:$2 sm:$0xff] %v4516_v0  ;;  %s8142_s14 = smov 127   ;;  %s8136_s15 = smov 113   ;;  %v4594_v18 = vand.u32 127, %v296_v17 }
  0x59   : > { %s8134_s22 = smov 112   ;;  %s8140_s6 = smov 111  }
  0x5a   : > { %s4542_s7 = sld [smem:[#allocation7]]  ;;  %8446 = vst [vmem:[#allocation42_spill] sm:$0xff] %v4594_v18  ;;  %v4605_v20 = vadd.s32 128, %v4594_v18  ;;  %v303_v25 = vand.u32 15, %v4594_v18  ;;  %vm323_vm0 = vcmp.ge.s32.totalorder %v4594_v18, 16  ;;  %vm342_vm2 = vcmp.lt.s32.totalorder %v4594_v18, 17 }
  0x5b   : > { %s4544_s8 = sld [smem:[#allocation7 + $0x24]]  ;;  %vm372_vm5 = vcmp.lt.s32.totalorder %v4594_v18, 15  ;;  %vm358_vm9 = vcmp.lt.s32.totalorder %v4594_v18, 16  ;;  %vm388_vm10 = vcmp.lt.s32.totalorder %v4594_v18, 1  ;;  %vm8337_vm11 = vcmp.lt.s32.totalorder %v4594_v18, 127 }
  0x5c   : > { %s4546_s9 = sld [smem:[#allocation7 + $0x48]]  ;;  %8449 = vst [vmem:[#allocation45_spill] sm:$0xff] %v4605_v20  ;;  %v310_v30 = vand.u32 15, %v4605_v20  ;;  %vm4640_vm1 = vcmp.ge.s32.totalorder %v303_v25, 1  ;;  %vm4654_vm4 = vcmp.lt.s32.totalorder %v303_v25, 15  ;;  %vm8359_vm12 = vcmp.lt.s32.totalorder %v4605_v20, 240 }
  0x5d   : > { %s4548_s24 = sld [smem:[#allocation7 + $0x6c]]  ;;  %v8452_v40 = vsel %vm4640_vm1, 4294967295, %v8451_v40  ;;  %v8458_v44 = vsel %vm4654_vm4, 4294967295, %v8457_v44  ;;  %vm4678_vm7 = vmand %vm323_vm0, %vm4654_vm4  ;;  %vm8360_vm13 = vcmp.lt.s32.totalorder %v4594_v18, 113  ;;  %vm8336_vm15 = vcmp.lt.s32.totalorder %v4594_v18, 112 }
  0x5e   : > { %s4550_s11 = sld [smem:[#allocation7 + $0x9]]  ;;  %8453 = vst [vmem:[#allocation47_spill] sm:$0xff] %v8452_v40  ;;  %vm4647_vm3 = vcmp.ge.s32.totalorder %v310_v30, 1  ;;  %vm4666_vm6 = vcmp.lt.s32.totalorder %v310_v30, 15  ;;  %v8466_v53 = vsel %vm4678_vm7, 4294967295, %v8465_v53  ;;  %vm4686_vm8 = vmand %vm323_vm0, %vm4640_vm1 }
  0x5f   : > { %v334_v1 = vld.sshfl [vmem:[#allocation1] sm:$0xff pattern:$0x75316420]  ;;  %v335_v2 = vld.sshfl [vmem:[#allocation1 + $0x8] sm:$0xff pattern:$0x75316420]  ;;  %vm5784_vm14 = vmand %vm8359_vm12, %vm4647_vm3 }
  0x60   : > { %338 = vrot.lane.b32.xlu0 %v334_v1, %s8146_s26  ;;  %349 = vst [vmem:[#allocation1] ss:$2 sm:$0xff] %v4516_v0  ;;  %8435 = sst [smem:[#allocation31_spill]] %s4542_s7  ;;  %v454_v21 = vstv %s4542_s7  ;;  %v8455_v42 = vsel %vm4647_vm3, 4294967295, %v8454_v42  ;;  %v8463_v50 = vsel %vm4666_vm6, 4294967295, %v8462_v50  ;;  %v8469_v54 = vsel %vm4686_vm8, 4294967295, %v8468_v54 }
  0x61   : > { %s4552_s17 = sld [smem:[#allocation7 + $0x2d]]  ;;  %v460_v22 = vstv %s4544_s8  ;;  %8456 = vst [vmem:[#allocation48_spill] sm:$0xff] %v8455_v42 }
  0x62   : > { %8436 = sst [smem:[#allocation32_spill]] %s4546_s9  ;;  %v466_v23 = vstv %s4546_s9  ;;  %8459 = vst [vmem:[#allocation49_spill] sm:$0xff] %v8458_v44 }
  0x63   : > { %8437 = sst [smem:[#allocation33_spill]] %s4548_s24  ;;  %v472_v24 = vstv %s4548_s24  ;;  %8464 = vst [vmem:[#allocation50_spill] sm:$0xff] %v8463_v50 }
  0x64   : > { %s4554_s10 = sld [smem:[#allocation7 + $0x51]]  ;;  %v686_v27 = vstv %s4550_s11  ;;  %8467 = vst [vmem:[#allocation51_spill] sm:$0xff] %v8466_v53 }
  0x65   : > { %s4572_s0 = sld [smem:[#allocation7 + $0x87]]  ;;  %8470 = vst [vmem:[#allocation52_spill] sm:$0xff] %v8469_v54 }
  0x66   : > { %s4574_s1 = sld [smem:[#allocation7 + $0x1]] }
  0x67   : > { %v350_v3 = vld.sshfl [vmem:[#allocation1] sm:$0xff pattern:$0x75316420]  ;;  %v351_v4 = vld.sshfl [vmem:[#allocation1 + $0x8] sm:$0xff pattern:$0x75316420]  ;;  %v698_v28 = vstv %s4552_s17 }
  0x68   : > { %354 = vrot.lane.b32.xlu1 %v350_v3, %s8148_s27  ;;  %340 = vrot.lane.b32.xlu0 %v335_v2, %s8146_s26  ;;  %363 = vst [vmem:[#allocation1] ss:$2 sm:$0xff] %v4516_v0  ;;  %s4568_s26 = sld [smem:[#allocation7 + $0x3f]] }
  0x69   : > { %s4576_s2 = sld [smem:[#allocation7 + $0x25]] }
  0x6a   : > { %s4578_s3 = sld [smem:[#allocation7 + $0x49]]  ;;  %v710_v29 = vstv %s4554_s10 }
  0x6b   : > { %8441 = sst [smem:[#allocation37_spill]] %s4572_s0  ;;  %v1570_v39 = vstv %s4572_s0 }
  0x6c   : > { %8442 = sst [smem:[#allocation38_spill]] %s4574_s1  ;;  %v478_v43 = vstv %s4574_s1 }
  0x6d   : > { %s4580_s4 = sld [smem:[#allocation7 + $0x6d]] }
  0x6e   : > { %8439 = sst [smem:[#allocation35_spill]] %s4568_s26  ;;  %v1546_v37 = vstv %s4568_s26 }
  0x6f   : > { %v364_v5 = vld.sshfl [vmem:[#allocation1] sm:$0xff pattern:$0x75316420]  ;;  %v365_v6 = vld.sshfl [vmem:[#allocation1 + $0x8] sm:$0xff pattern:$0x75316420]  ;;  %v484_v45 = vstv %s4576_s2 }
  0x70   : > { %356 = vrot.lane.b32.xlu1 %v351_v4, %s8148_s27  ;;  %379 = vst [vmem:[#allocation1] ss:$2 sm:$0xff] %v4516_v0  ;;  %368 = vrot.lane.b32.xlu2 %v364_v5, %s8144_s12  ;;  %s4570_s27 = sld [smem:[#allocation7 + $0x63]]  ;;  %v490_v46 = vstv %s4578_s3 }
  0x71   : > { %s4582_s23 = sld [smem:[#allocation7 + $0xa]] }
  0x72   : > { %s4584_s20 = sld [smem:[#allocation7 + $0x2e]] }
  0x73   : > { %s4586_s19 = sld [smem:[#allocation7 + $0x52]]  ;;  %v496_v47 = vstv %s4580_s4 }
  0x74   : > { %s4588_s16 = sld [smem:[#allocation7 + $0x76]] }
  0x75   : > { %s4590_s21 = sld [smem:[#allocation7 + $0x13]] }
  0x76   : > { %8440 = sst [smem:[#allocation36_spill]] %s4570_s27  ;;  %v1558_v38 = vstv %s4570_s27 }
  0x77   : > { %v381_v7 = vld.sshfl [vmem:[#allocation1 + $0x8] sm:$0xff pattern:$0x75316420]  ;;  %v380_v8 = vld.sshfl [vmem:[#allocation1] sm:$0xff pattern:$0x75316420]  ;;  %v734_v48 = vstv %s4582_s23 }
  0x78   : > { %386 = vrot.lane.b32.xlu1 %v381_v7, %s8138_s13  ;;  %384 = vrot.lane.b32.xlu0 %v380_v8, %s8138_s13  ;;  %393 = vst [vmem:[#allocation1] ss:$2 sm:$0xff] %v4516_v0  ;;  %s4560_s13 = sld [smem:[#allocation7 + $0x36]]  ;;  %v746_v49 = vstv %s4584_s20 }
  0x79   : > { %370 = vrot.lane.b32.xlu2 %v365_v6, %s8144_s12  ;;  %s4566_s12 = sld [smem:[#allocation7 + $0x1b]]  ;;  %v758_v55 = vstv %s4586_s19 }
  0x7a   : > { %8443 = sst [smem:[#allocation39_spill]] %s4584_s20  ;;  %v8497_v54 = vstv %s4588_s16 }
  0x7b   : > { %8444 = sst [smem:[#allocation40_spill]] %s4590_s21 }
  0x7c   : > { %s4592_s30 = sld [smem:[#allocation7 + $0x37]] }
  0x7d   : > { %s4596_s18 = sld [smem:[#allocation7 + $0x5b]] }
  0x7e   : > { %s4598_s29 = sld [smem:[#allocation7 + $0x7f]]  ;;  %v1122_v33 = vstv %s4560_s13 }
  0x7f   : > { %v394_v9 = vld.sshfl [vmem:[#allocation1] sm:$0xff pattern:$0x75316420]  ;;  %v395_v10 = vld.sshfl [vmem:[#allocation1 + $0x8] sm:$0xff pattern:$0x75316420]  ;;  %v1534_v36 = vstv %s4566_s12 }
  0x80   : > { %400 = vrot.lane.b32.xlu0 %v395_v10, %s8142_s14  ;;  %407 = vst [vmem:[#allocation1] ss:$2 sm:$0xff] %v4516_v0  ;;  %s4600_s5 = sld [smem:[#allocation7 + $0x1c]] }
  0x81   : > { %398 = vrot.lane.b32.xlu2 %v394_v9, %s8142_s14  ;;  %s4564_s14 = sld [smem:[#allocation7 + $0x7e]] }
  0x82   : > { %8445 = sst [smem:[#allocation41_spill]] %s4592_s30 }
  0x83   : > { %8447 = sst [smem:[#allocation43_spill]] %s4596_s18 }
  0x84   : > { %s4602_s28 = sld [smem:[#allocation7 + $0x40]] }
  0x85   : > { %s4607_s25 = sld [smem:[#allocation7 + $0x64]] }
  0x86   : > { %s4609_s30 = sld [smem:[#allocation7 + $0x88]] }
  0x87   : > { %v408_v11 = vld.sshfl [vmem:[#allocation1] sm:$0xff pattern:$0x75316420]  ;;  %v409_v12 = vld.sshfl [vmem:[#allocation1 + $0x8] sm:$0xff pattern:$0x75316420]  ;;  %v1146_v35 = vstv %s4564_s14 }
  0x88   : > { %412 = vrot.lane.b32.xlu1 %v408_v11, %s8136_s15  ;;  %423 = vst [vmem:[#allocation1] ss:$2 sm:$0xff] %v4516_v0  ;;  %8438 = sst [smem:[#allocation34_spill]] %s4564_s14 }
  0x89   : > { %414 = vrot.lane.b32.xlu2 %v409_v12, %s8136_s15  ;;  %s4558_s15 = sld [smem:[#allocation7 + $0x12]] }
  0x8a   : > { %8448 = sst [smem:[#allocation44_spill]] %s4602_s28 }
  0x8b   : > { %s4612_s18 = sld [smem:[#allocation7 + $0x2]] }
  0x8c   : > { %s4618_s28 = sld [smem:[#allocation7 + $0x26]] }
  0x8d   : > { %s4624_s7 = sld [smem:[#allocation7 + $0x4a]] }
  0x8e   : > { %s4630_s24 = sld [smem:[#allocation7 + $0x6e]] }
  0x8f   : > { %v425_v13 = vld.sshfl [vmem:[#allocation1 + $0x8] sm:$0xff pattern:$0x75316420]  ;;  %v424_v14 = vld.sshfl [vmem:[#allocation1] sm:$0xff pattern:$0x75316420]  ;;  %v1110_v32 = vstv %s4558_s15 }
  0x90   : > { %430 = vrot.lane.b32.xlu1 %v425_v13, %s8134_s22  ;;  %428 = vrot.lane.b32.xlu0 %v424_v14, %s8134_s22  ;;  %437 = vst [vmem:[#allocation1] ss:$2 sm:$0xff] %v4516_v0  ;;  %s4556_s22 = sld [smem:[#allocation7 + $0x75]] }
  0x91   : > { %s4636_s9 = sld [smem:[#allocation7 + $0xb]]  ;;  %v502_v63 = vstv %s4612_s18 }
  0x92   : > { %s4645_s14 = sld [smem:[#allocation7 + $0x2f]] }
  0x93   : > { %s4652_s0 = sld [smem:[#allocation7 + $0x53]] }
  0x94   : > { %s8460_s27 = sld [smem:[#allocation41_spill]] }
  0x95   : > { %s8461_s26 = sld [smem:[#allocation43_spill]] }
  0x96   : > { %v722_v31 = vstv %s4556_s22  ;;  %s4663_s1 = sld [smem:[#allocation7 + $0x77]] }
  0x97   : > { %v439_v15 = vld.sshfl [vmem:[#allocation1 + $0x8] sm:$0xff pattern:$0x75316420]  ;;  %v438_v16 = vld.sshfl [vmem:[#allocation1] sm:$0xff pattern:$0x75316420] }
  0x98   : > { %444 = vrot.lane.b32.xlu0 %v439_v15, %s8140_s6  ;;  %442 = vrot.lane.b32.xlu2 %v438_v16, %s8140_s6  ;;  %s4562_s6 = sld [smem:[#allocation7 + $0x5a]] }
  0x99   : > { %8450 = sst [smem:[#allocation46_spill]] %s4636_s9 }
  0x9a   : > { %s8471_s20 = sld [smem:[#allocation44_spill]] }
  0x9b   : > { %s4825_s15 = sld [smem:[#allocation7 + $0x14]] }
  0x9c   : > { %s4842_s9 = sld [smem:[#allocation7 + $0x38]] }
  0x9d   : > { %s8499_s2 = sld [smem:[#allocation40_spill]] }
  0x9e   : > { %v1134_v34 = vstv %s4562_s6  ;;  %s4986_s3 = sld [smem:[#allocation7 + $0x5c]] }
  0x9f   : > { %s4998_s4 = sld [smem:[#allocation7 + $0x80]] }
  0xa0   : > { %s5004_s19 = sld [smem:[#allocation7 + $0x1d]] }
  0xa1   : > { %s5013_s16 = sld [smem:[#allocation7 + $0x41]] }
  0xa2   : > { %s5033_s23 = sld [smem:[#allocation7 + $0x65]] }
  0xa3   : > { %s5128_s6 = sld [smem:[#allocation7 + $0x30]] }
  0xa4   : > { %s5234_s11 = sld [smem:[#allocation7 + $0x1e]] }
  0xa5   : > { %s5250_s17 = sld [smem:[#allocation7 + $0x42]] }
  0xa6   : > { %s5264_s18 = sld [smem:[#allocation7 + $0x66]] }
  0xa7   : > { %s5276_s21 = sld [smem:[#allocation7 + $0x4]] }
  0xa8   : > { %s5290_s10 = sld [smem:[#allocation7 + $0x28]] }
  0xa9   : > { %s5306_s22 = sld [smem:[#allocation7 + $0x4c]] }
  0xaa   : > { %s5312_s8 = sld [smem:[#allocation7 + $0x70]] }
  0xab   : > { %s5372_s12 = sld [smem:[#allocation7 + $0x29]] }
  0xac   : > { %s5386_s13 = sld [smem:[#allocation7 + $0x4d]] }
  0xca   : > { %v369_v19 = vpop.permute.xlu2 %368 }
  0xd2   : > { %v339_v26 = vpop.permute.xlu0 %338 }
  0xd3   : > { %v371_v41 = vpop.permute.xlu2 %370 }
  0xd4   : > { %v373_v51 = vsel %vm372_vm5, %v369_v19, %v371_v41  ;;  %v374_v52 = vsel %vm372_vm5, %v371_v41, %v369_v19 }
  0xd5   : > { %v4704_v3 = vsel %vm4678_vm7, %v374_v52, 0.0  ;;  %v4708_v4 = vsel %vm4666_vm6, %v373_v51, 0.0 }
  0xd6   : > { %v4725_v16 = vmul.f32 %v502_v63, %v4704_v3  ;;  %v4728_v17 = vmul.f32 %v502_v63, %v4708_v4 }
  0xda   : > { %v341_v59 = vpop.permute.xlu0 %340  ;;  %v355_v13 = vpop.permute.xlu1 %354 }
  0xdb   : > { %v343_v1 = vsel %vm342_vm2, %v339_v26, %v341_v59  ;;  %v344_v2 = vsel %vm342_vm2, %v341_v59, %v339_v26 }
  0xdc   : > { %v347_v5 = vsel %vm4686_vm8, %v344_v2, 0.0  ;;  %v4714_v6 = vsel %vm4647_vm3, %v343_v1, 0.0 }
  0xdd   : > { %v4732_v19 = vmul.f32 %v454_v21, %v347_v5  ;;  %v4737_v25 = vmul.f32 %v454_v21, %v4714_v6  ;;  %v4743_v41 = vmul.f32 %v460_v22, %v347_v5  ;;  %v4747_v51 = vmul.f32 %v686_v27, %v347_v5 }
  0xde   : > { %v4752_v52 = vmul.f32 %v686_v27, %v4714_v6  ;;  %v4756_v59 = vmul.f32 %v698_v28, %v347_v5  ;;  %v4762_v21 = vmul.f32 %v698_v28, %v4714_v6  ;;  %v4766_v63 = vmul.f32 %v710_v29, %v347_v5 }
  0xdf   : > { %v4771_v1 = vmul.f32 %v710_v29, %v4714_v6  ;;  %v4775_v27 = vmul.f32 %v722_v31, %v347_v5  ;;  %v4780_v2 = vmul.f32 %v460_v22, %v4714_v6  ;;  %v4784_v30 = vmul.f32 %v466_v23, %v347_v5 }
  0xe0   : > { %v4789_v28 = vmul.f32 %v466_v23, %v4714_v6  ;;  %v4794_v26 = vmul.f32 %v722_v31, %v4714_v6  ;;  %v4798_v29 = vmul.f32 %v472_v24, %v347_v5  ;;  %v4803_v22 = vmul.f32 %v472_v24, %v4714_v6 }
  0xe1   : > { %v4807_v15 = vmul.f32 %v1110_v32, %v347_v5  ;;  %v4812_v23 = vmul.f32 %v1110_v32, %v4714_v6  ;;  %v4819_v11 = vmul.f32 %v1122_v33, %v347_v5  ;;  %v4831_v31 = vmul.f32 %v1122_v33, %v4714_v6 }
  0xe2   : > { %v4835_v24 = vmul.f32 %v1134_v34, %v347_v5  ;;  %v4840_v32 = vmul.f32 %v1134_v34, %v4714_v6  ;;  %v4848_v10 = vmul.f32 %v1146_v35, %v347_v5  ;;  %v4853_v33 = vmul.f32 %v1146_v35, %v4714_v6  ;;  %v357_v12 = vpop.permute.xlu1 %356 }
  0xe3   : > { %8475 = vst [vmem:[#allocation53_spill] sm:$0xff] %v4807_v15  ;;  %v4858_v8 = vmul.f32 %v1534_v36, %v347_v5  ;;  %v4863_v34 = vmul.f32 %v1534_v36, %v4714_v6  ;;  %v4867_v14 = vmul.f32 %v1546_v37, %v347_v5  ;;  %v4872_v7 = vmul.f32 %v1546_v37, %v4714_v6 }
  0xe4   : > { %8476 = vst [vmem:[#allocation54_spill] sm:$0xff] %v4812_v23  ;;  %v4876_v35 = vmul.f32 %v1558_v38, %v347_v5  ;;  %v4881_v9 = vmul.f32 %v1558_v38, %v4714_v6  ;;  %v4885_v62 = vmul.f32 %v1570_v39, %v347_v5  ;;  %v4893_v37 = vmul.f32 %v1570_v39, %v4714_v6 }
  0xe5   : > { %8478 = vst [vmem:[#allocation55_spill] sm:$0xff] %v4819_v11  ;;  %v4899_v5 = vsel %vm358_vm9, %v355_v13, %v357_v12  ;;  %v360_v60 = vsel %vm358_vm9, %v357_v12, %v355_v13 }
  0xe6   : > { %8481 = vst [vmem:[#allocation56_spill] sm:$0xff] %v4831_v31  ;;  %v361_v38 = vsel %vm323_vm0, %v360_v60, 0.0  ;;  %v480_v6 = vmul.f32 %v478_v43, %v4899_v5  ;;  %v486_v12 = vmul.f32 %v484_v45, %v4899_v5  ;;  %v492_v13 = vmul.f32 %v490_v46, %v4899_v5 }
  0xe7   : > { %8483 = vst [vmem:[#allocation57_spill] sm:$0xff] %v4835_v24  ;;  %v479_v58 = vmul.f32 %v478_v43, %v361_v38  ;;  %v485_v36 = vmul.f32 %v484_v45, %v361_v38  ;;  %v491_v39 = vmul.f32 %v490_v46, %v361_v38  ;;  %v497_v57 = vmul.f32 %v496_v47, %v361_v38 }
  0xe8   : > { %8484 = vst [vmem:[#allocation58_spill] sm:$0xff] %v4840_v32  ;;  %v498_v60 = vmul.f32 %v496_v47, %v4899_v5  ;;  %v4937_v61 = vmul.f32 %v734_v48, %v361_v38  ;;  %v4942_v43 = vmul.f32 %v734_v48, %v4899_v5  ;;  %v4946_v56 = vmul.f32 %v746_v49, %v361_v38 }
  0xe9   : > { %8485 = vst [vmem:[#allocation59_spill] sm:$0xff] %v4848_v10  ;;  %v4951_v45 = vmul.f32 %v746_v49, %v4899_v5  ;;  %v4955_v46 = vmul.f32 %v758_v55, %v361_v38  ;;  %v4958_v53 = vadd.f32 %v480_v6, %v4737_v25  ;;  %v4963_v47 = vmul.f32 %v758_v55, %v4899_v5 }
  0xea   : > { %8486 = vst [vmem:[#allocation60_spill] sm:$0xff] %v4853_v33  ;;  %v4967_v48 = vmul.f32 %v8497_v54, %v361_v38  ;;  %v4975_v49 = vadd.f32 %v479_v58, %v4732_v19  ;;  %v4981_v25 = vadd.f32 %v486_v12, %v4780_v2  ;;  %v4984_v55 = vadd.f32 %v492_v13, %v4789_v28 }
  0xeb   : > { %8487 = vst [vmem:[#allocation61_spill] sm:$0xff] %v4858_v8  ;;  %v4992_v58 = vadd.f32 %v497_v57, %v4798_v29  ;;  %v4995_v19 = vadd.f32 %v498_v60, %v4803_v22  ;;  %v8504_v13 = vstv %s8460_s27  ;;  %s5053_s27 = sld [smem:[#allocation7 + $0x89]]  ;;  %v8528_v10 = vstv %s4609_s30 }
  0xec   : > { %8488 = vst [vmem:[#allocation62_spill] sm:$0xff] %v4863_v34  ;;  %v5022_v60 = vmul.f32 %v8504_v13, %v361_v38  ;;  %v8506_v22 = vmov %v8504_v13  ;;  %v8524_v34 = vstv %s4607_s25  ;;  %v5081_v32 = vmul.f32 %v8528_v10, %v361_v38  ;;  %s5104_s25 = sld [smem:[#allocation7 + $0x4b]] }
  0xed   : > { %8489 = vst [vmem:[#allocation63_spill] sm:$0xff] %v4867_v14  ;;  %v5027_v29 = vmul.f32 %v8506_v22, %v4899_v5  ;;  %v5071_v8 = vmul.f32 %v8524_v34, %v361_v38  ;;  %s5110_s30 = sld [smem:[#allocation7 + $0x6f]]  ;;  %v8533_v24 = vstv %s4618_s28 }
  0xee   : > { %8490 = vst [vmem:[#allocation64_spill] sm:$0xff] %v4872_v7  ;;  %v8520_v7 = vstv %s8471_s20  ;;  %s5098_s20 = sld [smem:[#allocation7 + $0x27]] }
  0xef   : > { %8491 = vst [vmem:[#allocation65_spill] sm:$0xff] %v4876_v35  ;;  %v5062_v14 = vmul.f32 %v8520_v7, %v361_v38  ;;  %s5144_s28 = sld [smem:[#allocation7 + $0x54]] }
  0xf0   : > { %8492 = vst [vmem:[#allocation66_spill] sm:$0xff] %v4881_v9  ;;  %v4978_v9 = vadd.f32 %v485_v36, %v4743_v41  ;;  %v8508_v36 = vstv %s8461_s26  ;;  %v8516_v41 = vstv %s4600_s5  ;;  %s5092_s5 = sld [smem:[#allocation7 + $0x3]] }
  0xf1   : > { %8493 = vst [vmem:[#allocation67_spill] sm:$0xff] %v4885_v62  ;;  %v5031_v57 = vmul.f32 %v8508_v36, %v361_v38  ;;  %v5051_v35 = vmul.f32 %v8516_v41, %v361_v38  ;;  %v8518_v22 = vmov %v8516_v41  ;;  %v8526_v41 = vmov %v8524_v34  ;;  %s5116_s26 = sld [smem:[#allocation7 + $0xc]] }
  0xf2   : > { %8495 = vst [vmem:[#allocation68_spill] sm:$0xff] %v4893_v37  ;;  %v8498_v37 = vmov %v8497_v54  ;;  %v4989_v54 = vadd.f32 %v491_v39, %v4784_v30  ;;  %v5077_v33 = vmul.f32 %v8526_v41, %v4899_v5  ;;  %v1230_v34 = vstv %s4986_s3  ;;  %s5414_s3 = sld [smem:[#allocation7 + $0xe]] }
  0xf3   : > { %v4972_v62 = vmul.f32 %v8498_v37, %v4899_v5  ;;  %v8500_v37 = vstv %s8499_s2  ;;  %8505 = vst [vmem:[#allocation71_spill] sm:$0xff] %v5022_v60  ;;  %v1630_v41 = vstv %s5004_s19  ;;  %s5400_s2 = sld [smem:[#allocation7 + $0x71]] }
  0xf4   : > { %v5011_v39 = vmul.f32 %v8500_v37, %v361_v38  ;;  %v8502_v6 = vmov %v8500_v37  ;;  %8507 = vst [vmem:[#allocation72_spill] sm:$0xff] %v5027_v29  ;;  %v8510_v37 = vmov %v8508_v36  ;;  %v5058_v36 = vmul.f32 %v8518_v22, %v4899_v5  ;;  %s5432_s19 = sld [smem:[#allocation7 + $0x56]] }
  0xf5   : > { %v5018_v12 = vmul.f32 %v8502_v6, %v4899_v5  ;;  %8509 = vst [vmem:[#allocation73_spill] sm:$0xff] %v5031_v57  ;;  %v5038_v28 = vmul.f32 %v8510_v37, %v4899_v5  ;;  %v8512_v6 = vstv %s4598_s29  ;;  %v8522_v37 = vmov %v8520_v7  ;;  %s8532_s29 = sld [smem:[#allocation46_spill]] }
  0xf6   : > { %8501 = vst [vmem:[#allocation69_spill] sm:$0xff] %v5011_v39  ;;  %v5042_v30 = vmul.f32 %v8512_v6, %v361_v38  ;;  %v8514_v13 = vmov %v8512_v6  ;;  %v5067_v6 = vmul.f32 %v8522_v37, %v4899_v5  ;;  %v8530_v22 = vmov %v8528_v10 }
  0xf7   : > { %8503 = vst [vmem:[#allocation70_spill] sm:$0xff] %v5018_v12  ;;  %v5047_v2 = vmul.f32 %v8514_v13, %v4899_v5  ;;  %v5086_v7 = vmul.f32 %v8530_v22, %v4899_v5  ;;  %v1242_v13 = vstv %s4998_s4  ;;  %v1642_v10 = vstv %s5013_s16  ;;  %s5424_s4 = sld [smem:[#allocation7 + $0x32]] }
  0xf8   : > { %8511 = vst [vmem:[#allocation74_spill] sm:$0xff] %v5038_v28  ;;  %v1654_v37 = vstv %s5033_s23  ;;  %v509_v5 = vmul.f32 %v8533_v24, %v4704_v3  ;;  %v8534_v22 = vmov %v8533_v24  ;;  %v5274_v60 = vmul.f32 %v1642_v10, %v4708_v4  ;;  %s5440_s16 = sld [smem:[#allocation7 + $0x7a]] }
  0xf9   : > { %8513 = vst [vmem:[#allocation75_spill] sm:$0xff] %v5042_v30  ;;  %v5280_v12 = vmul.f32 %v1654_v37, %v4704_v3  ;;  %v5283_v39 = vmul.f32 %v1654_v37, %v4708_v4  ;;  %v526_v31 = vstv %s5092_s5  ;;  %v538_v37 = vstv %s5104_s25  ;;  %s5454_s23 = sld [smem:[#allocation7 + $0x17]] }
  0xfa   : > { %8515 = vst [vmem:[#allocation76_spill] sm:$0xff] %v5047_v2  ;;  %s5482_s5 = sld [smem:[#allocation7 + $0x5f]] }
  0xfb   : > { %8517 = vst [vmem:[#allocation77_spill] sm:$0xff] %v5051_v35  ;;  %v8539_v24 = vstv %s8532_s29  ;;  %s5506_s25 = sld [smem:[#allocation7 + $0x20]] }
  0xfc   : > { %8519 = vst [vmem:[#allocation78_spill] sm:$0xff] %v5058_v36  ;;  %v5142_v2 = vmul.f32 %v8539_v24, %v4704_v3  ;;  %s5512_s29 = sld [smem:[#allocation7 + $0x44]] }
  0xfd   : > { %8521 = vst [vmem:[#allocation79_spill] sm:$0xff] %v5062_v14  ;;  %v8537_v14 = vstv %s4630_s24  ;;  %s5214_s24 = sld [smem:[#allocation7 + $0x5d]] }
  0xfe   : > { %8523 = vst [vmem:[#allocation80_spill] sm:$0xff] %v5067_v6  ;;  %v521_v38 = vmul.f32 %v8537_v14, %v4704_v3  ;;  %v8538_v36 = vmov %v8537_v14  ;;  %v8541_v14 = vstv %s4645_s14  ;;  %s5186_s14 = sld [smem:[#allocation7 + $0x15]] }
  0xff   : > { %8525 = vst [vmem:[#allocation81_spill] sm:$0xff] %v5071_v8  ;;  %v522_v35 = vmul.f32 %v8538_v36, %v4708_v4  ;;  %v5158_v30 = vmul.f32 %v8541_v14, %v4704_v3  ;;  %v8542_v36 = vmov %v8541_v14  ;;  %v8548_v14 = vstv %s4663_s1  ;;  %s5224_s1 = sld [smem:[#allocation7 + $0x81]] }
 0x100   : > { %8527 = vst [vmem:[#allocation82_spill] sm:$0xff] %v5077_v33  ;;  %v5163_v28 = vmul.f32 %v8542_v36, %v4708_v4  ;;  %v5184_v29 = vmul.f32 %v8548_v14, %v4704_v3  ;;  %v5189_v36 = vadd.f32 %v509_v5, %v4978_v9  ;;  %v5208_v9 = vadd.f32 %v521_v38, %v4992_v58 }
 0x101   : > { %8529 = vst [vmem:[#allocation83_spill] sm:$0xff] %v5081_v32  ;;  %v8535_v32 = vstv %s4624_s7  ;;  %s5165_s7 = sld [smem:[#allocation7 + $0x78]]  ;;  %v5259_v5 = vmul.f32 %v1242_v13, %v4708_v4  ;;  %v5268_v58 = vmul.f32 %v1630_v41, %v4708_v4 }
 0x102   : > { %8531 = vst [vmem:[#allocation84_spill] sm:$0xff] %v5086_v7  ;;  %v510_v7 = vmul.f32 %v8534_v22, %v4708_v4  ;;  %v515_v33 = vmul.f32 %v8535_v32, %v4704_v3  ;;  %v8536_v8 = vmov %v8535_v32  ;;  %v5148_v32 = vadd.f32 %v4725_v16, %v4975_v49 }
 0x103   : > { %v516_v6 = vmul.f32 %v8536_v8, %v4708_v4  ;;  %v8540_v22 = vmov %v8539_v24  ;;  %8543 = vst [vmem:[#allocation85_spill] sm:$0xff] %v5163_v28  ;;  %v5169_v24 = vadd.f32 %v4728_v17, %v4958_v53  ;;  %v8544_v16 = vstv %s4652_s0  ;;  %s5202_s0 = sld [smem:[#allocation7 + $0x39]] }
 0x104   : > { %v5153_v8 = vmul.f32 %v8540_v22, %v4708_v4  ;;  %v5174_v49 = vmul.f32 %v8544_v16, %v4704_v3  ;;  %v8546_v22 = vmov %v8544_v16  ;;  %8549 = vst [vmem:[#allocation88_spill] sm:$0xff] %v5184_v29  ;;  %v5192_v53 = vadd.f32 %v510_v7, %v4981_v25 }
 0x105   : > { %v5179_v57 = vmul.f32 %v8546_v22, %v4708_v4  ;;  %v5195_v17 = vadd.f32 %v515_v33, %v4989_v54  ;;  %v8550_v16 = vmov %v8548_v14  ;;  %v5205_v14 = vadd.f32 %v516_v6, %v4984_v55  ;;  %8563 = vst [vmem:[#allocation97_spill] sm:$0xff] %v5259_v5 }
 0x106   : > { %8545 = vst [vmem:[#allocation86_spill] sm:$0xff] %v5174_v49  ;;  %v5200_v22 = vmul.f32 %v8550_v16, %v4708_v4  ;;  %v5211_v25 = vadd.f32 %v522_v35, %v4995_v19  ;;  %v8552_v55 = vstv %s4825_s15  ;;  %v8556_v7 = vstv %s4842_s9  ;;  %s5300_s15 = sld [smem:[#allocation7 + $0x8a]] }
 0x107   : > { %8547 = vst [vmem:[#allocation87_spill] sm:$0xff] %v5179_v57  ;;  %v5222_v6 = vmul.f32 %v8552_v55, %v4704_v3  ;;  %v8554_v38 = vmov %v8552_v55  ;;  %v5240_v55 = vmul.f32 %v8556_v7, %v4704_v3  ;;  %v8558_v54 = vmov %v8556_v7  ;;  %s5362_s9 = sld [smem:[#allocation7 + $0x5]] }
 0x108   : > { %8551 = vst [vmem:[#allocation89_spill] sm:$0xff] %v5200_v22  ;;  %v5232_v16 = vmul.f32 %v8554_v38, %v4708_v4  ;;  %v5245_v33 = vmul.f32 %v8558_v54, %v4708_v4  ;;  %v5248_v35 = vmul.f32 %v1230_v34, %v4704_v3  ;;  %v5253_v38 = vmul.f32 %v1230_v34, %v4708_v4 }
 0x109   : > { %8553 = vst [vmem:[#allocation90_spill] sm:$0xff] %v5222_v6  ;;  %v5256_v19 = vmul.f32 %v1242_v13, %v4704_v3  ;;  %v5262_v7 = vmul.f32 %v1630_v41, %v4704_v3  ;;  %v5271_v34 = vmul.f32 %v1642_v10, %v4704_v3  ;;  %v8570_v54 = vstv %s5053_s27  ;;  %v387_v6 = vpop.permute.xlu1 %386  ;;  %s5468_s27 = sld [smem:[#allocation7 + $0x3b]] }
 0x10a   : > { %8555 = vst [vmem:[#allocation91_spill] sm:$0xff] %v5232_v16  ;;  %v5288_v41 = vmul.f32 %v8570_v54, %v4704_v3  ;;  %v8572_v13 = vmov %v8570_v54  ;;  %v842_v54 = vstv %s5128_s6  ;;  %v854_v10 = vstv %s5144_s28  ;;  %s5540_s6 = sld [smem:[#allocation7 + $0x6]] }
 0x10b   : > { %8557 = vst [vmem:[#allocation92_spill] sm:$0xff] %v5240_v55  ;;  %v5298_v16 = vmul.f32 %v8572_v13, %v4708_v4  ;;  %v532_v4 = vstv %s5098_s20  ;;  %v1254_v3 = vstv %s5186_s14  ;;  %v1690_v55 = vstv %s5250_s17  ;;  %s5500_s20 = sld [smem:[#allocation7 + $0x83]] }
 0x10c   : > { %8559 = vst [vmem:[#allocation93_spill] sm:$0xff] %v5245_v33  ;;  %v1678_v33 = vstv %s5234_s11  ;;  %s5544_s28 = sld [smem:[#allocation7 + $0x2a]] }
 0x10d   : > { %8560 = vst [vmem:[#allocation94_spill] sm:$0xff] %v5248_v35  ;;  %v1290_v35 = vstv %s5224_s1  ;;  %s5558_s14 = sld [smem:[#allocation7 + $0x72]] }
 0x10e   : > { %8561 = vst [vmem:[#allocation95_spill] sm:$0xff] %v5253_v38  ;;  %v1278_v38 = vstv %s5214_s24  ;;  %s5576_s24 = sld [smem:[#allocation7 + $0x33]] }
 0x10f   : > { %8562 = vst [vmem:[#allocation96_spill] sm:$0xff] %v5256_v19  ;;  %v560_v19 = vstv %s5290_s10  ;;  %s5582_s1 = sld [smem:[#allocation7 + $0x57]] }
 0x110   : > { %8564 = vst [vmem:[#allocation98_spill] sm:$0xff] %v5262_v7  ;;  %s5588_s11 = sld [smem:[#allocation7 + $0x7b]] }
 0x111   : > { %8565 = vst [vmem:[#allocation99_spill] sm:$0xff] %v5268_v58  ;;  %v385_v58 = vpop.permute.xlu0 %384  ;;  %s5594_s17 = sld [smem:[#allocation7 + $0x18]] }
 0x112   : > { %8566 = vst [vmem:[#allocation100_spill] sm:$0xff] %v5271_v34  ;;  %v830_v34 = vstv %s5116_s26  ;;  %v390_v13 = vsel %vm388_vm10, %v387_v6, %v385_v58  ;;  %s5528_s26 = sld [smem:[#allocation7 + $0x8c]] }
 0x113   : > { %8567 = vst [vmem:[#allocation101_spill] sm:$0xff] %v5274_v60  ;;  %v544_v60 = vstv %s5110_s30  ;;  %v5335_v7 = vsel %vm4640_vm1, %v390_v13, 0.0  ;;  %v5354_v13 = vmul.f32 %v560_v19, %v4516_v0  ;;  %s5520_s30 = sld [smem:[#allocation7 + $0x68]] }
 0x114   : > { %8568 = vst [vmem:[#allocation102_spill] sm:$0xff] %v5280_v12  ;;  %v1266_v12 = vstv %s5202_s0  ;;  %v533_v29 = vmul.f32 %v532_v4, %v5335_v7  ;;  %v539_v49 = vmul.f32 %v538_v37, %v5335_v7  ;;  %v5384_v22 = vmul.f32 %v854_v10, %v5335_v7  ;;  %s5570_s0 = sld [smem:[#allocation7 + $0xf]] }
 0x115   : > { %8569 = vst [vmem:[#allocation103_spill] sm:$0xff] %v5283_v39  ;;  %v866_v39 = vstv %s5165_s7  ;;  %s5552_s7 = sld [smem:[#allocation7 + $0x4e]] }
 0x116   : > { %8571 = vst [vmem:[#allocation104_spill] sm:$0xff] %v5288_v41  ;;  %v389_v41 = vsel %vm388_vm10, %v385_v58, %v387_v6  ;;  %v527_v6 = vmul.f32 %v526_v31, %v5335_v7  ;;  %s5631_s10 = sld [smem:[#allocation7 + $0x84]] }
 0x117   : > { %8573 = vst [vmem:[#allocation105_spill] sm:$0xff] %v5298_v16  ;;  %v550_v16 = vstv %s5276_s21  ;;  %v5339_v5 = vsel %vm4647_vm3, %v389_v41, 0.0  ;;  %v5378_v41 = vmul.f32 %v842_v54, %v5335_v7  ;;  %s5620_s21 = sld [smem:[#allocation7 + $0x60]] }
 0x118   : > { %v5350_v58 = vmul.f32 %v550_v16, %v4516_v0  ;;  %v528_v15 = vmul.f32 %v526_v31, %v5339_v5  ;;  %v534_v57 = vmul.f32 %v532_v4, %v5339_v5  ;;  %v540_v23 = vmul.f32 %v538_v37, %v5339_v5  ;;  %8576 = vst [vmem:[#allocation108_spill] sm:$0xff] %v5384_v22 }
 0x119   : > { %v545_v16 = vmul.f32 %v544_v60, %v5335_v7  ;;  %v546_v11 = vmul.f32 %v544_v60, %v5339_v5  ;;  %v5367_v31 = vmul.f32 %v830_v34, %v5335_v7  ;;  %v5370_v19 = vmul.f32 %v830_v34, %v5339_v5  ;;  %8574 = vst [vmem:[#allocation106_spill] sm:$0xff] %v5378_v41 }
 0x11a   : > { %v5375_v4 = vadd.f32 %v527_v6, %v5148_v32  ;;  %v5381_v37 = vmul.f32 %v842_v54, %v5339_v5  ;;  %v5389_v60 = vadd.f32 %v528_v15, %v5169_v24  ;;  %v5392_v34 = vmul.f32 %v854_v10, %v5339_v5 }
 0x11b   : > { %v5395_v32 = vmul.f32 %v866_v39, %v5335_v7  ;;  %v5398_v6 = vmul.f32 %v866_v39, %v5339_v5  ;;  %v5403_v54 = vadd.f32 %v533_v29, %v5189_v36  ;;  %v5406_v28 = vadd.f32 %v534_v57, %v5192_v53 }
 0x11c   : > { %8575 = vst [vmem:[#allocation107_spill] sm:$0xff] %v5381_v37  ;;  %v5409_v15 = vadd.f32 %v539_v49, %v5195_v17  ;;  %v5412_v24 = vadd.f32 %v540_v23, %v5205_v14  ;;  %v5417_v10 = vadd.f32 %v545_v16, %v5208_v9  ;;  %v5420_v39 = vadd.f32 %v546_v11, %v5211_v25 }
 0x11d   : > { %8577 = vst [vmem:[#allocation109_spill] sm:$0xff] %v5392_v34  ;;  %v5430_v53 = vmul.f32 %v1254_v3, %v5335_v7  ;;  %v5438_v9 = vmul.f32 %v1254_v3, %v5339_v5  ;;  %v5443_v25 = vmul.f32 %v1266_v12, %v5335_v7  ;;  %v5446_v16 = vmul.f32 %v1266_v12, %v5339_v5 }
 0x11e   : > { %8578 = vst [vmem:[#allocation110_spill] sm:$0xff] %v5395_v32  ;;  %v5449_v11 = vmul.f32 %v1278_v38, %v5335_v7  ;;  %v5452_v14 = vmul.f32 %v1278_v38, %v5339_v5  ;;  %v5457_v3 = vmul.f32 %v1290_v35, %v5335_v7  ;;  %v5460_v17 = vmul.f32 %v1290_v35, %v5339_v5 }
 0x11f   : > { %8579 = vst [vmem:[#allocation111_spill] sm:$0xff] %v5398_v6  ;;  %v5463_v23 = vmul.f32 %v1678_v33, %v5335_v7  ;;  %v5466_v12 = vmul.f32 %v1678_v33, %v5339_v5  ;;  %v5472_v38 = vmul.f32 %v1690_v55, %v5335_v7  ;;  %v5475_v57 = vmul.f32 %v1690_v55, %v5339_v5 }
 0x120   : > { %8580 = vst [vmem:[#allocation112_spill] sm:$0xff] %v5430_v53  ;;  %v8592_v36 = vstv %s5264_s18  ;;  %v8596_v49 = vstv %s5300_s15  ;;  %v8601_v34 = vstv %s5312_s8  ;;  %s5606_s18 = sld [smem:[#allocation7 + $0x3c]] }
 0x121   : > { %8581 = vst [vmem:[#allocation113_spill] sm:$0xff] %v5438_v9  ;;  %v5480_v35 = vmul.f32 %v8592_v36, %v5335_v7  ;;  %v8594_v33 = vmov %v8592_v36  ;;  %v5493_v53 = vmul.f32 %v8596_v49, %v5335_v7  ;;  %v8598_v32 = vmov %v8596_v49  ;;  %s5641_s15 = sld [smem:[#allocation7 + $0x21]] }
 0x122   : > { %8582 = vst [vmem:[#allocation114_spill] sm:$0xff] %v5443_v25  ;;  %v5488_v6 = vmul.f32 %v8594_v33, %v5339_v5  ;;  %v5498_v55 = vmul.f32 %v8598_v32, %v5339_v5  ;;  %v8600_v36 = vstv %s5306_s22  ;;  %v581_v29 = vmul.f32 %v8601_v34, %v4516_v0  ;;  %s5648_s22 = sld [smem:[#allocation7 + $0x45]] }
 0x123   : > { %8583 = vst [vmem:[#allocation115_spill] sm:$0xff] %v5446_v16  ;;  %v571_v7 = vmul.f32 %v8600_v36, %v4516_v0  ;;  %v553_v33 = vperm.slane %v5350_v58, 0  ;;  %v563_v36 = vperm.slane %v5354_v13, 0  ;;  %v564_v5 = vperm.slane %v5354_v13, 4  ;;  %s5654_s8 = sld [smem:[#allocation7 + $0x69]] }
 0x124   : > { %8584 = vst [vmem:[#allocation116_spill] sm:$0xff] %v5449_v11  ;;  %v590_v32 = vstv %s5362_s9  ;;  %v596_v49 = vstv %s5372_s12  ;;  %v583_v13 = vperm.slane %v581_v29, 0  ;;  %v1354_v16 = vstv %s5468_s27  ;;  %s5672_s9 = sld [smem:[#allocation7 + $0x8d]] }
 0x125   : > { %8585 = vst [vmem:[#allocation117_spill] sm:$0xff] %v5452_v14  ;;  %v573_v34 = vperm.slane %v571_v7, 0  ;;  %v1366_v25 = vstv %s5482_s5  ;;  %v568_v37 = vadd.f32 %v564_v5, %v5406_v28  ;;  %s5694_s12 = sld [smem:[#allocation7 + $0x7]] }
 0x126   : > { %8586 = vst [vmem:[#allocation118_spill] sm:$0xff] %v5457_v3  ;;  %v954_v3 = vstv %s5440_s16  ;;  %s5766_s16 = sld [smem:[#allocation7 + $0x58]] }
 0x127   : > { %8587 = vst [vmem:[#allocation119_spill] sm:$0xff] %v5460_v17  ;;  %v942_v17 = vstv %s5432_s19  ;;  %s5760_s19 = sld [smem:[#allocation7 + $0x34]]  ;;  %v1814_v42 = vstv %s5641_s15 }
 0x128   : > { %8588 = vst [vmem:[#allocation120_spill] sm:$0xff] %v5463_v23  ;;  %v584_v23 = vperm.slane %v581_v29, 4  ;;  %v567_v29 = vadd.f32 %v563_v36, %v5403_v54  ;;  %s5842_s27 = sld [smem:[#allocation7 + $0x19]] }
 0x129   : > { %8589 = vst [vmem:[#allocation121_spill] sm:$0xff] %v5466_v12  ;;  %v918_v12 = vstv %s5414_s3  ;;  %s5748_s3 = sld [smem:[#allocation7 + $0x73]] }
 0x12a   : > { %8590 = vst [vmem:[#allocation122_spill] sm:$0xff] %v5472_v38  ;;  %v574_v38 = vperm.slane %v571_v7, 4  ;;  %s5856_s5 = sld [smem:[#allocation7 + $0x3d]] }
 0x12b   : > { %8591 = vst [vmem:[#allocation123_spill] sm:$0xff] %v5475_v57  ;;  %v399_v57 = vpop.permute.xlu2 %398  ;;  %s6089_s15 = sld [smem:[#allocation7 + $0x7d]] }
 0x12c   : > { %8593 = vst [vmem:[#allocation124_spill] sm:$0xff] %v5480_v35  ;;  %v554_v35 = vperm.slane %v5350_v58, 4  ;;  %v930_v58 = vstv %s5424_s4  ;;  %v578_v22 = vadd.f32 %v574_v38, %v5412_v24  ;;  %s5754_s4 = sld [smem:[#allocation7 + $0x10]] }
 0x12d   : > { %8595 = vst [vmem:[#allocation125_spill] sm:$0xff] %v5488_v6  ;;  %v401_v6 = vpop.permute.xlu0 %400 }
 0x12e   : > { %8597 = vst [vmem:[#allocation126_spill] sm:$0xff] %v5493_v53  ;;  %v608_v53 = vstv %s5400_s2  ;;  %v403_v7 = vsel %vm8337_vm11, %v399_v57, %v401_v6  ;;  %v404_v11 = vsel %vm8337_vm11, %v401_v6, %v399_v57  ;;  %v557_v57 = vadd.f32 %v553_v33, %v5375_v4  ;;  %s5738_s2 = sld [smem:[#allocation7 + $0x4f]] }
 0x12f   : > { %8599 = vst [vmem:[#allocation127_spill] sm:$0xff] %v5498_v55  ;;  %v602_v55 = vstv %s5386_s13  ;;  %v5564_v41 = vsel %vm4654_vm4, %v403_v7, 0.0  ;;  %v5568_v14 = vsel %vm4666_vm6, %v404_v11, 0.0  ;;  %v558_v9 = vadd.f32 %v554_v35, %v5389_v60  ;;  %s5716_s13 = sld [smem:[#allocation7 + $0x2b]] }
 0x130   : > { %v577_v7 = vadd.f32 %v573_v34, %v5409_v15  ;;  %v587_v11 = vadd.f32 %v583_v13, %v5417_v10  ;;  %v588_v6 = vadd.f32 %v584_v23, %v5420_v39  ;;  %v591_v4 = vmul.f32 %v590_v32, %v5564_v41 }
 0x131   : > { %v592_v60 = vmul.f32 %v590_v32, %v5568_v14  ;;  %v597_v54 = vmul.f32 %v596_v49, %v5564_v41  ;;  %v598_v28 = vmul.f32 %v596_v49, %v5568_v14  ;;  %v603_v15 = vmul.f32 %v602_v55, %v5564_v41 }
 0x132   : > { %v604_v24 = vmul.f32 %v602_v55, %v5568_v14  ;;  %v609_v10 = vmul.f32 %v608_v53, %v5564_v41  ;;  %v610_v39 = vmul.f32 %v608_v53, %v5568_v14  ;;  %v5598_v23 = vmul.f32 %v918_v12, %v5564_v41 }
 0x133   : > { %v5601_v38 = vmul.f32 %v918_v12, %v5568_v14  ;;  %v5604_v35 = vmul.f32 %v930_v58, %v5564_v41  ;;  %v5609_v33 = vmul.f32 %v930_v58, %v5568_v14  ;;  %v5612_v55 = vmul.f32 %v942_v17, %v5564_v41 }
 0x134   : > { %8602 = vst [vmem:[#allocation128_spill] sm:$0xff] %v5598_v23  ;;  %v5615_v49 = vmul.f32 %v942_v17, %v5568_v14  ;;  %v5618_v53 = vmul.f32 %v954_v3, %v5564_v41  ;;  %v5622_v12 = vadd.f32 %v591_v4, %v557_v57  ;;  %v5624_v5 = vadd.f32 %v592_v60, %v558_v9 }
 0x135   : > { %8603 = vst [vmem:[#allocation129_spill] sm:$0xff] %v5601_v38  ;;  %v5626_v32 = vadd.f32 %v597_v54, %v567_v29  ;;  %v5629_v36 = vmul.f32 %v954_v3, %v5568_v14  ;;  %v5633_v34 = vadd.f32 %v598_v28, %v568_v37  ;;  %v5635_v17 = vadd.f32 %v603_v15, %v577_v7 }
 0x136   : > { %8604 = vst [vmem:[#allocation130_spill] sm:$0xff] %v5604_v35  ;;  %v5637_v58 = vadd.f32 %v604_v24, %v578_v22  ;;  %v5639_v13 = vadd.f32 %v609_v10, %v587_v11  ;;  %v5643_v9 = vadd.f32 %v610_v39, %v588_v6  ;;  %v8610_v4 = vstv %s5454_s23  ;;  %s5828_s23 = sld [smem:[#allocation7 + $0x7c]] }
 0x137   : > { %8605 = vst [vmem:[#allocation131_spill] sm:$0xff] %v5609_v33  ;;  %v5660_v60 = vmul.f32 %v8610_v4, %v5564_v41  ;;  %v8612_v54 = vmov %v8610_v4  ;;  %v5670_v15 = vmul.f32 %v1354_v16, %v5564_v41  ;;  %v5677_v24 = vmul.f32 %v1354_v16, %v5568_v14  ;;  %v415_v33 = vpop.permute.xlu2 %414 }
 0x138   : > { %8606 = vst [vmem:[#allocation132_spill] sm:$0xff] %v5612_v55  ;;  %v5665_v28 = vmul.f32 %v8612_v54, %v5568_v14  ;;  %v5682_v10 = vmul.f32 %v1366_v25, %v5564_v41  ;;  %v5687_v39 = vmul.f32 %v1366_v25, %v5568_v14  ;;  %v8618_v4 = vstv %s5500_s20  ;;  %s5870_s20 = sld [smem:[#allocation7 + $0x61]] }
 0x139   : > { %8607 = vst [vmem:[#allocation133_spill] sm:$0xff] %v5615_v49  ;;  %v5692_v54 = vmul.f32 %v8618_v4, %v5564_v41  ;;  %v8620_v11 = vmov %v8618_v4  ;;  %v8622_v16 = vstv %s5506_s25  ;;  %v8626_v25 = vstv %s5512_s29  ;;  %s5880_s25 = sld [smem:[#allocation7 + $0x85]] }
 0x13a   : > { %8608 = vst [vmem:[#allocation134_spill] sm:$0xff] %v5618_v53  ;;  %v5699_v7 = vmul.f32 %v8620_v11, %v5568_v14  ;;  %v5704_v6 = vmul.f32 %v8622_v16, %v5564_v41  ;;  %v8624_v57 = vmov %v8622_v16  ;;  %v5714_v29 = vmul.f32 %v8626_v25, %v5564_v41  ;;  %s5886_s29 = sld [smem:[#allocation7 + $0x22]] }
 0x13b   : > { %8609 = vst [vmem:[#allocation135_spill] sm:$0xff] %v5629_v36  ;;  %v5709_v22 = vmul.f32 %v8624_v57, %v5568_v14  ;;  %v8628_v4 = vmov %v8626_v25  ;;  %v8630_v11 = vstv %s5520_s30  ;;  %v8634_v57 = vstv %s5528_s26  ;;  %s5896_s30 = sld [smem:[#allocation7 + $0x46]] }
 0x13c   : > { %8611 = vst [vmem:[#allocation136_spill] sm:$0xff] %v5660_v60  ;;  %v5721_v37 = vmul.f32 %v8628_v4, %v5568_v14  ;;  %v5726_v3 = vmul.f32 %v8630_v11, %v5564_v41  ;;  %v8632_v16 = vmov %v8630_v11  ;;  %v5736_v53 = vmul.f32 %v8634_v57, %v5564_v41  ;;  %v413_v41 = vpop.permute.xlu1 %412  ;;  %s5910_s26 = sld [smem:[#allocation7 + $0x6a]] }
 0x13d   : > { %8613 = vst [vmem:[#allocation137_spill] sm:$0xff] %v5665_v28  ;;  %v5731_v36 = vmul.f32 %v8632_v16, %v5568_v14  ;;  %v8636_v55 = vmov %v8634_v57  ;;  %v620_v49 = vstv %s5544_s28  ;;  %v626_v25 = vstv %s5552_s7  ;;  %s5942_s28 = sld [smem:[#allocation7 + $0x8]] }
 0x13e   : > { %8614 = vst [vmem:[#allocation138_spill] sm:$0xff] %v5670_v15  ;;  %v5746_v11 = vmul.f32 %v8636_v55, %v5568_v14  ;;  %v614_v14 = vstv %s5540_s6  ;;  %v966_v57 = vstv %s5570_s0  ;;  %v990_v16 = vstv %s5582_s1  ;;  %s5924_s6 = sld [smem:[#allocation7 + $0x8e]] }
 0x13f   : > { %8615 = vst [vmem:[#allocation139_spill] sm:$0xff] %v5677_v24  ;;  %v1002_v4 = vstv %s5588_s11  ;;  %v1390_v55 = vstv %s5594_s17  ;;  %v1850_v24 = vstv %s5672_s9  ;;  %s5956_s7 = sld [smem:[#allocation7 + $0x2c]]  ;;  %vm8358_vm11 = vcmp.lt.s32.totalorder %v4594_v18, 111 }
 0x140   : > { %8616 = vst [vmem:[#allocation140_spill] sm:$0xff] %v5682_v10  ;;  %s5968_s0 = sld [smem:[#allocation7 + $0x74]] }
 0x141   : > { %8617 = vst [vmem:[#allocation141_spill] sm:$0xff] %v5687_v39  ;;  %v1826_v39 = vstv %s5648_s22  ;;  %s6007_s1 = sld [smem:[#allocation7 + $0x31]] }
 0x142   : > { %8619 = vst [vmem:[#allocation142_spill] sm:$0xff] %v5692_v54  ;;  %s6015_s11 = sld [smem:[#allocation7 + $0x55]] }
 0x143   : > { %8621 = vst [vmem:[#allocation143_spill] sm:$0xff] %v5699_v7  ;;  %s6023_s17 = sld [smem:[#allocation7 + $0x79]] }
 0x144   : > { %8623 = vst [vmem:[#allocation144_spill] sm:$0xff] %v5704_v6  ;;  %v1426_v6 = vstv %s5631_s10  ;;  %s6071_s10 = sld [smem:[#allocation7 + $0x59]] }
 0x145   : > { %8625 = vst [vmem:[#allocation145_spill] sm:$0xff] %v5709_v22  ;;  %v418_v22 = vsel %vm8360_vm13, %v415_v33, %v413_v41  ;;  %s6103_s22 = sld [smem:[#allocation7 + $0x16]] }
 0x146   : > { %8627 = vst [vmem:[#allocation146_spill] sm:$0xff] %v5714_v29  ;;  %v417_v29 = vsel %vm8360_vm13, %v413_v41, %v415_v33  ;;  %v5802_v54 = vsel %vm5784_vm14, %v418_v22, 0.0  ;;  %s6123_s9 = sld [smem:[#allocation7 + $0x5e]]  ;;  %vm1997_vm13 = vcmask 1042432  }
 0x147   : > { %8629 = vst [vmem:[#allocation147_spill] sm:$0xff] %v5721_v37  ;;  %v632_v37 = vstv %s5558_s14  ;;  %v5798_v7 = vsel %vm4640_vm1, %v417_v29, 0.0  ;;  %v616_v41 = vmul.f32 %v614_v14, %v5802_v54  ;;  %v628_v10 = vmul.f32 %v626_v25, %v5802_v54  ;;  %s5962_s14 = sld [smem:[#allocation7 + $0x50]] }
 0x148   : > { %8631 = vst [vmem:[#allocation148_spill] sm:$0xff] %v5726_v3  ;;  %v978_v3 = vstv %s5576_s24  ;;  %v615_v33 = vmul.f32 %v614_v14, %v5798_v7  ;;  %v621_v29 = vmul.f32 %v620_v49, %v5798_v7  ;;  %v627_v22 = vmul.f32 %v626_v25, %v5798_v7  ;;  %s5997_s24 = sld [smem:[#allocation7 + $0xd]] }
 0x149   : > { %8633 = vst [vmem:[#allocation149_spill] sm:$0xff] %v5731_v36  ;;  %v1414_v36 = vstv %s5620_s21  ;;  %v633_v15 = vmul.f32 %v632_v37, %v5798_v7  ;;  %v634_v60 = vmul.f32 %v632_v37, %v5802_v54  ;;  %v5823_v38 = vmul.f32 %v966_v57, %v5798_v7  ;;  %s6051_s21 = sld [smem:[#allocation7 + $0x35]] }
 0x14a   : > { %8635 = vst [vmem:[#allocation150_spill] sm:$0xff] %v5736_v53  ;;  %v1402_v53 = vstv %s5606_s18  ;;  %v5826_v35 = vmul.f32 %v966_v57, %v5802_v54  ;;  %v5831_v14 = vmul.f32 %v978_v3, %v5798_v7  ;;  %v5837_v25 = vmul.f32 %v990_v16, %v5798_v7  ;;  %s6035_s18 = sld [smem:[#allocation7 + $0x11]] }
 0x14b   : > { %8637 = vst [vmem:[#allocation151_spill] sm:$0xff] %v5746_v11  ;;  %v8638_v11 = vmov 0  ;;  %v5840_v40 = vmul.f32 %v990_v16, %v5802_v54  ;;  %v5845_v37 = vadd.f32 %v615_v33, %v5622_v12  ;;  %v5848_v57 = vadd.f32 %v616_v41, %v5624_v5 }
 0x14c   : > { %v8639_v11 = vsel %vm5784_vm14, 4294967295, %v8638_v11  ;;  %v5851_v23 = vmul.f32 %v1002_v4, %v5798_v7  ;;  %v5859_v28 = vadd.f32 %v621_v29, %v5626_v32  ;;  %v5865_v12 = vadd.f32 %v627_v22, %v5635_v17 }
 0x14d   : > { %8640 = vst [vmem:[#allocation152_spill] sm:$0xff] %v8639_v11  ;;  %v622_v11 = vmul.f32 %v620_v49, %v5802_v54  ;;  %v5834_v49 = vmul.f32 %v978_v3, %v5802_v54  ;;  %v5854_v3 = vmul.f32 %v1002_v4, %v5802_v54  ;;  %v5868_v5 = vadd.f32 %v628_v10, %v5637_v58 }
 0x14e   : > { %8641 = vst [vmem:[#allocation153_spill] sm:$0xff] %v5851_v23  ;;  %v5873_v33 = vadd.f32 %v633_v15, %v5639_v13  ;;  %v5876_v4 = vadd.f32 %v634_v60, %v5643_v9  ;;  %v5891_v60 = vmul.f32 %v1390_v55, %v5798_v7  ;;  %v5894_v15 = vmul.f32 %v1390_v55, %v5802_v54 }
 0x14f   : > { %8642 = vst [vmem:[#allocation154_spill] sm:$0xff] %v5854_v3  ;;  %v5862_v16 = vadd.f32 %v622_v11, %v5633_v34  ;;  %v5899_v11 = vmul.f32 %v1402_v53, %v5798_v7  ;;  %v5902_v29 = vmul.f32 %v1402_v53, %v5802_v54  ;;  %v5905_v22 = vmul.f32 %v1414_v36, %v5798_v7 }
 0x150   : > { %8643 = vst [vmem:[#allocation155_spill] sm:$0xff] %v5891_v60  ;;  %v5908_v9 = vmul.f32 %v1414_v36, %v5802_v54  ;;  %v5913_v55 = vmul.f32 %v1426_v6, %v5798_v7  ;;  %v5916_v13 = vmul.f32 %v1426_v6, %v5802_v54  ;;  %v5919_v10 = vmul.f32 %v1814_v42, %v5798_v7 }
 0x151   : > { %8644 = vst [vmem:[#allocation156_spill] sm:$0xff] %v5894_v15  ;;  %v5922_v53 = vmul.f32 %v1814_v42, %v5802_v54  ;;  %v5927_v58 = vmul.f32 %v1826_v39, %v5798_v7  ;;  %v5930_v36 = vmul.f32 %v1826_v39, %v5802_v54  ;;  %v8655_v17 = vstv %s5654_s8  ;;  %s6115_s8 = sld [smem:[#allocation7 + $0x3a]] }
 0x152   : > { %8645 = vst [vmem:[#allocation157_spill] sm:$0xff] %v5899_v11  ;;  %v5935_v34 = vmul.f32 %v8655_v17, %v5798_v7  ;;  %v8657_v6 = vmov %v8655_v17  ;;  %v5949_v3 = vmul.f32 %v1850_v24, %v5798_v7  ;;  %v5954_v39 = vmul.f32 %v1850_v24, %v5802_v54  ;;  %v431_v17 = vpop.permute.xlu1 %430 }
 0x153   : > { %8646 = vst [vmem:[#allocation158_spill] sm:$0xff] %v5902_v29  ;;  %v5940_v41 = vmul.f32 %v8657_v6, %v5802_v54  ;;  %v429_v6 = vpop.permute.xlu0 %428  ;;  %v1438_v42 = vstv %s5842_s27  ;;  %v1450_v23 = vstv %s5856_s5  ;;  %v1462_v32 = vstv %s5870_s20  ;;  %s6221_s27 = sld [smem:[#allocation7 + $0x8b]] }
 0x154   : > { %8647 = vst [vmem:[#allocation159_spill] sm:$0xff] %v5905_v22  ;;  %v5982_v7 = vsel %vm8336_vm15, %v429_v6, %v431_v17  ;;  %v434_v24 = vsel %vm8336_vm15, %v431_v17, %v429_v6  ;;  %s6229_s5 = sld [smem:[#allocation7 + $0x23]]  ;;  %vm6313_vm15 = vmand %vm8359_vm12, %vm4666_vm6  ;;  %v8717_v20 = vstv %s5962_s14  ;;  %s9094_s14 = smov 15  }
 0x155   : > { %8648 = vst [vmem:[#allocation160_spill] sm:$0xff] %v5908_v9  ;;  %v5989_v54 = vsel %vm8359_vm12, %v434_v24, 0.0  ;;  %v6110_v15 = vmul.f32 %v1450_v23, %v5982_v7  ;;  %s6235_s20 = sld [smem:[#allocation7 + $0x47]]  ;;  %vm1994_vm12 = vcmask 1041408  }
 0x156   : > { %8649 = vst [vmem:[#allocation161_spill] sm:$0xff] %v5913_v55 }
 0x157   : > { %8650 = vst [vmem:[#allocation162_spill] sm:$0xff] %v5916_v13 }
 0x158   : > { %8651 = vst [vmem:[#allocation163_spill] sm:$0xff] %v5919_v10  ;;  %v8664_v10 = vstv %s5738_s2  ;;  %s6151_s2 = sld [smem:[#allocation7 + $0x3e]] }
 0x159   : > { %8652 = vst [vmem:[#allocation164_spill] sm:$0xff] %v5922_v53  ;;  %v1050_v53 = vstv %s5828_s23  ;;  %v651_v24 = vmul.f32 %v8664_v10, %v5982_v7  ;;  %s6211_s23 = sld [smem:[#allocation7 + $0x67]] }
 0x15a   : > { %8653 = vst [vmem:[#allocation165_spill] sm:$0xff] %v5927_v58  ;;  %v8665_v58 = vmov %v8664_v10  ;;  %v6095_v11 = vmul.f32 %v1050_v53, %v5989_v54 }
 0x15b   : > { %8654 = vst [vmem:[#allocation166_spill] sm:$0xff] %v5930_v36  ;;  %v1474_v36 = vstv %s5880_s25  ;;  %v652_v22 = vmul.f32 %v8665_v58, %v5989_v54  ;;  %v6041_v10 = vadd.f32 %v651_v24, %v5865_v12  ;;  %s6241_s25 = sld [smem:[#allocation7 + $0x6b]] }
 0x15c   : > { %8656 = vst [vmem:[#allocation167_spill] sm:$0xff] %v5935_v34 }
 0x15d   : > { %8658 = vst [vmem:[#allocation168_spill] sm:$0xff] %v5940_v41  ;;  %v8662_v41 = vstv %s5716_s13  ;;  %s6139_s13 = sld [smem:[#allocation7 + $0x1a]] }
 0x15e   : > { %8659 = vst [vmem:[#allocation169_spill] sm:$0xff] %v5949_v3  ;;  %v645_v34 = vmul.f32 %v8662_v41, %v5982_v7  ;;  %v646_v9 = vmul.f32 %v8662_v41, %v5989_v54  ;;  %v8666_v41 = vstv %s5748_s3  ;;  %s6169_s3 = sld [smem:[#allocation7 + $0x62]] }
 0x15f   : > { %8660 = vst [vmem:[#allocation170_spill] sm:$0xff] %v5954_v39  ;;  %v8661_v39 = vstv %s5694_s12  ;;  %v657_v13 = vmul.f32 %v8666_v41, %v5982_v7  ;;  %s6131_s12 = sld [smem:[#allocation7 + $0x82]] }
 0x160   : > { %v639_v3 = vmul.f32 %v8661_v39, %v5982_v7  ;;  %v8663_v17 = vmov %v8661_v39  ;;  %v6029_v55 = vadd.f32 %v645_v34, %v5859_v28  ;;  %v6054_v34 = vadd.f32 %v646_v9, %v5862_v16  ;;  %8678 = vst [vmem:[#allocation175_spill] sm:$0xff] %v6095_v11 }
 0x161   : > { %v640_v6 = vmul.f32 %v8663_v17, %v5989_v54  ;;  %v8668_v17 = vstv %s5754_s4  ;;  %v8673_v16 = vstv %s5766_s16  ;;  %8681 = vst [vmem:[#allocation178_spill] sm:$0xff] %v6110_v15  ;;  %v8695_v15 = vstv %s5910_s26  ;;  %s6187_s4 = sld [smem:[#allocation7 + $0x86]] }
 0x162   : > { %v6026_v39 = vadd.f32 %v639_v3, %v5845_v37  ;;  %v8667_v37 = vmov %v8666_v41  ;;  %v6049_v28 = vmul.f32 %v8668_v17, %v5982_v7  ;;  %v8669_v41 = vmov %v8668_v17  ;;  %s6203_s16 = sld [smem:[#allocation7 + $0x43]] }
 0x163   : > { %v6038_v29 = vadd.f32 %v640_v6, %v5848_v57  ;;  %v658_v3 = vmul.f32 %v8667_v37, %v5989_v54  ;;  %v6059_v58 = vmul.f32 %v8669_v41, %v5989_v54  ;;  %v8670_v57 = vstv %s5760_s19  ;;  %s6197_s19 = sld [smem:[#allocation7 + $0x1f]] }
 0x164   : > { %v6064_v12 = vmul.f32 %v8670_v57, %v5982_v7  ;;  %v8671_v6 = vmov %v8670_v57  ;;  %v6074_v17 = vadd.f32 %v652_v22, %v5868_v5  ;;  %v6079_v9 = vmul.f32 %v8673_v16, %v5982_v7  ;;  %s6267_s26 = sld [smem:[#allocation8 + $0x1]] }
 0x165   : > { %v6069_v24 = vmul.f32 %v8671_v6, %v5989_v54  ;;  %v8675_v37 = vmov %v8673_v16  ;;  %v6087_v57 = vmul.f32 %v1050_v53, %v5982_v7  ;;  %v6092_v6 = vadd.f32 %v657_v13, %v5873_v33 }
 0x166   : > { %8674 = vst [vmem:[#allocation172_spill] sm:$0xff] %v6079_v9  ;;  %v6084_v41 = vmul.f32 %v8675_v37, %v5989_v54  ;;  %v6098_v5 = vmul.f32 %v1438_v42, %v5982_v7  ;;  %v6101_v22 = vmul.f32 %v1438_v42, %v5989_v54  ;;  %v6106_v16 = vadd.f32 %v658_v3, %v5876_v4 }
 0x167   : > { %8672 = vst [vmem:[#allocation171_spill] sm:$0xff] %v6069_v24  ;;  %v6113_v33 = vmul.f32 %v1450_v23, %v5989_v54  ;;  %v6121_v4 = vmul.f32 %v1462_v32, %v5982_v7  ;;  %v6129_v13 = vmul.f32 %v1462_v32, %v5989_v54  ;;  %v6137_v23 = vmul.f32 %v1474_v36, %v5982_v7  ;;  %v445_v24 = vpop.permute.xlu0 %444 }
 0x168   : > { %8676 = vst [vmem:[#allocation173_spill] sm:$0xff] %v6084_v41  ;;  %v6144_v42 = vmul.f32 %v1474_v36, %v5989_v54  ;;  %v8687_v53 = vstv %s5886_s29  ;;  %v8691_v32 = vstv %s5896_s30  ;;  %v878_v41 = vstv %s5997_s24  ;;  %s6249_s29 = sld [smem:[#allocation7 + $0x8f]] }
 0x169   : > { %8677 = vst [vmem:[#allocation174_spill] sm:$0xff] %v6087_v57  ;;  %v6149_v3 = vmul.f32 %v8687_v53, %v5982_v7  ;;  %v6162_v37 = vmul.f32 %v8691_v32, %v5982_v7  ;;  %v8693_v36 = vmov %v8691_v32  ;;  %v8699_v32 = vstv %s5924_s6  ;;  %s6257_s30 = sld [smem:[#allocation8]] }
 0x16a   : > { %8679 = vst [vmem:[#allocation176_spill] sm:$0xff] %v6098_v5  ;;  %v8689_v5 = vmov %v8687_v53  ;;  %v6185_v11 = vmul.f32 %v8699_v32, %v5982_v7  ;;  %v888_v53 = vstv %s6007_s1  ;;  %s6273_s6 = sld [smem:[#allocation8 + $0x2]]  ;;  %s9096_s1 = smov 1  }
 0x16b   : > { %8680 = vst [vmem:[#allocation177_spill] sm:$0xff] %v6101_v22  ;;  %v6157_v60 = vmul.f32 %v8689_v5, %v5989_v54  ;;  %v6175_v22 = vmul.f32 %v8695_v15, %v5982_v7  ;;  %v8697_v5 = vmov %v8695_v15  ;;  %v908_v7 = vstv %s6023_s17  ;;  %s6281_s24 = sld [smem:[#allocation8 + $0x3]]  ;;  %s9098_s17 = smov 111  }
 0x16c   : > { %8682 = vst [vmem:[#allocation179_spill] sm:$0xff] %v6113_v33  ;;  %v6167_v33 = vmul.f32 %v8693_v36, %v5989_v54  ;;  %v8701_v36 = vmov %v8699_v32  ;;  %v6209_v15 = vmul.f32 %v878_v41, %v4516_v0  ;;  %v6226_v32 = vmul.f32 %v908_v7, %v4516_v0 }
 0x16d   : > { %8683 = vst [vmem:[#allocation180_spill] sm:$0xff] %v6121_v4  ;;  %v6180_v4 = vmul.f32 %v8697_v5, %v5989_v54  ;;  %v6192_v57 = vmul.f32 %v8701_v36, %v5989_v54  ;;  %v1322_v36 = vstv %s6123_s9  ;;  %v1332_v41 = vstv %s6131_s12  ;;  %s6893_s9 = sld [smem:[#allocation10 + $0x31]] }
 0x16e   : > { %8684 = vst [vmem:[#allocation181_spill] sm:$0xff] %v6129_v13  ;;  %v898_v13 = vstv %s6015_s11  ;;  %s9097_s11 = smov 113   ;;  %s6895_s12 = sld [smem:[#allocation10 + $0x55]] }
 0x16f   : > { %8685 = vst [vmem:[#allocation182_spill] sm:$0xff] %v6137_v23  ;;  %v6219_v54 = vmul.f32 %v898_v13, %v4516_v0  ;;  %v1726_v13 = vstv %s6197_s19  ;;  %s6905_s19 = sld [smem:[#allocation10 + $0x82]] }
 0x170   : > { %8686 = vst [vmem:[#allocation183_spill] sm:$0xff] %v6144_v42 }
 0x171   : > { %8688 = vst [vmem:[#allocation184_spill] sm:$0xff] %v6149_v3  ;;  %v6216_v3 = vmul.f32 %v888_v53, %v4516_v0  ;;  %v1302_v53 = vstv %s6103_s22  ;;  %s6889_s22 = sld [smem:[#allocation10 + $0x70]] }
 0x172   : > { %8690 = vst [vmem:[#allocation185_spill] sm:$0xff] %v6157_v60  ;;  %v6247_v9 = vmul.f32 %v1302_v53, %v4516_v0  ;;  %v6264_v53 = vmul.f32 %v1332_v41, %v4516_v0  ;;  %v1756_v60 = vstv %s6221_s27  ;;  %v8713_v41 = vstv %s5942_s28  ;;  %s9092_s28 = smov 16   ;;  %s6911_s27 = sld [smem:[#allocation10 + $0x48]] }
 0x173   : > { %8692 = vst [vmem:[#allocation186_spill] sm:$0xff] %v6162_v37  ;;  %v1736_v37 = vstv %s6203_s16  ;;  %v6295_v23 = vmul.f32 %v1756_v60, %v4516_v0  ;;  %v443_v60 = vpop.permute.xlu2 %442  ;;  %s6907_s16 = sld [smem:[#allocation10]] }
 0x174   : > { %8694 = vst [vmem:[#allocation187_spill] sm:$0xff] %v6167_v33  ;;  %v447_v5 = vsel %vm8358_vm11, %v443_v60, %v445_v24 }
 0x175   : > { %8696 = vst [vmem:[#allocation188_spill] sm:$0xff] %v6175_v22  ;;  %v1312_v22 = vstv %s6115_s8  ;;  %s6891_s8 = sld [smem:[#allocation10 + $0xd]] }
 0x176   : > { %8698 = vst [vmem:[#allocation189_spill] sm:$0xff] %v6180_v4  ;;  %v6255_v7 = vmul.f32 %v1312_v22, %v4516_v0  ;;  %v6261_v4 = vmul.f32 %v1322_v36, %v4516_v0  ;;  %v6278_v36 = vmul.f32 %v1726_v13, %v4516_v0  ;;  %v8710_v13 = vmov 0 }
 0x177   : > { %8700 = vst [vmem:[#allocation190_spill] sm:$0xff] %v6185_v11  ;;  %v6286_v11 = vmul.f32 %v1736_v37, %v4516_v0  ;;  %v8711_v13 = vsel %vm6313_vm15, 4294967295, %v8710_v13  ;;  %v6331_v22 = vsel %vm4654_vm4, %v447_v5, 0.0 }
 0x178   : > { %8702 = vst [vmem:[#allocation191_spill] sm:$0xff] %v6192_v57  ;;  %v1746_v57 = vstv %s6211_s23  ;;  %v663_v37 = vmul.f32 %v8713_v41, %v6331_v22  ;;  %v675_v5 = vmul.f32 %v8717_v20, %v6331_v22  ;;  %s6909_s23 = sld [smem:[#allocation10 + $0x24]] }
 0x179   : > { %8703 = vst [vmem:[#allocation192_spill] sm:$0xff] %v6247_v9  ;;  %v6289_v42 = vmul.f32 %v1746_v57, %v4516_v0  ;;  %v448_v57 = vsel %vm8358_vm11, %v445_v24, %v443_v60  ;;  %v8714_v0 = vmov %v8713_v41  ;;  %v8718_v9 = vmov %v8717_v20 }
 0x17a   : > { %8704 = vst [vmem:[#allocation193_spill] sm:$0xff] %v6261_v4  ;;  %v6335_v33 = vsel %vm6313_vm15, %v448_v57, 0.0  ;;  %v8719_v57 = vstv %s5968_s0  ;;  %vm1991_vm11 = vcmask 1040384   ;;  %s9095_s0 = smov 127  }
 0x17b   : > { %8705 = vst [vmem:[#allocation194_spill] sm:$0xff] %v6264_v53  ;;  %v664_v50 = vmul.f32 %v8714_v0, %v6335_v33  ;;  %v681_v44 = vmul.f32 %v8719_v57, %v6331_v22  ;;  %v8720_v41 = vmov %v8719_v57  ;;  %v665_v0 = vadd.f32 %v663_v37, %v6026_v39 }
 0x17c   : > { %8706 = vst [vmem:[#allocation195_spill] sm:$0xff] %v6278_v36  ;;  %v677_v36 = vadd.f32 %v675_v5, %v6041_v10  ;;  %v8721_v57 = vrot.slane %v4747_v51, 1  ;;  %v8725_v10 = vrot.slane %v4766_v63, 1  ;;  %v8728_v51 = vrot.slane %v4794_v26, 1 }
 0x17d   : > { %8707 = vst [vmem:[#allocation196_spill] sm:$0xff] %v6286_v11  ;;  %v666_v11 = vadd.f32 %v664_v50, %v6038_v29  ;;  %v8723_v50 = vrot.slane %v4756_v59, 1  ;;  %v8730_v59 = vrot.slane %v4942_v43, 1  ;;  %v8732_v63 = vrot.slane %v4951_v45, 1 }
 0x17e   : > { %8708 = vst [vmem:[#allocation197_spill] sm:$0xff] %v6289_v42  ;;  %v682_v42 = vmul.f32 %v8720_v41, %v6335_v33  ;;  %v695_v4 = vadd.f32 %v8721_v57, %v665_v0  ;;  %v8722_v41 = vrot.slane %v4752_v52, 1  ;;  %v8729_v52 = vrot.slane %v4937_v61, 1 }
 0x17f   : > { %8709 = vst [vmem:[#allocation198_spill] sm:$0xff] %v6295_v23  ;;  %v8715_v23 = vstv %s5956_s7  ;;  %v8735_v26 = vrot.slane %v4967_v48, 1  ;;  %v8736_v61 = vrot.slane %v4972_v62, 1  ;;  %v8737_v43 = vrot.slane %v5142_v2, 1  ;;  %v8744_v48 = vld [vmem:[#allocation87_spill] sm:$0xff]  ;;  %v8746_v62 = vld [vmem:[#allocation88_spill] sm:$0xff] }
 0x180   : > { %8712 = vst [vmem:[#allocation199_spill] sm:$0xff] %v8711_v13  ;;  %v669_v18 = vmul.f32 %v8715_v23, %v6331_v22  ;;  %v8716_v24 = vmov %v8715_v23  ;;  %v676_v13 = vmul.f32 %v8718_v9, %v6335_v33  ;;  %v683_v9 = vadd.f32 %v681_v44, %v6092_v6  ;;  %v8748_v2 = vld [vmem:[#allocation89_spill] sm:$0xff]  ;;  %s9093_s7 = smov 17  }
 0x181   : > { %v670_v60 = vmul.f32 %v8716_v24, %v6335_v33  ;;  %v684_v53 = vadd.f32 %v682_v42, %v6106_v16  ;;  %v696_v39 = vadd.f32 %v8722_v41, %v666_v11  ;;  %v8727_v6 = vrot.slane %v4775_v27, 1 }
 0x182   : > { %v671_v23 = vadd.f32 %v669_v18, %v6029_v55  ;;  %v678_v20 = vadd.f32 %v676_v13, %v6074_v17  ;;  %v8724_v18 = vrot.slane %v4762_v21, 1  ;;  %v8726_v17 = vrot.slane %v4771_v1, 1 }
 0x183   : > { %v672_v24 = vadd.f32 %v670_v60, %v6054_v34  ;;  %v719_v34 = vadd.f32 %v8725_v10, %v677_v36  ;;  %v731_v16 = vadd.f32 %v8727_v6, %v683_v9  ;;  %v732_v42 = vadd.f32 %v8728_v51, %v684_v53  ;;  %v8754_v51 = vld [vmem:[#allocation107_spill] sm:$0xff] }
 0x184   : > { %v707_v29 = vadd.f32 %v8723_v50, %v671_v23  ;;  %v720_v44 = vadd.f32 %v8726_v17, %v678_v20  ;;  %v743_v11 = vadd.f32 %v8729_v52, %v695_v4  ;;  %v744_v13 = vadd.f32 %v8730_v59, %v696_v39 }
 0x185   : > { %v708_v55 = vadd.f32 %v8724_v18, %v672_v24  ;;  %v8731_v21 = vrot.slane %v4946_v56, 1  ;;  %v8733_v1 = vrot.slane %v4955_v46, 1  ;;  %v8734_v27 = vrot.slane %v4963_v47, 1  ;;  %v8740_v46 = vld [vmem:[#allocation85_spill] sm:$0xff]  ;;  %v8742_v47 = vld [vmem:[#allocation86_spill] sm:$0xff] }
 0x186   : > { %v779_v53 = vadd.f32 %v8735_v26, %v731_v16  ;;  %v780_v4 = vadd.f32 %v8736_v61, %v732_v42  ;;  %v791_v0 = vadd.f32 %v8737_v43, %v743_v11  ;;  %v8738_v56 = vrot.slane %v5153_v8, 1  ;;  %v8756_v11 = vld [vmem:[#allocation108_spill] sm:$0xff] }
 0x187   : > { %v755_v37 = vadd.f32 %v8731_v21, %v707_v29  ;;  %v756_v36 = vadd.f32 %v8732_v63, %v708_v55  ;;  %v767_v60 = vadd.f32 %v8733_v1, %v719_v34  ;;  %v768_v5 = vadd.f32 %v8734_v27, %v720_v44  ;;  %v8752_v44 = vld [vmem:[#allocation106_spill] sm:$0xff]  ;;  %v8758_v21 = vld [vmem:[#allocation109_spill] sm:$0xff] }
 0x188   : > { %v792_v23 = vadd.f32 %v8738_v56, %v744_v13  ;;  %v8739_v45 = vrot.slane %v5158_v30, 1  ;;  %v8741_v20 = vrot.slane %v8740_v46, 1  ;;  %v8743_v57 = vrot.slane %v8742_v47, 1 }
 0x189   : > { %v8745_v39 = vrot.slane %v8744_v48, 1  ;;  %v8747_v29 = vrot.slane %v8746_v62, 1  ;;  %v8749_v55 = vrot.slane %v8748_v2, 1  ;;  %v8750_v8 = vrot.slane %v5367_v31, 1  ;;  %v8762_v31 = vld [vmem:[#allocation111_spill] sm:$0xff] }
 0x18a   : > { %v803_v24 = vadd.f32 %v8739_v45, %v755_v37  ;;  %v804_v9 = vadd.f32 %v8741_v20, %v756_v36  ;;  %v815_v41 = vadd.f32 %v8743_v57, %v767_v60  ;;  %v8751_v30 = vrot.slane %v5370_v19, 1  ;;  %v8760_v36 = vld [vmem:[#allocation110_spill] sm:$0xff]  ;;  %v8778_v2 = vld [vmem:[#allocation131_spill] sm:$0xff] }
 0x18b   : > { %v816_v50 = vadd.f32 %v8745_v39, %v768_v5  ;;  %v827_v18 = vadd.f32 %v8747_v29, %v779_v53  ;;  %v828_v10 = vadd.f32 %v8749_v55, %v780_v4  ;;  %v839_v34 = vadd.f32 %v8750_v8, %v791_v0  ;;  %v8774_v39 = vld [vmem:[#allocation129_spill] sm:$0xff] }
 0x18c   : > { %v840_v17 = vadd.f32 %v8751_v30, %v792_v23  ;;  %v8753_v6 = vrot.slane %v8752_v44, 1  ;;  %v8755_v42 = vrot.slane %v8754_v51, 1  ;;  %v8757_v59 = vrot.slane %v8756_v11, 1  ;;  %v8782_v30 = vld [vmem:[#allocation133_spill] sm:$0xff]  ;;  %v8786_v51 = vld [vmem:[#allocation135_spill] sm:$0xff] }
 0x18d   : > { %v8759_v37 = vrot.slane %v8758_v21, 1  ;;  %v8761_v1 = vrot.slane %v8760_v36, 1  ;;  %v8763_v27 = vrot.slane %v8762_v31, 1  ;;  %v8764_v19 = vperm.slane %v6209_v15, 1 }
 0x18e   : > { %v851_v16 = vadd.f32 %v8753_v6, %v803_v24  ;;  %v852_v52 = vadd.f32 %v8755_v42, %v804_v9  ;;  %v863_v13 = vadd.f32 %v8757_v59, %v815_v41  ;;  %v8765_v53 = vperm.slane %v6209_v15, 5  ;;  %v8772_v15 = vld [vmem:[#allocation128_spill] sm:$0xff] }
 0x18f   : > { %v864_v63 = vadd.f32 %v8759_v37, %v816_v50  ;;  %v875_v60 = vadd.f32 %v8761_v1, %v827_v18  ;;  %v876_v5 = vadd.f32 %v8763_v27, %v828_v10  ;;  %v885_v26 = vadd.f32 %v8764_v19, %v839_v34 }
 0x190   : > { %v886_v61 = vadd.f32 %v8765_v53, %v840_v17  ;;  %v8766_v4 = vperm.slane %v6216_v3, 1  ;;  %v8767_v0 = vperm.slane %v6216_v3, 5  ;;  %v8768_v23 = vperm.slane %v6219_v54, 1  ;;  %v8776_v3 = vld [vmem:[#allocation130_spill] sm:$0xff] }
 0x191   : > { %v8769_v24 = vperm.slane %v6219_v54, 5  ;;  %v8770_v20 = vperm.slane %v6226_v32, 1  ;;  %v8771_v47 = vperm.slane %v6226_v32, 5  ;;  %v8773_v41 = vrot.slane %v8772_v15, 1  ;;  %v8780_v54 = vld [vmem:[#allocation132_spill] sm:$0xff]  ;;  %v8784_v32 = vld [vmem:[#allocation134_spill] sm:$0xff] }
 0x192   : > { %v895_v43 = vadd.f32 %v8766_v4, %v851_v16  ;;  %v896_v56 = vadd.f32 %v8767_v0, %v852_v52  ;;  %v905_v45 = vadd.f32 %v8768_v23, %v863_v13  ;;  %v8775_v50 = vrot.slane %v8774_v39, 1  ;;  %v8801_v0 = vld [vmem:[#allocation171_spill] sm:$0xff] }
 0x193   : > { %v906_v46 = vadd.f32 %v8769_v24, %v864_v63  ;;  %v915_v9 = vadd.f32 %v8770_v20, %v875_v60  ;;  %v916_v57 = vadd.f32 %v8771_v47, %v876_v5  ;;  %v927_v48 = vadd.f32 %v8773_v41, %v885_v26  ;;  %v8794_v5 = vld [vmem:[#allocation153_spill] sm:$0xff]  ;;  %v8796_v26 = vld [vmem:[#allocation154_spill] sm:$0xff]  ;;  %v8809_v41 = vld [vmem:[#allocation175_spill] sm:$0xff] }
 0x194   : > { %v928_v62 = vadd.f32 %v8775_v50, %v886_v61  ;;  %v8777_v29 = vrot.slane %v8776_v3, 1  ;;  %v8779_v55 = vrot.slane %v8778_v2, 1  ;;  %v8781_v8 = vrot.slane %v8780_v54, 1  ;;  %v8805_v20 = vld [vmem:[#allocation173_spill] sm:$0xff] }
 0x195   : > { %v8783_v17 = vrot.slane %v8782_v30, 1  ;;  %v8785_v6 = vrot.slane %v8784_v32, 1  ;;  %v8787_v42 = vrot.slane %v8786_v51, 1  ;;  %v8788_v11 = vrot.slane %v5823_v38, 1 }
 0x196   : > { %v939_v18 = vadd.f32 %v8777_v29, %v895_v43  ;;  %v940_v10 = vadd.f32 %v8779_v55, %v896_v56  ;;  %v951_v34 = vadd.f32 %v8781_v8, %v905_v45  ;;  %v8789_v13 = vrot.slane %v5826_v35, 1  ;;  %v8803_v45 = vld [vmem:[#allocation172_spill] sm:$0xff] }
 0x197   : > { %v952_v44 = vadd.f32 %v8783_v17, %v906_v46  ;;  %v963_v16 = vadd.f32 %v8785_v6, %v915_v9  ;;  %v964_v52 = vadd.f32 %v8787_v42, %v916_v57  ;;  %v975_v59 = vadd.f32 %v8788_v11, %v927_v48  ;;  %v8807_v57 = vld [vmem:[#allocation174_spill] sm:$0xff] }
 0x198   : > { %v976_v21 = vadd.f32 %v8789_v13, %v928_v62  ;;  %v8790_v37 = vrot.slane %v5831_v14, 1  ;;  %v8791_v36 = vrot.slane %v5834_v49, 1  ;;  %v8792_v60 = vrot.slane %v5837_v25, 1 }
 0x199   : > { %v8793_v27 = vrot.slane %v5840_v40, 1  ;;  %v8795_v35 = vrot.slane %v8794_v5, 1  ;;  %v8797_v14 = vrot.slane %v8796_v26, 1  ;;  %v8798_v49 = vrot.slane %v6049_v28, 1 }
 0x19a   : > { %v987_v63 = vadd.f32 %v8790_v37, %v939_v18  ;;  %v988_v1 = vadd.f32 %v8791_v36, %v940_v10  ;;  %v999_v31 = vadd.f32 %v8792_v60, %v951_v34  ;;  %v8799_v25 = vrot.slane %v6059_v58, 1 }
 0x19b   : > { %v1000_v38 = vadd.f32 %v8793_v27, %v952_v44  ;;  %v1011_v19 = vadd.f32 %v8795_v35, %v963_v16  ;;  %v1012_v53 = vadd.f32 %v8797_v14, %v964_v52  ;;  %v1023_v61 = vadd.f32 %v8798_v49, %v975_v59  ;;  %v8819_v27 = vld [vmem:[#allocation53_spill] sm:$0xff]  ;;  %v8821_v35 = vld [vmem:[#allocation54_spill] sm:$0xff]  ;;  %v8823_v14 = vld [vmem:[#allocation55_spill] sm:$0xff] }
 0x19c   : > { %v1024_v4 = vadd.f32 %v8799_v25, %v976_v21  ;;  %v8800_v43 = vrot.slane %v6064_v12, 1  ;;  %v8802_v56 = vrot.slane %v8801_v0, 1  ;;  %v8804_v24 = vrot.slane %v8803_v45, 1  ;;  %v8825_v25 = vld [vmem:[#allocation56_spill] sm:$0xff] }
 0x19d   : > { %v8806_v9 = vrot.slane %v8805_v20, 1  ;;  %v8808_v15 = vrot.slane %v8807_v57, 1  ;;  %v8810_v48 = vrot.slane %v8809_v41, 1  ;;  %v8811_v58 = vstv %s6035_s18  ;;  %s9099_s18 = smov 112  }
 0x19e   : > { %v1035_v40 = vadd.f32 %v8800_v43, %v987_v63  ;;  %v1036_v23 = vadd.f32 %v8802_v56, %v988_v1  ;;  %v1047_v46 = vadd.f32 %v8804_v24, %v999_v31  ;;  %v1063_v50 = vmul.f32 %v8811_v58, %v6331_v22  ;;  %v8829_v56 = vld [vmem:[#allocation58_spill] sm:$0xff]  ;;  %v8831_v24 = vld [vmem:[#allocation59_spill] sm:$0xff] }
 0x19f   : > { %v1048_v47 = vadd.f32 %v8806_v9, %v1000_v38  ;;  %v1059_v28 = vadd.f32 %v8808_v15, %v1011_v19  ;;  %v1060_v39 = vadd.f32 %v8810_v48, %v1012_v53  ;;  %v8812_v12 = vmov %v8811_v58  ;;  %v8833_v9 = vld [vmem:[#allocation60_spill] sm:$0xff]  ;;  %v8835_v15 = vld [vmem:[#allocation69_spill] sm:$0xff]  ;;  %v8837_v48 = vld [vmem:[#allocation70_spill] sm:$0xff] }
 0x1a0   : > { %v1064_v62 = vmul.f32 %v8812_v12, %v6335_v33  ;;  %v8813_v3 = vstv %s6051_s21  ;;  %v8815_v55 = vstv %s6071_s10  ;;  %v8817_v34 = vstv %s6089_s15  ;;  %s6883_s21 = sld [smem:[#allocation10 + $0x4]] }
 0x1a1   : > { %v1075_v29 = vmul.f32 %v8813_v3, %v6331_v22  ;;  %v8814_v18 = vmov %v8813_v3  ;;  %v1087_v10 = vmul.f32 %v8815_v55, %v6331_v22  ;;  %v8816_v54 = vmov %v8815_v55  ;;  %v8841_v3 = vld [vmem:[#allocation72_spill] sm:$0xff]  ;;  %s6885_s10 = sld [smem:[#allocation10 + $0x28]] }
 0x1a2   : > { %v1076_v2 = vmul.f32 %v8814_v18, %v6335_v33  ;;  %v1088_v8 = vmul.f32 %v8816_v54, %v6335_v33  ;;  %v1099_v30 = vmul.f32 %v8817_v34, %v6331_v22  ;;  %v8818_v17 = vmov %v8817_v34  ;;  %v8845_v54 = vld [vmem:[#allocation74_spill] sm:$0xff]  ;;  %s6887_s15 = sld [smem:[#allocation10 + $0x4c]] }
 0x1a3   : > { %v1100_v44 = vmul.f32 %v8818_v17, %v6335_v33  ;;  %v1067_v32 = vrot.slane %v1063_v50, 1  ;;  %v1068_v6 = vrot.slane %v1064_v62, 1  ;;  %v1079_v16 = vrot.slane %v1075_v29, 1  ;;  %v8839_v50 = vld [vmem:[#allocation71_spill] sm:$0xff] }
 0x1a4   : > { %v1080_v51 = vrot.slane %v1076_v2, 1  ;;  %v1091_v42 = vrot.slane %v1087_v10, 1  ;;  %v1092_v52 = vrot.slane %v1088_v8, 1  ;;  %v1103_v11 = vrot.slane %v1099_v30, 1  ;;  %v8843_v2 = vld [vmem:[#allocation73_spill] sm:$0xff]  ;;  %v8847_v30 = vld [vmem:[#allocation75_spill] sm:$0xff] }
 0x1a5   : > { %v1104_v59 = vrot.slane %v1100_v44, 1  ;;  %v1071_v13 = vadd.f32 %v1067_v32, %v1023_v61  ;;  %v1072_v21 = vadd.f32 %v1068_v6, %v1024_v4  ;;  %v1083_v37 = vadd.f32 %v1079_v16, %v1035_v40  ;;  %v8827_v61 = vld [vmem:[#allocation57_spill] sm:$0xff]  ;;  %v8849_v32 = vld [vmem:[#allocation76_spill] sm:$0xff] }
 0x1a6   : > { %v1084_v63 = vadd.f32 %v1080_v51, %v1036_v23  ;;  %v1095_v36 = vadd.f32 %v1091_v42, %v1047_v46  ;;  %v1096_v1 = vadd.f32 %v1092_v52, %v1048_v47  ;;  %v1107_v60 = vadd.f32 %v1103_v11, %v1059_v28  ;;  %v8851_v51 = vld [vmem:[#allocation90_spill] sm:$0xff]  ;;  %v8853_v11 = vld [vmem:[#allocation91_spill] sm:$0xff] }
 0x1a7   : > { %v1108_v31 = vadd.f32 %v1104_v59, %v1060_v39  ;;  %v8820_v38 = vrot.slane %v8819_v27, 2  ;;  %v8822_v19 = vrot.slane %v8821_v35, 2  ;;  %v8824_v53 = vrot.slane %v8823_v14, 2 }
 0x1a8   : > { %v8826_v43 = vrot.slane %v8825_v25, 2  ;;  %v8828_v4 = vrot.slane %v8827_v61, 2  ;;  %v8830_v23 = vrot.slane %v8829_v56, 2  ;;  %v8832_v46 = vrot.slane %v8831_v24, 2 }
 0x1a9   : > { %v1119_v5 = vadd.f32 %v8820_v38, %v1071_v13  ;;  %v1120_v26 = vadd.f32 %v8822_v19, %v1072_v21  ;;  %v1131_v49 = vadd.f32 %v8824_v53, %v1083_v37  ;;  %v8834_v47 = vrot.slane %v8833_v9, 2  ;;  %v8855_v21 = vld [vmem:[#allocation92_spill] sm:$0xff] }
 0x1aa   : > { %v1132_v0 = vadd.f32 %v8826_v43, %v1084_v63  ;;  %v1143_v40 = vadd.f32 %v8828_v4, %v1095_v36  ;;  %v1144_v45 = vadd.f32 %v8830_v23, %v1096_v1  ;;  %v1155_v20 = vadd.f32 %v8832_v46, %v1107_v60  ;;  %v8857_v36 = vld [vmem:[#allocation93_spill] sm:$0xff] }
 0x1ab   : > { %v1156_v57 = vadd.f32 %v8834_v47, %v1108_v31  ;;  %v8836_v28 = vrot.slane %v8835_v15, 2  ;;  %v8838_v39 = vrot.slane %v8837_v48, 2  ;;  %v8840_v12 = vrot.slane %v8839_v50, 2  ;;  %v8859_v31 = vld [vmem:[#allocation94_spill] sm:$0xff] }
 0x1ac   : > { %v8842_v29 = vrot.slane %v8841_v3, 2  ;;  %v8844_v55 = vrot.slane %v8843_v2, 2  ;;  %v8846_v8 = vrot.slane %v8845_v54, 2  ;;  %v8848_v17 = vrot.slane %v8847_v30, 2 }
 0x1ad   : > { %v1167_v41 = vadd.f32 %v8836_v28, %v1119_v5  ;;  %v1168_v58 = vadd.f32 %v8838_v39, %v1120_v26  ;;  %v1179_v62 = vadd.f32 %v8840_v12, %v1131_v49  ;;  %v8850_v6 = vrot.slane %v8849_v32, 2  ;;  %v8861_v5 = vld [vmem:[#allocation95_spill] sm:$0xff]  ;;  %v8863_v26 = vld [vmem:[#allocation96_spill] sm:$0xff]  ;;  %v8865_v49 = vld [vmem:[#allocation97_spill] sm:$0xff] }
 0x1ae   : > { %v1180_v18 = vadd.f32 %v8842_v29, %v1132_v0  ;;  %v1191_v10 = vadd.f32 %v8844_v55, %v1143_v40  ;;  %v1192_v34 = vadd.f32 %v8846_v8, %v1144_v45  ;;  %v1203_v44 = vadd.f32 %v8848_v17, %v1155_v20  ;;  %v8867_v0 = vld [vmem:[#allocation112_spill] sm:$0xff]  ;;  %v8869_v40 = vld [vmem:[#allocation113_spill] sm:$0xff]  ;;  %v8871_v45 = vld [vmem:[#allocation114_spill] sm:$0xff] }
 0x1af   : > { %v1204_v16 = vadd.f32 %v8850_v6, %v1156_v57  ;;  %v8852_v42 = vrot.slane %v8851_v51, 2  ;;  %v8854_v59 = vrot.slane %v8853_v11, 2  ;;  %v8856_v37 = vrot.slane %v8855_v21, 2  ;;  %v8873_v20 = vld [vmem:[#allocation115_spill] sm:$0xff]  ;;  %v8875_v57 = vld [vmem:[#allocation116_spill] sm:$0xff] }
 0x1b0   : > { %v8858_v1 = vrot.slane %v8857_v36, 2  ;;  %v8860_v27 = vrot.slane %v8859_v31, 2  ;;  %v8862_v35 = vrot.slane %v8861_v5, 2  ;;  %v8864_v14 = vrot.slane %v8863_v26, 2  ;;  %v8894_v21 = vld [vmem:[#allocation136_spill] sm:$0xff]  ;;  %v8896_v36 = vld [vmem:[#allocation137_spill] sm:$0xff] }
 0x1b1   : > { %v1215_v52 = vadd.f32 %v8852_v42, %v1167_v41  ;;  %v1216_v13 = vadd.f32 %v8854_v59, %v1168_v58  ;;  %v1227_v63 = vadd.f32 %v8856_v37, %v1179_v62  ;;  %v8866_v25 = vrot.slane %v8865_v49, 2  ;;  %v8877_v41 = vld [vmem:[#allocation117_spill] sm:$0xff]  ;;  %v8879_v58 = vld [vmem:[#allocation118_spill] sm:$0xff]  ;;  %v8881_v62 = vld [vmem:[#allocation119_spill] sm:$0xff] }
 0x1b2   : > { %v1228_v60 = vadd.f32 %v8858_v1, %v1180_v18  ;;  %v1239_v38 = vadd.f32 %v8860_v27, %v1191_v10  ;;  %v1240_v19 = vadd.f32 %v8862_v35, %v1192_v34  ;;  %v1251_v53 = vadd.f32 %v8864_v14, %v1203_v44  ;;  %v8883_v18 = vld [vmem:[#allocation192_spill] sm:$0xff]  ;;  %v8888_v44 = vld [vmem:[#allocation193_spill] sm:$0xff]  ;;  %v8891_v42 = vld [vmem:[#allocation194_spill] sm:$0xff] }
 0x1b3   : > { %v1252_v43 = vadd.f32 %v8866_v25, %v1204_v16  ;;  %v8868_v61 = vrot.slane %v8867_v0, 2  ;;  %v8870_v56 = vrot.slane %v8869_v40, 2  ;;  %v8872_v24 = vrot.slane %v8871_v45, 2 }
 0x1b4   : > { %v8874_v9 = vrot.slane %v8873_v20, 2  ;;  %v8876_v15 = vrot.slane %v8875_v57, 2  ;;  %v8878_v48 = vrot.slane %v8877_v41, 2  ;;  %v8880_v50 = vrot.slane %v8879_v58, 2 }
 0x1b5   : > { %v1263_v4 = vadd.f32 %v8868_v61, %v1215_v52  ;;  %v1264_v23 = vadd.f32 %v8870_v56, %v1216_v13  ;;  %v1275_v46 = vadd.f32 %v8872_v24, %v1227_v63  ;;  %v8882_v3 = vrot.slane %v8881_v62, 2 }
 0x1b6   : > { %v1276_v47 = vadd.f32 %v8874_v9, %v1228_v60  ;;  %v1287_v28 = vadd.f32 %v8876_v15, %v1239_v38  ;;  %v1288_v39 = vadd.f32 %v8878_v48, %v1240_v19  ;;  %v1299_v12 = vadd.f32 %v8880_v50, %v1251_v53  ;;  %v8900_v38 = vld [vmem:[#allocation139_spill] sm:$0xff]  ;;  %v8902_v19 = vld [vmem:[#allocation140_spill] sm:$0xff]  ;;  %v8904_v53 = vld [vmem:[#allocation141_spill] sm:$0xff] }
 0x1b7   : > { %v1300_v29 = vadd.f32 %v8882_v3, %v1252_v43  ;;  %v8884_v2 = vperm.slane %v8883_v18, 2  ;;  %v8885_v10 = vperm.slane %v8883_v18, 6  ;;  %v8886_v8 = vperm.slane %v6255_v7, 2  ;;  %v8906_v43 = vld [vmem:[#allocation142_spill] sm:$0xff] }
 0x1b8   : > { %v8887_v30 = vperm.slane %v6255_v7, 6  ;;  %v8889_v32 = vperm.slane %v8888_v44, 2  ;;  %v8890_v16 = vperm.slane %v8888_v44, 6  ;;  %v8892_v52 = vperm.slane %v8891_v42, 2  ;;  %v8898_v7 = vld [vmem:[#allocation138_spill] sm:$0xff] }
 0x1b9   : > { %v1309_v55 = vadd.f32 %v8884_v2, %v1263_v4  ;;  %v1310_v54 = vadd.f32 %v8885_v10, %v1264_v23  ;;  %v1319_v34 = vadd.f32 %v8886_v8, %v1275_v46  ;;  %v8893_v59 = vperm.slane %v8891_v42, 6  ;;  %v8908_v4 = vld [vmem:[#allocation143_spill] sm:$0xff]  ;;  %v8912_v46 = vld [vmem:[#allocation156_spill] sm:$0xff] }
 0x1ba   : > { %v1320_v17 = vadd.f32 %v8887_v30, %v1276_v47  ;;  %v1329_v6 = vadd.f32 %v8889_v32, %v1287_v28  ;;  %v1330_v51 = vadd.f32 %v8890_v16, %v1288_v39  ;;  %v1339_v11 = vadd.f32 %v8892_v52, %v1299_v12  ;;  %v8910_v23 = vld [vmem:[#allocation155_spill] sm:$0xff]  ;;  %v8914_v47 = vld [vmem:[#allocation157_spill] sm:$0xff]  ;;  %v8916_v28 = vld [vmem:[#allocation158_spill] sm:$0xff] }
 0x1bb   : > { %v1340_v13 = vadd.f32 %v8893_v59, %v1300_v29  ;;  %v8895_v37 = vrot.slane %v8894_v21, 2  ;;  %v8897_v1 = vrot.slane %v8896_v36, 2  ;;  %v8899_v31 = vrot.slane %v8898_v7, 2  ;;  %v8918_v39 = vld [vmem:[#allocation159_spill] sm:$0xff]  ;;  %v8920_v12 = vld [vmem:[#allocation160_spill] sm:$0xff]  ;;  %v8922_v29 = vld [vmem:[#allocation161_spill] sm:$0xff] }
 0x1bc   : > { %v8901_v5 = vrot.slane %v8900_v38, 2  ;;  %v8903_v26 = vrot.slane %v8902_v19, 2  ;;  %v8905_v49 = vrot.slane %v8904_v53, 2  ;;  %v8907_v0 = vrot.slane %v8906_v43, 2  ;;  %v8926_v8 = vld [vmem:[#allocation176_spill] sm:$0xff]  ;;  %v8932_v42 = vld [vmem:[#allocation179_spill] sm:$0xff] }
 0x1bd   : > { %v1351_v63 = vadd.f32 %v8895_v37, %v1309_v55  ;;  %v1352_v60 = vadd.f32 %v8897_v1, %v1310_v54  ;;  %v1363_v27 = vadd.f32 %v8899_v31, %v1319_v34  ;;  %v8909_v40 = vrot.slane %v8908_v4, 2  ;;  %v8924_v55 = vld [vmem:[#allocation162_spill] sm:$0xff]  ;;  %v8934_v59 = vld [vmem:[#allocation180_spill] sm:$0xff]  ;;  %v8936_v37 = vld [vmem:[#allocation181_spill] sm:$0xff] }
 0x1be   : > { %v1364_v35 = vadd.f32 %v8901_v5, %v1320_v17  ;;  %v1375_v14 = vadd.f32 %v8903_v26, %v1329_v6  ;;  %v1376_v25 = vadd.f32 %v8905_v49, %v1330_v51  ;;  %v1387_v61 = vadd.f32 %v8907_v0, %v1339_v11  ;;  %v8928_v17 = vld [vmem:[#allocation177_spill] sm:$0xff]  ;;  %v8930_v6 = vld [vmem:[#allocation178_spill] sm:$0xff]  ;;  %v8940_v31 = vld [vmem:[#allocation183_spill] sm:$0xff] }
 0x1bf   : > { %v1388_v56 = vadd.f32 %v8909_v40, %v1340_v13  ;;  %v8911_v45 = vrot.slane %v8910_v23, 2  ;;  %v8913_v20 = vrot.slane %v8912_v46, 2  ;;  %v8915_v57 = vrot.slane %v8914_v47, 2  ;;  %v8938_v1 = vld [vmem:[#allocation182_spill] sm:$0xff] }
 0x1c0   : > { %v8917_v41 = vrot.slane %v8916_v28, 2  ;;  %v8919_v58 = vrot.slane %v8918_v39, 2  ;;  %v8921_v62 = vrot.slane %v8920_v12, 2  ;;  %v8923_v18 = vrot.slane %v8922_v29, 2  ;;  %v8950_v29 = vld [vmem:[#allocation61_spill] sm:$0xff] }
 0x1c1   : > { %v1399_v24 = vadd.f32 %v8911_v45, %v1351_v63  ;;  %v1400_v9 = vadd.f32 %v8913_v20, %v1352_v60  ;;  %v1411_v15 = vadd.f32 %v8915_v57, %v1363_v27  ;;  %v8925_v10 = vrot.slane %v8924_v55, 2  ;;  %v8952_v55 = vld [vmem:[#allocation62_spill] sm:$0xff] }
 0x1c2   : > { %v1412_v48 = vadd.f32 %v8917_v41, %v1364_v35  ;;  %v1423_v50 = vadd.f32 %v8919_v58, %v1375_v14  ;;  %v1424_v3 = vadd.f32 %v8921_v62, %v1376_v25  ;;  %v1435_v2 = vadd.f32 %v8923_v18, %v1387_v61 }
 0x1c3   : > { %v1436_v54 = vadd.f32 %v8925_v10, %v1388_v56  ;;  %v8927_v34 = vrot.slane %v8926_v8, 2  ;;  %v8929_v44 = vrot.slane %v8928_v17, 2  ;;  %v8931_v16 = vrot.slane %v8930_v6, 2  ;;  %v8954_v8 = vld [vmem:[#allocation63_spill] sm:$0xff] }
 0x1c4   : > { %v8933_v52 = vrot.slane %v8932_v42, 2  ;;  %v8935_v13 = vrot.slane %v8934_v59, 2  ;;  %v8937_v63 = vrot.slane %v8936_v37, 2  ;;  %v8939_v60 = vrot.slane %v8938_v1, 2  ;;  %v8960_v42 = vld [vmem:[#allocation66_spill] sm:$0xff]  ;;  %v8962_v59 = vld [vmem:[#allocation67_spill] sm:$0xff] }
 0x1c5   : > { %v1447_v30 = vadd.f32 %v8927_v34, %v1399_v24  ;;  %v1448_v32 = vadd.f32 %v8929_v44, %v1400_v9  ;;  %v1459_v51 = vadd.f32 %v8931_v16, %v1411_v15  ;;  %v8941_v27 = vrot.slane %v8940_v31, 2  ;;  %v8956_v44 = vld [vmem:[#allocation64_spill] sm:$0xff]  ;;  %v8966_v1 = vld [vmem:[#allocation77_spill] sm:$0xff]  ;;  %v8968_v31 = vld [vmem:[#allocation78_spill] sm:$0xff] }
 0x1c6   : > { %v1460_v11 = vadd.f32 %v8933_v52, %v1412_v48  ;;  %v1471_v21 = vadd.f32 %v8935_v13, %v1423_v50  ;;  %v1472_v36 = vadd.f32 %v8937_v63, %v1424_v3  ;;  %v1483_v7 = vadd.f32 %v8939_v60, %v1435_v2  ;;  %v8964_v37 = vld [vmem:[#allocation68_spill] sm:$0xff] }
 0x1c7   : > { %v1484_v38 = vadd.f32 %v8941_v27, %v1436_v54  ;;  %v8942_v5 = vstv %s6139_s13  ;;  %v8944_v14 = vstv %s6151_s2  ;;  %v8946_v43 = vstv %s6169_s3  ;;  %s6897_s13 = sld [smem:[#allocation10 + $0x79]] }
 0x1c8   : > { %v1487_v35 = vmul.f32 %v8942_v5, %v6331_v22  ;;  %v8943_v19 = vmov %v8942_v5  ;;  %v1499_v53 = vmul.f32 %v8944_v14, %v6331_v22  ;;  %v8945_v49 = vmov %v8944_v14  ;;  %v8970_v5 = vld [vmem:[#allocation79_spill] sm:$0xff]  ;;  %s6899_s2 = sld [smem:[#allocation10 + $0x16]] }
 0x1c9   : > { %v1488_v26 = vmul.f32 %v8943_v19, %v6335_v33  ;;  %v1500_v25 = vmul.f32 %v8945_v49, %v6335_v33  ;;  %v1511_v0 = vmul.f32 %v8946_v43, %v6331_v22  ;;  %v8947_v61 = vmov %v8946_v43  ;;  %v8974_v49 = vld [vmem:[#allocation81_spill] sm:$0xff]  ;;  %s6901_s3 = sld [smem:[#allocation10 + $0x3a]] }
 0x1ca   : > { %v1512_v4 = vmul.f32 %v8947_v61, %v6335_v33  ;;  %v8948_v40 = vstv %s6187_s4  ;;  %v1491_v24 = vrot.slane %v1487_v35, 2  ;;  %v1503_v20 = vrot.slane %v1499_v53, 2  ;;  %s6903_s4 = sld [smem:[#allocation10 + $0x5e]] }
 0x1cb   : > { %v1523_v56 = vmul.f32 %v8948_v40, %v6331_v22  ;;  %v8949_v23 = vmov %v8948_v40  ;;  %v1492_v46 = vrot.slane %v1488_v26, 2  ;;  %v1504_v9 = vrot.slane %v1500_v25, 2  ;;  %v8972_v26 = vld [vmem:[#allocation80_spill] sm:$0xff]  ;;  %v8978_v40 = vld [vmem:[#allocation83_spill] sm:$0xff] }
 0x1cc   : > { %v1524_v45 = vmul.f32 %v8949_v23, %v6335_v33  ;;  %v1515_v47 = vrot.slane %v1511_v0, 2  ;;  %v1516_v57 = vrot.slane %v1512_v4, 2  ;;  %v1495_v41 = vadd.f32 %v1491_v24, %v1447_v30  ;;  %v8958_v30 = vld [vmem:[#allocation65_spill] sm:$0xff]  ;;  %v8976_v0 = vld [vmem:[#allocation82_spill] sm:$0xff] }
 0x1cd   : > { %v1527_v15 = vrot.slane %v1523_v56, 2  ;;  %v1496_v48 = vadd.f32 %v1492_v46, %v1448_v32  ;;  %v1507_v39 = vadd.f32 %v1503_v20, %v1459_v51  ;;  %v1508_v58 = vadd.f32 %v1504_v9, %v1460_v11  ;;  %v8982_v20 = vld [vmem:[#allocation98_spill] sm:$0xff] }
 0x1ce   : > { %v1528_v28 = vrot.slane %v1524_v45, 2  ;;  %v1519_v50 = vadd.f32 %v1515_v47, %v1471_v21  ;;  %v1520_v12 = vadd.f32 %v1516_v57, %v1472_v36  ;;  %v8951_v18 = vrot.slane %v8950_v29, 3  ;;  %v8980_v45 = vld [vmem:[#allocation84_spill] sm:$0xff]  ;;  %v8984_v57 = vld [vmem:[#allocation99_spill] sm:$0xff] }
 0x1cf   : > { %v1531_v62 = vadd.f32 %v1527_v15, %v1483_v7  ;;  %v8953_v10 = vrot.slane %v8952_v55, 3  ;;  %v8955_v34 = vrot.slane %v8954_v8, 3  ;;  %v8957_v6 = vrot.slane %v8956_v44, 3 }
 0x1d0   : > { %v1532_v3 = vadd.f32 %v1528_v28, %v1484_v38  ;;  %v1543_v2 = vadd.f32 %v8951_v18, %v1495_v41  ;;  %v8959_v32 = vrot.slane %v8958_v30, 3  ;;  %v8961_v52 = vrot.slane %v8960_v42, 3  ;;  %v8986_v41 = vld [vmem:[#allocation100_spill] sm:$0xff]  ;;  %v8992_v18 = vld [vmem:[#allocation103_spill] sm:$0xff] }
 0x1d1   : > { %v1544_v54 = vadd.f32 %v8953_v10, %v1496_v48  ;;  %v1555_v17 = vadd.f32 %v8955_v34, %v1507_v39  ;;  %v1556_v16 = vadd.f32 %v8957_v6, %v1508_v58  ;;  %v8963_v13 = vrot.slane %v8962_v59, 3  ;;  %v8988_v58 = vld [vmem:[#allocation101_spill] sm:$0xff]  ;;  %v8994_v10 = vld [vmem:[#allocation104_spill] sm:$0xff] }
 0x1d2   : > { %v1567_v51 = vadd.f32 %v8959_v32, %v1519_v50  ;;  %v1568_v11 = vadd.f32 %v8961_v52, %v1520_v12  ;;  %v8965_v63 = vrot.slane %v8964_v37, 3  ;;  %v8967_v60 = vrot.slane %v8966_v1, 3  ;;  %v8996_v34 = vld [vmem:[#allocation105_spill] sm:$0xff]  ;;  %v8998_v6 = vld [vmem:[#allocation120_spill] sm:$0xff]  ;;  %v9002_v52 = vld [vmem:[#allocation122_spill] sm:$0xff] }
 0x1d3   : > { %v1579_v21 = vadd.f32 %v8963_v13, %v1531_v62  ;;  %v8969_v27 = vrot.slane %v8968_v31, 3  ;;  %v8971_v35 = vrot.slane %v8970_v5, 3  ;;  %v8973_v14 = vrot.slane %v8972_v26, 3  ;;  %v8990_v62 = vld [vmem:[#allocation102_spill] sm:$0xff]  ;;  %v9000_v32 = vld [vmem:[#allocation121_spill] sm:$0xff]  ;;  %v9004_v13 = vld [vmem:[#allocation123_spill] sm:$0xff] }
 0x1d4   : > { %v1580_v36 = vadd.f32 %v8965_v63, %v1532_v3  ;;  %v1591_v7 = vadd.f32 %v8967_v60, %v1543_v2  ;;  %v8975_v25 = vrot.slane %v8974_v49, 3  ;;  %v8977_v61 = vrot.slane %v8976_v0, 3  ;;  %v9006_v63 = vld [vmem:[#allocation124_spill] sm:$0xff]  ;;  %v9008_v60 = vld [vmem:[#allocation125_spill] sm:$0xff] }
 0x1d5   : > { %v1592_v38 = vadd.f32 %v8969_v27, %v1544_v54  ;;  %v1603_v19 = vadd.f32 %v8971_v35, %v1555_v17  ;;  %v1604_v53 = vadd.f32 %v8973_v14, %v1556_v16  ;;  %v8979_v56 = vrot.slane %v8978_v40, 3  ;;  %v9010_v27 = vld [vmem:[#allocation126_spill] sm:$0xff]  ;;  %v9012_v35 = vld [vmem:[#allocation127_spill] sm:$0xff]  ;;  %v9017_v0 = vld [vmem:[#allocation196_spill] sm:$0xff] }
 0x1d6   : > { %v1615_v43 = vadd.f32 %v8975_v25, %v1567_v51  ;;  %v1616_v4 = vadd.f32 %v8977_v61, %v1568_v11  ;;  %v8981_v24 = vrot.slane %v8980_v45, 3  ;;  %v8983_v9 = vrot.slane %v8982_v20, 3  ;;  %v9014_v14 = vld [vmem:[#allocation195_spill] sm:$0xff] }
 0x1d7   : > { %v1627_v23 = vadd.f32 %v8979_v56, %v1579_v21  ;;  %v8985_v15 = vrot.slane %v8984_v57, 3  ;;  %v8987_v48 = vrot.slane %v8986_v41, 3  ;;  %v8989_v50 = vrot.slane %v8988_v58, 3  ;;  %v9026_v41 = vld [vmem:[#allocation144_spill] sm:$0xff]  ;;  %v9028_v58 = vld [vmem:[#allocation145_spill] sm:$0xff] }
 0x1d8   : > { %v1628_v46 = vadd.f32 %v8981_v24, %v1580_v36  ;;  %v1639_v47 = vadd.f32 %v8983_v9, %v1591_v7  ;;  %v8991_v3 = vrot.slane %v8990_v62, 3  ;;  %v8993_v2 = vrot.slane %v8992_v18, 3  ;;  %v9023_v9 = vld [vmem:[#allocation198_spill] sm:$0xff]  ;;  %v9032_v18 = vld [vmem:[#allocation147_spill] sm:$0xff] }
 0x1d9   : > { %v1640_v28 = vadd.f32 %v8985_v15, %v1592_v38  ;;  %v1651_v39 = vadd.f32 %v8987_v48, %v1603_v19  ;;  %v1652_v12 = vadd.f32 %v8989_v50, %v1604_v53  ;;  %v8995_v54 = vrot.slane %v8994_v10, 3  ;;  %v9030_v62 = vld [vmem:[#allocation146_spill] sm:$0xff]  ;;  %v9034_v10 = vld [vmem:[#allocation148_spill] sm:$0xff] }
 0x1da   : > { %v1663_v29 = vadd.f32 %v8991_v3, %v1615_v43  ;;  %v1664_v55 = vadd.f32 %v8993_v2, %v1616_v4  ;;  %v8997_v17 = vrot.slane %v8996_v34, 3  ;;  %v8999_v16 = vrot.slane %v8998_v6, 3  ;;  %v9036_v34 = vld [vmem:[#allocation149_spill] sm:$0xff]  ;;  %v9038_v6 = vld [vmem:[#allocation150_spill] sm:$0xff] }
 0x1db   : > { %v1675_v8 = vadd.f32 %v8995_v54, %v1627_v23  ;;  %v9001_v51 = vrot.slane %v9000_v32, 3  ;;  %v9003_v11 = vrot.slane %v9002_v52, 3  ;;  %v9005_v21 = vrot.slane %v9004_v13, 3  ;;  %v9020_v23 = vld [vmem:[#allocation197_spill] sm:$0xff]  ;;  %v9040_v32 = vld [vmem:[#allocation151_spill] sm:$0xff]  ;;  %v9044_v13 = vld [vmem:[#allocation164_spill] sm:$0xff] }
 0x1dc   : > { %v1676_v44 = vadd.f32 %v8997_v17, %v1628_v46  ;;  %v1687_v30 = vadd.f32 %v8999_v16, %v1639_v47  ;;  %v9007_v36 = vrot.slane %v9006_v63, 3  ;;  %v9009_v7 = vrot.slane %v9008_v60, 3  ;;  %v9042_v52 = vld [vmem:[#allocation163_spill] sm:$0xff]  ;;  %v9046_v63 = vld [vmem:[#allocation165_spill] sm:$0xff]  ;;  %v9048_v60 = vld [vmem:[#allocation166_spill] sm:$0xff] }
 0x1dd   : > { %v1688_v42 = vadd.f32 %v9001_v51, %v1640_v28  ;;  %v1699_v59 = vadd.f32 %v9003_v11, %v1651_v39  ;;  %v1700_v37 = vadd.f32 %v9005_v21, %v1652_v12  ;;  %v9011_v38 = vrot.slane %v9010_v27, 3  ;;  %v9050_v27 = vld [vmem:[#allocation167_spill] sm:$0xff] }
 0x1de   : > { %v1711_v1 = vadd.f32 %v9007_v36, %v1663_v29  ;;  %v1712_v31 = vadd.f32 %v9009_v7, %v1664_v55  ;;  %v9013_v19 = vrot.slane %v9012_v35, 3  ;;  %v9015_v53 = vperm.slane %v9014_v14, 3  ;;  %v9052_v35 = vld [vmem:[#allocation168_spill] sm:$0xff] }
 0x1df   : > { %v1723_v5 = vadd.f32 %v9011_v38, %v1675_v8  ;;  %v9016_v25 = vperm.slane %v9014_v14, 7  ;;  %v9018_v61 = vperm.slane %v9017_v0, 3  ;;  %v9019_v40 = vperm.slane %v9017_v0, 7  ;;  %v9054_v14 = vld [vmem:[#allocation169_spill] sm:$0xff] }
 0x1e0   : > { %v1724_v26 = vadd.f32 %v9013_v19, %v1676_v44  ;;  %v1733_v49 = vadd.f32 %v9015_v53, %v1687_v30  ;;  %v9021_v45 = vperm.slane %v9020_v23, 3  ;;  %v9022_v46 = vperm.slane %v9020_v23, 7 }
 0x1e1   : > { %v1734_v43 = vadd.f32 %v9016_v25, %v1688_v42  ;;  %v1743_v4 = vadd.f32 %v9018_v61, %v1699_v59  ;;  %v1744_v56 = vadd.f32 %v9019_v40, %v1700_v37  ;;  %v9024_v47 = vperm.slane %v9023_v9, 3  ;;  %v9056_v25 = vld [vmem:[#allocation170_spill] sm:$0xff]  ;;  %v9058_v61 = vld [vmem:[#allocation184_spill] sm:$0xff] }
 0x1e2   : > { %v1753_v24 = vadd.f32 %v9021_v45, %v1711_v1  ;;  %v1754_v20 = vadd.f32 %v9022_v46, %v1712_v31  ;;  %v9025_v15 = vperm.slane %v9023_v9, 7  ;;  %v9027_v48 = vrot.slane %v9026_v41, 3  ;;  %v9064_v9 = vld [vmem:[#allocation187_spill] sm:$0xff] }
 0x1e3   : > { %v1763_v57 = vadd.f32 %v9024_v47, %v1723_v5  ;;  %v9029_v50 = vrot.slane %v9028_v58, 3  ;;  %v9031_v3 = vrot.slane %v9030_v62, 3  ;;  %v9033_v2 = vrot.slane %v9032_v18, 3 }
 0x1e4   : > { %v1764_v28 = vadd.f32 %v9025_v15, %v1724_v26  ;;  %v1775_v39 = vadd.f32 %v9027_v48, %v1733_v49  ;;  %v9035_v54 = vrot.slane %v9034_v10, 3  ;;  %v9037_v17 = vrot.slane %v9036_v34, 3  ;;  %v9066_v15 = vld [vmem:[#allocation188_spill] sm:$0xff]  ;;  %v9068_v48 = vld [vmem:[#allocation189_spill] sm:$0xff] }
 0x1e5   : > { %v1776_v12 = vadd.f32 %v9029_v50, %v1734_v43  ;;  %v1787_v29 = vadd.f32 %v9031_v3, %v1743_v4  ;;  %v1788_v55 = vadd.f32 %v9033_v2, %v1744_v56  ;;  %v9039_v16 = vrot.slane %v9038_v6, 3  ;;  %v9060_v56 = vld [vmem:[#allocation185_spill] sm:$0xff]  ;;  %v9070_v50 = vld [vmem:[#allocation190_spill] sm:$0xff]  ;;  %v9072_v3 = vld [vmem:[#allocation191_spill] sm:$0xff] }
 0x1e6   : > { %v1799_v8 = vadd.f32 %v9035_v54, %v1753_v24  ;;  %v1800_v44 = vadd.f32 %v9037_v17, %v1754_v20  ;;  %v9041_v51 = vrot.slane %v9040_v32, 3  ;;  %v9043_v11 = vrot.slane %v9042_v52, 3  ;;  %v9062_v24 = vld [vmem:[#allocation186_spill] sm:$0xff] }
 0x1e7   : > { %v1811_v30 = vadd.f32 %v9039_v16, %v1763_v57  ;;  %v9045_v21 = vrot.slane %v9044_v13, 3  ;;  %v9047_v36 = vrot.slane %v9046_v63, 3  ;;  %v9049_v7 = vrot.slane %v9048_v60, 3 }
 0x1e8   : > { %v1812_v42 = vadd.f32 %v9041_v51, %v1764_v28  ;;  %v1823_v59 = vadd.f32 %v9043_v11, %v1775_v39  ;;  %v9051_v38 = vrot.slane %v9050_v27, 3  ;;  %v9053_v19 = vrot.slane %v9052_v35, 3 }
 0x1e9   : > { %v1824_v37 = vadd.f32 %v9045_v21, %v1776_v12  ;;  %v1835_v1 = vadd.f32 %v9047_v36, %v1787_v29  ;;  %v1836_v31 = vadd.f32 %v9049_v7, %v1788_v55  ;;  %v9055_v53 = vrot.slane %v9054_v14, 3 }
 0x1ea   : > { %v1847_v5 = vadd.f32 %v9051_v38, %v1799_v8  ;;  %v1848_v26 = vadd.f32 %v9053_v19, %v1800_v44  ;;  %v9057_v43 = vrot.slane %v9056_v25, 3  ;;  %v9059_v4 = vrot.slane %v9058_v61, 3 }
 0x1eb   : > { %v1859_v49 = vadd.f32 %v9055_v53, %v1811_v30  ;;  %v9061_v23 = vrot.slane %v9060_v56, 3  ;;  %v9063_v46 = vrot.slane %v9062_v24, 3  ;;  %v9065_v47 = vrot.slane %v9064_v9, 3 }
 0x1ec   : > { %v1860_v0 = vadd.f32 %v9057_v43, %v1812_v42  ;;  %v1871_v40 = vadd.f32 %v9059_v4, %v1823_v59  ;;  %v9067_v28 = vrot.slane %v9066_v15, 3  ;;  %v9069_v39 = vrot.slane %v9068_v48, 3 }
 0x1ed   : > { %v1872_v45 = vadd.f32 %v9061_v23, %v1824_v37  ;;  %v1883_v20 = vadd.f32 %v9063_v46, %v1835_v1  ;;  %v1884_v57 = vadd.f32 %v9065_v47, %v1836_v31  ;;  %v9071_v12 = vrot.slane %v9070_v50, 3 }
 0x1ee   : > { %v1895_v41 = vadd.f32 %v9067_v28, %v1847_v5  ;;  %v1896_v58 = vadd.f32 %v9069_v39, %v1848_v26  ;;  %v9073_v29 = vrot.slane %v9072_v3, 3  ;;  %v9074_v2 = vstv %s6229_s5  ;;  %s6913_s5 = sld [smem:[#allocation10 + $0x6c]] }
 0x1ef   : > { %v1907_v62 = vadd.f32 %v9071_v12, %v1859_v49  ;;  %v1911_v55 = vmul.f32 %v9074_v2, %v6331_v22  ;;  %v9075_v10 = vmov %v9074_v2  ;;  %v9076_v8 = vstv %s6235_s20  ;;  %s6915_s20 = sld [smem:[#allocation10 + $0x9]] }
 0x1f0   : > { %v1908_v18 = vadd.f32 %v9073_v29, %v1860_v0  ;;  %v1912_v54 = vmul.f32 %v9075_v10, %v6335_v33  ;;  %v1923_v34 = vmul.f32 %v9076_v8, %v6331_v22  ;;  %v9077_v17 = vmov %v9076_v8 }
 0x1f1   : > { %v1924_v44 = vmul.f32 %v9077_v17, %v6335_v33  ;;  %v9078_v6 = vstv %s6241_s25  ;;  %v9080_v51 = vstv %s6249_s29  ;;  %v1915_v59 = vrot.slane %v1911_v55, 3  ;;  %s6917_s25 = sld [smem:[#allocation10 + $0x2d]] }
 0x1f2   : > { %v1935_v16 = vmul.f32 %v9078_v6, %v6331_v22  ;;  %v9079_v30 = vmov %v9078_v6  ;;  %v1947_v42 = vmul.f32 %v9080_v51, %v6331_v22  ;;  %v9081_v52 = vmov %v9080_v51  ;;  %s6919_s29 = sld [smem:[#allocation10 + $0x51]] }
 0x1f3   : > { %v1936_v32 = vmul.f32 %v9079_v30, %v6335_v33  ;;  %v1948_v11 = vmul.f32 %v9081_v52, %v6335_v33  ;;  %v1916_v13 = vrot.slane %v1912_v54, 3  ;;  %v1927_v21 = vrot.slane %v1923_v34, 3 }
 0x1f4   : > { %v1928_v37 = vrot.slane %v1924_v44, 3  ;;  %v1939_v63 = vrot.slane %v1935_v16, 3  ;;  %v1951_v1 = vrot.slane %v1947_v42, 3  ;;  %v1919_v7 = vadd.f32 %v1915_v59, %v1871_v40 }
 0x1f5   : > { %v1940_v36 = vrot.slane %v1936_v32, 3  ;;  %v1952_v60 = vrot.slane %v1948_v11, 3  ;;  %v1920_v22 = vadd.f32 %v1916_v13, %v1872_v45  ;;  %v1931_v31 = vadd.f32 %v1927_v21, %v1883_v20 }
 0x1f6   : > { %v1932_v33 = vadd.f32 %v1928_v37, %v1884_v57  ;;  %v1943_v27 = vadd.f32 %v1939_v63, %v1895_v41  ;;  %v1955_v5 = vadd.f32 %v1951_v1, %v1907_v62  ;;  %v9082_v19 = vstv %s6267_s26  ;;  %s6923_s26 = sld [smem:[#allocation10 + $0x2]] }
 0x1f7   : > { %v1944_v38 = vadd.f32 %v1940_v36, %v1896_v58  ;;  %v1956_v35 = vadd.f32 %v1952_v60, %v1908_v18  ;;  %v1963_v26 = vadd.f32 %v9082_v19, %v1931_v31  ;;  %v9083_v14 = vmov %v9082_v19 }
 0x1f8   : > { %v1964_v53 = vadd.f32 %v9083_v14, %v1932_v33  ;;  %v9084_v49 = vstv %s6273_s6  ;;  %v9086_v61 = vstv %s6281_s24  ;;  %v9088_v23 = vstv %s6257_s30  ;;  %s6921_s30 = sld [smem:[#allocation10 + $0x75]] }
 0x1f9   : > { %v1967_v25 = vadd.f32 %v9084_v49, %v1943_v27  ;;  %v9085_v43 = vmov %v9084_v49  ;;  %v1971_v4 = vadd.f32 %v9086_v61, %v1955_v5  ;;  %v9087_v40 = vmov %v9086_v61  ;;  %s6925_s6 = sld [smem:[#allocation10 + $0x26]]  ;;  %v9122_v49 = vld [vmem:[#allocation42_spill] sm:$0xff] }
 0x1fa   : > { %v1968_v0 = vadd.f32 %v9085_v43, %v1944_v38  ;;  %v1972_v56 = vadd.f32 %v9087_v40, %v1956_v35  ;;  %v1959_v45 = vadd.f32 %v9088_v23, %v1919_v7  ;;  %v9089_v24 = vmov %v9088_v23  ;;  %s6927_s24 = sld [smem:[#allocation10 + $0x4a]] }
 0x1fb   : > { %v1960_v46 = vadd.f32 %v9089_v24, %v1920_v22  ;;  %v1975_v20 = vrot.slane %v1963_v26, 7  ;;  %v1976_v9 = vrot.slane %v1964_v53, 7  ;;  %v1981_v47 = vrot.slane %v1967_v25, 6 }
 0x1fc   : > { %v1982_v57 = vrot.slane %v1968_v0, 6  ;;  %v1987_v15 = vrot.slane %v1971_v4, 5  ;;  %v1988_v28 = vrot.slane %v1972_v56, 5  ;;  %v2163_v29 = vstv %s6883_s21  ;;  %s6960_s21 = sld [smem:[#allocation10 + $0x2e]] }
 0x1fd   : > { %v1992_v41 = vsel %vm1991_vm11, %v1959_v45, %v1975_v20  ;;  %v1993_v48 = vsel %vm1991_vm11, %v1960_v46, %v1976_v9  ;;  %v2169_v18 = vstv %s6885_s10  ;;  %v2175_v2 = vstv %s6887_s15  ;;  %s6970_s10 = sld [smem:[#allocation10 + $0x52]] }
 0x1fe   : > { %v1995_v39 = vsel %vm1994_vm12, %v1992_v41, %v1981_v47  ;;  %v1996_v58 = vsel %vm1994_vm12, %v1993_v48, %v1982_v57  ;;  %v2181_v55 = vstv %s6889_s22  ;;  %v2475_v8 = vstv %s6891_s8  ;;  %s6982_s15 = sld [smem:[#allocation10 + $0x76]] }
 0x1ff   : > { %v1998_v50 = vsel %vm1997_vm13, %v1995_v39, %v1987_v15  ;;  %v1999_v12 = vsel %vm1997_vm13, %v1996_v58, %v1988_v28  ;;  %v2487_v44 = vstv %s6893_s9  ;;  %v2499_v6 = vstv %s6895_s12  ;;  %s6992_s22 = sld [smem:[#allocation10 + $0x3]] }
 0x200   : > { %v6847_v62 = vmax.f32 %v1998_v50, 0.0  ;;  %v6849_v3 = vmax.f32 %v1999_v12, 0.0  ;;  %v2511_v51 = vstv %s6897_s13  ;;  %v2907_v11 = vstv %s6899_s2  ;;  %s7004_s8 = sld [smem:[#allocation10 + $0x27]] }
 0x201   : > { %v2919_v59 = vstv %s6901_s3  ;;  %v2931_v63 = vstv %s6903_s4  ;;  %s7018_s9 = sld [smem:[#allocation10 + $0x4b]]  ;;  %v2943_v27 = vstv %s6905_s19  ;;  %v2067_v45 = vstv %s6907_s16 }
 0x202   : > { %9090 = vst [vmem:[#allocation85_spill] sm:$0xff] %v6847_v62  ;;  %2010 = vrot.lane.b32.xlu0 %v6847_v62, %s9092_s28  ;;  %2002 = vrot.lane.b32.xlu1 %v6847_v62, %s9093_s7  ;;  %v6954_v10 = vmul.f32 %v2163_v29, %v6847_v62  ;;  %v6957_v54 = vmul.f32 %v2169_v18, %v6847_v62  ;;  %s7030_s12 = sld [smem:[#allocation10 + $0x6f]]  ;;  %v2073_v9 = vstv %s6909_s23  ;;  %v2079_v47 = vstv %s6911_s27 }
 0x203   : > { %9091 = vst [vmem:[#allocation86_spill] sm:$0xff] %v6849_v3  ;;  %2004 = vrot.lane.b32.xlu2 %v6849_v3, %s9093_s7  ;;  %s6931_s7 = sld [smem:[#allocation10 + $0xb]]  ;;  %v6963_v34 = vmul.f32 %v2175_v2, %v6847_v62  ;;  %v6966_v17 = vmul.f32 %v2181_v55, %v6847_v62  ;;  %v6973_v16 = vmul.f32 %v2163_v29, %v6849_v3  ;;  %v2085_v57 = vstv %s6913_s5 }
 0x204   : > { %v6976_v30 = vmul.f32 %v2169_v18, %v6849_v3  ;;  %v6979_v32 = vmul.f32 %v2175_v2, %v6849_v3  ;;  %v6985_v42 = vmul.f32 %v2475_v8, %v6847_v62  ;;  %v6988_v52 = vmul.f32 %v2475_v8, %v6849_v3  ;;  %s7042_s13 = sld [smem:[#allocation10 + $0xc]] }
 0x205   : > { %v6995_v13 = vmul.f32 %v2487_v44, %v6847_v62  ;;  %v6998_v21 = vmul.f32 %v2487_v44, %v6849_v3  ;;  %v7001_v37 = vmul.f32 %v2499_v6, %v6847_v62  ;;  %v7007_v36 = vmul.f32 %v2181_v55, %v6849_v3  ;;  %s7048_s2 = sld [smem:[#allocation10 + $0x30]] }
 0x206   : > { %9102 = vst [vmem:[#allocation87_spill] sm:$0xff] %v6985_v42  ;;  %v7010_v1 = vmul.f32 %v2499_v6, %v6849_v3  ;;  %v7013_v60 = vmul.f32 %v2511_v51, %v6847_v62  ;;  %v7016_v7 = vmul.f32 %v2511_v51, %v6849_v3  ;;  %v7021_v22 = vmul.f32 %v2907_v11, %v6847_v62  ;;  %s7056_s3 = sld [smem:[#allocation10 + $0x54]] }
 0x207   : > { %9103 = vst [vmem:[#allocation88_spill] sm:$0xff] %v6988_v52  ;;  %v7024_v31 = vmul.f32 %v2907_v11, %v6849_v3  ;;  %v7027_v33 = vmul.f32 %v2919_v59, %v6847_v62  ;;  %v7034_v5 = vmul.f32 %v2919_v59, %v6849_v3  ;;  %v7037_v35 = vmul.f32 %v2931_v63, %v6847_v62  ;;  %s7065_s4 = sld [smem:[#allocation10 + $0x6]] }
 0x208   : > { %9104 = vst [vmem:[#allocation89_spill] sm:$0xff] %v6995_v13  ;;  %v7040_v19 = vmul.f32 %v2931_v63, %v6849_v3  ;;  %v7054_v61 = vmul.f32 %v2943_v27, %v6847_v62  ;;  %v7062_v23 = vmul.f32 %v2943_v27, %v6849_v3  ;;  %v2283_v15 = vstv %s6915_s20  ;;  %s7074_s16 = sld [smem:[#allocation10 + $0x2a]] }
 0x209   : > { %9100 = sst [smem:[#allocation41_spill]] %s6931_s7  ;;  %9105 = vst [vmem:[#allocation106_spill] sm:$0xff] %v6998_v21  ;;  %v2295_v28 = vstv %s6917_s25  ;;  %v2307_v41 = vstv %s6919_s29  ;;  %v2319_v48 = vstv %s6921_s30  ;;  %v2115_v39 = vstv %s6923_s26 }
 0x20a   : > { %2020 = vrot.lane.b32.xlu0 %v6849_v3, %s9094_s14  ;;  %2012 = vrot.lane.b32.xlu1 %v6849_v3, %s9092_s28  ;;  %s6929_s28 = sld [smem:[#allocation10 + $0x6e]]  ;;  %9106 = vst [vmem:[#allocation107_spill] sm:$0xff] %v7001_v37  ;;  %v2121_v58 = vstv %s6925_s6  ;;  %v2127_v50 = vstv %s6927_s24 }
 0x20b   : > { %2018 = vrot.lane.b32.xlu2 %v6847_v62, %s9094_s14  ;;  %s6933_s14 = sld [smem:[#allocation10 + $0x2f]]  ;;  %9107 = vst [vmem:[#allocation108_spill] sm:$0xff] %v7010_v1  ;;  %v9159_v20 = vstv %s7004_s8 }
 0x20c   : > { %s6949_s7 = sld [smem:[#allocation10 + $0x6d]]  ;;  %9108 = vst [vmem:[#allocation109_spill] sm:$0xff] %v7013_v60 }
 0x20d   : > { %9109 = vst [vmem:[#allocation110_spill] sm:$0xff] %v7016_v7  ;;  %9117 = sst [smem:[#allocation44_spill]] %s7056_s3 }
 0x20e   : > { %9110 = vst [vmem:[#allocation111_spill] sm:$0xff] %v7021_v22  ;;  %s9119_s19 = sld [smem:[#allocation41_spill]] }
 0x20f   : > { %9111 = vst [vmem:[#allocation128_spill] sm:$0xff] %v7024_v31  ;;  %s9121_s23 = sld [smem:[#allocation44_spill]] }
 0x210   : > { %9112 = vst [vmem:[#allocation129_spill] sm:$0xff] %v7027_v33  ;;  %v2133_v12 = vstv %s6929_s28  ;;  %s7335_s27 = sld [smem:[#allocation10 + $0x4e]] }
 0x211   : > { %9101 = sst [smem:[#allocation43_spill]] %s6933_s14  ;;  %9113 = vst [vmem:[#allocation130_spill] sm:$0xff] %v7034_v5 }
 0x212   : > { %2034 = vrot.lane.b32.xlu0 %v6847_v62, %s9095_s0  ;;  %2026 = vrot.lane.b32.xlu1 %v6847_v62, %s9096_s1  ;;  %s6951_s14 = sld [smem:[#allocation10 + $0xa]]  ;;  %9114 = vst [vmem:[#allocation131_spill] sm:$0xff] %v7037_v35 }
 0x213   : > { %2028 = vrot.lane.b32.xlu2 %v6849_v3, %s9096_s1  ;;  %s6937_s1 = sld [smem:[#allocation10 + $0x77]]  ;;  %9115 = vst [vmem:[#allocation132_spill] sm:$0xff] %v7040_v19 }
 0x214   : > { %9116 = vst [vmem:[#allocation133_spill] sm:$0xff] %v7054_v61  ;;  %s9120_s3 = sld [smem:[#allocation43_spill]]  ;;  %v2379_v29 = vstv %s9119_s19 }
 0x215   : > { %9118 = vst [vmem:[#allocation134_spill] sm:$0xff] %v7062_v23  ;;  %s7347_s5 = sld [smem:[#allocation10 + $0x72]] }
 0x216   : > { %s7373_s20 = sld [smem:[#allocation10 + $0x5]] }
 0x217   : > { %s7387_s25 = sld [smem:[#allocation10 + $0x29]] }
 0x218   : > { %s7392_s29 = sld [smem:[#allocation10 + $0x4d]] }
 0x219   : > { %v9138_v31 = vstv %s6937_s1  ;;  %s7394_s30 = sld [smem:[#allocation10 + $0x71]] }
 0x21a   : > { %2044 = vrot.lane.b32.xlu0 %v6849_v3, %s9097_s11  ;;  %2036 = vrot.lane.b32.xlu1 %v6849_v3, %s9095_s0  ;;  %s6935_s0 = sld [smem:[#allocation10 + $0x53]] }
 0x21b   : > { %2042 = vrot.lane.b32.xlu2 %v6847_v62, %s9097_s11  ;;  %s6939_s11 = sld [smem:[#allocation10 + $0x1]] }
 0x21c   : > { %s7447_s26 = sld [smem:[#allocation10 + $0x7]] }
 0x21d   : > { %s7457_s6 = sld [smem:[#allocation10 + $0x2b]] }
 0x21e   : > { %s7463_s24 = sld [smem:[#allocation10 + $0x4f]] }
 0x21f   : > { %s7473_s28 = sld [smem:[#allocation10 + $0x73]] }
 0x220   : > { %s7653_s8 = sld [smem:[#allocation10 + $0x57]] }
 0x221   : > { %v8364_v44 = vstv %s6939_s11  ;;  %v9140_v23 = vstv %s6939_s11  ;;  %s7507_s11 = sld [smem:[#allocation10 + $0x74]] }
 0x222   : > { %2058 = vrot.lane.b32.xlu0 %v6847_v62, %s9098_s17  ;;  %2050 = vrot.lane.b32.xlu1 %v6847_v62, %s9099_s18  ;;  %v9132_v62 = vstv %s9120_s3  ;;  %s7681_s3 = sld [smem:[#allocation10 + $0x7c]] }
 0x223   : > { %2052 = vrot.lane.b32.xlu2 %v6849_v3, %s9099_s18  ;;  %s6945_s18 = sld [smem:[#allocation10 + $0x49]] }
 0x224   : > { %s7690_s19 = sld [smem:[#allocation10 + $0x35]] }
 0x22a   : > { %2060 = vrot.lane.b32.xlu1 %v6849_v3, %s9098_s17  ;;  %s6941_s17 = sld [smem:[#allocation10 + $0x25]] }
 0x25d   : > { %v2005_v18 = vpop.permute.xlu2 %2004 }
 0x274   : > { %v2011_v24 = vpop.permute.xlu0 %2010  ;;  %v2003_v56 = vpop.permute.xlu1 %2002 }
 0x275   : > { %v2006_v25 = vsel %vm342_vm2, %v2003_v56, %v2005_v18  ;;  %v2007_v53 = vsel %vm342_vm2, %v2005_v18, %v2003_v56 }
 0x276   : > { %v7108_v27 = vsel %vm4686_vm8, %v2007_v53, 0.0  ;;  %v7112_v46 = vsel %vm4647_vm3, %v2006_v25, 0.0  ;;  %vm9191_vm8 = vcmp.lt.s32.totalorder %v9122_v49, 111 }
 0x277   : > { %9124 = vst [vmem:[#allocation135_spill] sm:$0xff] %v7108_v27  ;;  %v2068_v43 = vmul.f32 %v2067_v45, %v7108_v27  ;;  %v2069_v0 = vmul.f32 %v2067_v45, %v7112_v46  ;;  %v7119_v63 = vmul.f32 %v2073_v9, %v7108_v27  ;;  %v7122_v56 = vmul.f32 %v2073_v9, %v7112_v46 }
 0x278   : > { %9126 = vst [vmem:[#allocation153_spill] sm:$0xff] %v7112_v46  ;;  %v7125_v38 = vmul.f32 %v2079_v47, %v7108_v27  ;;  %v7128_v53 = vmul.f32 %v2079_v47, %v7112_v46  ;;  %v7131_v25 = vmul.f32 %v2085_v57, %v7108_v27  ;;  %v7134_v18 = vmul.f32 %v2085_v57, %v7112_v46 }
 0x279   : > { %v7137_v45 = vmul.f32 %v2283_v15, %v7108_v27  ;;  %v7140_v4 = vmul.f32 %v2283_v15, %v7112_v46  ;;  %v7143_v9 = vmul.f32 %v2295_v28, %v7108_v27  ;;  %v7146_v40 = vmul.f32 %v2295_v28, %v7112_v46  ;;  %v2019_v15 = vpop.permute.xlu2 %2018 }
 0x27a   : > { %v7149_v47 = vmul.f32 %v2307_v41, %v7108_v27  ;;  %v7152_v26 = vmul.f32 %v2307_v41, %v7112_v46  ;;  %v7155_v57 = vmul.f32 %v2319_v48, %v7108_v27  ;;  %v7158_v14 = vmul.f32 %v2319_v48, %v7112_v46 }
 0x27b   : > { %v9145_v27 = vstv %s6949_s7  ;;  %s7497_s7 = sld [smem:[#allocation10 + $0x8]] }
 0x27c   : > { %v2021_v11 = vpop.permute.xlu0 %2020  ;;  %v2013_v8 = vpop.permute.xlu1 %2012 }
 0x27d   : > { %v2022_v51 = vsel %vm372_vm5, %v2019_v15, %v2021_v11  ;;  %v2023_v41 = vsel %vm372_vm5, %v2021_v11, %v2019_v15  ;;  %v7174_v6 = vsel %vm358_vm9, %v2011_v24, %v2013_v8  ;;  %v2015_v59 = vsel %vm358_vm9, %v2013_v8, %v2011_v24  ;;  %vm9192_vm9 = vmmov %vm9191_vm8 }
 0x27e   : > { %9127 = vst [vmem:[#allocation154_spill] sm:$0xff] %v7174_v6  ;;  %v7180_v28 = vsel %vm4678_vm7, %v2023_v41, 0.0  ;;  %v7184_v2 = vsel %vm4666_vm6, %v2022_v51, 0.0  ;;  %v7188_v11 = vsel %vm323_vm0, %v2015_v59, 0.0  ;;  %v2093_v15 = vmul.f32 %v8364_v44, %v7174_v6 }
 0x27f   : > { %9130 = vst [vmem:[#allocation171_spill] sm:$0xff] %v7184_v2  ;;  %v7196_v24 = vmul.f32 %v2115_v39, %v7180_v28  ;;  %v2117_v8 = vmul.f32 %v2115_v39, %v7184_v2  ;;  %v7204_v51 = vmul.f32 %v2121_v58, %v7180_v28  ;;  %v2123_v59 = vmul.f32 %v2121_v58, %v7184_v2 }
 0x280   : > { %9131 = vst [vmem:[#allocation172_spill] sm:$0xff] %v7188_v11  ;;  %v7212_v41 = vmul.f32 %v2127_v50, %v7180_v28  ;;  %v2129_v48 = vmul.f32 %v2127_v50, %v7184_v2  ;;  %v7220_v44 = vmul.f32 %v2133_v12, %v7180_v28  ;;  %v2135_v39 = vmul.f32 %v2133_v12, %v7184_v2 }
 0x281   : > { %v7228_v3 = vmul.f32 %v2379_v29, %v7180_v28  ;;  %v7233_v58 = vmul.f32 %v2379_v29, %v7184_v2  ;;  %v7238_v19 = vmul.f32 %v9132_v62, %v7180_v28  ;;  %v9133_v50 = vmov %v9132_v62 }
 0x282   : > { %v7243_v35 = vmul.f32 %v9133_v50, %v7184_v2  ;;  %v9134_v12 = vstv %s6935_s0  ;;  %v7258_v62 = vmul.f32 %v9138_v31, %v7184_v2  ;;  %v2092_v50 = vmul.f32 %v9140_v23, %v7188_v11  ;;  %s7502_s0 = sld [smem:[#allocation10 + $0x50]] }
 0x283   : > { %v7248_v5 = vmul.f32 %v9134_v12, %v7180_v28  ;;  %v9136_v33 = vmov %v9134_v12  ;;  %v2095_v7 = vadd.f32 %v2093_v15, %v2069_v0  ;;  %v9141_v23 = vstv %s6941_s17  ;;  %s7516_s17 = sld [smem:[#allocation10 + $0x78]] }
 0x284   : > { %v7253_v29 = vmul.f32 %v9136_v33, %v7184_v2  ;;  %9139 = vst [vmem:[#allocation175_spill] sm:$0xff] %v7258_v62  ;;  %v2094_v2 = vadd.f32 %v2092_v50, %v2068_v43  ;;  %v2098_v60 = vmul.f32 %v9141_v23, %v7188_v11  ;;  %v9142_v61 = vmov %v9141_v23  ;;  %v7304_v13 = vpop.permute.xlu0 %2034 }
 0x285   : > { %9135 = vst [vmem:[#allocation173_spill] sm:$0xff] %v7248_v5  ;;  %v2099_v37 = vmul.f32 %v9142_v61, %v7174_v6  ;;  %v9143_v12 = vstv %s6945_s18  ;;  %v2110_v31 = vmul.f32 %v9145_v27, %v7188_v11  ;;  %v9146_v43 = vmov %v9145_v27  ;;  %s7522_s18 = sld [smem:[#allocation10 + $0xe]] }
 0x286   : > { %9137 = vst [vmem:[#allocation174_spill] sm:$0xff] %v7253_v29  ;;  %v2104_v22 = vmul.f32 %v9143_v12, %v7188_v11  ;;  %v9144_v46 = vmov %v9143_v12  ;;  %v2111_v0 = vmul.f32 %v9146_v43, %v7174_v6  ;;  %v9147_v15 = vstv %s6951_s14  ;;  %s7500_s14 = sld [smem:[#allocation10 + $0x2c]] }
 0x287   : > { %v2105_v33 = vmul.f32 %v9144_v46, %v7174_v6  ;;  %v7291_v50 = vmul.f32 %v9147_v15, %v7188_v11  ;;  %v2100_v61 = vadd.f32 %v2098_v60, %v7119_v63  ;;  %v2101_v23 = vadd.f32 %v2099_v37, %v7122_v56 }
 0x288   : > { %v2106_v12 = vadd.f32 %v2104_v22, %v7125_v38  ;;  %v2119_v1 = vadd.f32 %v2117_v8, %v2095_v7  ;;  %v2112_v21 = vadd.f32 %v2110_v31, %v7131_v25  ;;  %v2113_v27 = vadd.f32 %v2111_v0, %v7134_v18  ;;  %v2027_v38 = vpop.permute.xlu1 %2026 }
 0x289   : > { %v2107_v46 = vadd.f32 %v2105_v33, %v7128_v53  ;;  %v9148_v43 = vmov %v9147_v15  ;;  %v2125_v60 = vadd.f32 %v2123_v59, %v2101_v23  ;;  %v9149_v7 = vstv %s6960_s21  ;;  %v2029_v53 = vpop.permute.xlu2 %2028  ;;  %s7606_s21 = sld [smem:[#allocation10 + $0x56]] }
 0x28a   : > { %v7302_v15 = vmul.f32 %v9148_v43, %v7174_v6  ;;  %v7310_v22 = vmul.f32 %v9149_v7, %v7188_v11  ;;  %v9150_v63 = vmov %v9149_v7  ;;  %v2137_v18 = vadd.f32 %v2135_v39, %v2113_v27 }
 0x28b   : > { %v7315_v56 = vmul.f32 %v9150_v63, %v7174_v6  ;;  %v2131_v25 = vadd.f32 %v2129_v48, %v2107_v46  ;;  %v9151_v33 = vstv %s6970_s10  ;;  %v9153_v7 = vstv %s6982_s15  ;;  %s7625_s10 = sld [smem:[#allocation10 + $0x7a]] }
 0x28c   : > { %v7321_v59 = vmul.f32 %v9151_v33, %v7188_v11  ;;  %v9152_v23 = vmov %v9151_v33  ;;  %v7333_v63 = vmul.f32 %v9153_v7, %v7188_v11  ;;  %v9154_v39 = vmov %v9153_v7  ;;  %s7634_s15 = sld [smem:[#allocation10 + $0xf]] }
 0x28d   : > { %v7328_v43 = vmul.f32 %v9152_v23, %v7174_v6  ;;  %v7341_v46 = vmul.f32 %v9154_v39, %v7174_v6  ;;  %v2030_v27 = vsel %vm388_vm10, %v2027_v38, %v2029_v53  ;;  %v2031_v33 = vsel %vm388_vm10, %v2029_v53, %v2027_v38 }
 0x28e   : > { %v7353_v39 = vsel %vm4640_vm1, %v2031_v33, 0.0  ;;  %v7357_v0 = vsel %vm4647_vm3, %v2030_v27, 0.0  ;;  %v2118_v38 = vadd.f32 %v7196_v24, %v2094_v2  ;;  %v2124_v53 = vadd.f32 %v7204_v51, %v2100_v61 }
 0x28f   : > { %9156 = vst [vmem:[#allocation53_spill] sm:$0xff] %v7357_v0  ;;  %v2130_v23 = vadd.f32 %v7212_v41, %v2106_v12  ;;  %v2136_v8 = vadd.f32 %v7220_v44, %v2112_v21  ;;  %v9157_v7 = vstv %s6992_s22  ;;  %v2146_v27 = vmul.f32 %v9159_v20, %v7353_v39  ;;  %s7640_s22 = sld [smem:[#allocation10 + $0x33]] }
 0x290   : > { %v2140_v37 = vmul.f32 %v9157_v7, %v7353_v39  ;;  %v9158_v33 = vmov %v9157_v7  ;;  %v9160_v2 = vmov %v9159_v20  ;;  %v9161_v51 = vstv %s7018_s9  ;;  %s7659_s9 = sld [smem:[#allocation10 + $0x7b]] }
 0x291   : > { %v2141_v6 = vmul.f32 %v9158_v33, %v7357_v0  ;;  %v2147_v24 = vmul.f32 %v9160_v2, %v7357_v0  ;;  %v2152_v61 = vmul.f32 %v9161_v51, %v7353_v39  ;;  %v9162_v41 = vmov %v9161_v51 }
 0x292   : > { %v2153_v21 = vmul.f32 %v9162_v41, %v7357_v0  ;;  %v9163_v44 = vstv %s7030_s12  ;;  %v2142_v7 = vadd.f32 %v2140_v37, %v2118_v38  ;;  %v2148_v20 = vadd.f32 %v2146_v27, %v2124_v53  ;;  %s7664_s12 = sld [smem:[#allocation10 + $0x10]] }
 0x293   : > { %v2158_v12 = vmul.f32 %v9163_v44, %v7353_v39  ;;  %v2143_v33 = vadd.f32 %v2141_v6, %v2119_v1  ;;  %v9164_v2 = vmov %v9163_v44  ;;  %v2149_v51 = vadd.f32 %v2147_v24, %v2125_v60  ;;  %v2045_v44 = vpop.permute.xlu0 %2044  ;;  %v2037_v60 = vpop.permute.xlu1 %2036 }
 0x294   : > { %v2159_v31 = vmul.f32 %v9164_v2, %v7357_v0  ;;  %v2154_v41 = vadd.f32 %v2152_v61, %v2130_v23  ;;  %v2155_v11 = vadd.f32 %v2153_v21, %v2131_v25  ;;  %v9165_v1 = vstv %s7042_s13  ;;  %v2043_v25 = vpop.permute.xlu2 %2042  ;;  %s7670_s13 = sld [smem:[#allocation10 + $0x34]] }
 0x295   : > { %v2160_v52 = vadd.f32 %v2158_v12, %v2136_v8  ;;  %v7399_v6 = vmul.f32 %v9165_v1, %v7353_v39  ;;  %v9167_v37 = vmov %v9165_v1  ;;  %v9169_v53 = vstv %s7048_s2  ;;  %s7676_s2 = sld [smem:[#allocation10 + $0x58]] }
 0x296   : > { %v2161_v42 = vadd.f32 %v2159_v31, %v2137_v18  ;;  %v7404_v38 = vmul.f32 %v9167_v37, %v7357_v0  ;;  %v7409_v27 = vmul.f32 %v9169_v53, %v7353_v39  ;;  %v9171_v8 = vmov %v9169_v53 }
 0x297   : > { %9166 = vst [vmem:[#allocation54_spill] sm:$0xff] %v7399_v6  ;;  %v7414_v23 = vmul.f32 %v9171_v8, %v7357_v0  ;;  %v9173_v18 = vstv %s9121_s23  ;;  %v2223_v24 = vstv %s7335_s27  ;;  %v2229_v61 = vstv %s7347_s5  ;;  %s7704_s27 = sld [smem:[#allocation10 + $0x7d]] }
 0x298   : > { %9168 = vst [vmem:[#allocation55_spill] sm:$0xff] %v7404_v38  ;;  %v7419_v31 = vmul.f32 %v9173_v18, %v7357_v0  ;;  %vm9175_vm0 = vcmp.lt.s32.totalorder %v9122_v49, 113  ;;  %v9180_v21 = vstv %s7065_s4  ;;  %v9181_v37 = vstv %s7074_s16  ;;  %s7684_s4 = sld [smem:[#allocation10 + $0x11]] }
 0x299   : > { %9170 = vst [vmem:[#allocation56_spill] sm:$0xff] %v7409_v27  ;;  %v2046_v1 = vsel %vm9175_vm0, %v2043_v25, %v2045_v44  ;;  %vm9176_vm2 = vmmov %vm9175_vm0  ;;  %v2199_v27 = vstv %s7392_s29  ;;  %v2205_v38 = vstv %s7394_s30  ;;  %v2167_v6 = vadd.f32 %v6973_v16, %v2143_v33  ;;  %s7696_s16 = sld [smem:[#allocation10 + $0x59]] }
 0x29a   : > { %9172 = vst [vmem:[#allocation57_spill] sm:$0xff] %v7414_v23  ;;  %v2047_v8 = vsel %vm9176_vm2, %v2045_v44, %v2043_v25  ;;  %v7434_v18 = vsel %vm4640_vm1, %v2046_v1, 0.0  ;;  %v9182_v44 = vmov %v9180_v21  ;;  %v9183_v25 = vmov %v9181_v37  ;;  %s7710_s5 = sld [smem:[#allocation10 + $0x36]] }
 0x29b   : > { %9174 = vst [vmem:[#allocation58_spill] sm:$0xff] %v7419_v31  ;;  %v7438_v2 = vsel %vm5784_vm14, %v2047_v8, 0.0  ;;  %v2212_v0 = vmul.f32 %v9180_v21, %v7434_v18  ;;  %v2218_v23 = vmul.f32 %v9181_v37, %v7434_v18  ;;  %v2224_v53 = vmul.f32 %v2223_v24, %v7434_v18  ;;  %v2051_v5 = vpop.permute.xlu1 %2050  ;;  %s7724_s29 = sld [smem:[#allocation10 + $0x13]] }
 0x29c   : > { %9177 = vst [vmem:[#allocation59_spill] sm:$0xff] %v7434_v18  ;;  %v2213_v48 = vmul.f32 %v9182_v44, %v7438_v2  ;;  %v2219_v1 = vmul.f32 %v9183_v25, %v7438_v2  ;;  %v2225_v12 = vmul.f32 %v2223_v24, %v7438_v2  ;;  %v2230_v8 = vmul.f32 %v2229_v61, %v7434_v18  ;;  %s7730_s30 = sld [smem:[#allocation10 + $0x37]] }
 0x29d   : > { %9179 = vst [vmem:[#allocation60_spill] sm:$0xff] %v7438_v2  ;;  %v2231_v21 = vmul.f32 %v2229_v61, %v7438_v2  ;;  %v2187_v31 = vstv %s7373_s20  ;;  %v2193_v37 = vstv %s7387_s25  ;;  %vm9184_vm1 = vcmp.lt.s32.totalorder %v9122_v49, 127  ;;  %s7716_s20 = sld [smem:[#allocation10 + $0x5a]] }
 0x29e   : > { %v2038_v44 = vsel %vm9184_vm1, %v7304_v13, %v2037_v60  ;;  %vm9185_vm3 = vmmov %vm9184_vm1  ;;  %v2166_v25 = vadd.f32 %v6954_v10, %v2142_v7  ;;  %v2172_v62 = vadd.f32 %v6957_v54, %v2148_v20  ;;  %v2173_v29 = vadd.f32 %v6976_v30, %v2149_v51  ;;  %v2053_v51 = vpop.permute.xlu2 %2052  ;;  %s7721_s25 = sld [smem:[#allocation10 + $0x7e]] }
 0x29f   : > { %v2039_v24 = vsel %vm9185_vm3, %v2037_v60, %v7304_v13  ;;  %v7477_v61 = vsel %vm4654_vm4, %v2038_v44, 0.0  ;;  %v2178_v13 = vadd.f32 %v6963_v34, %v2154_v41  ;;  %v2179_v10 = vadd.f32 %v6979_v32, %v2155_v11 }
 0x2a0   : > { %v7481_v2 = vsel %vm4666_vm6, %v2039_v24, 0.0  ;;  %v2184_v7 = vadd.f32 %v6966_v17, %v2160_v52  ;;  %v2185_v60 = vadd.f32 %v7007_v36, %v2161_v42  ;;  %v2188_v44 = vmul.f32 %v2187_v31, %v7477_v61 }
 0x2a1   : > { %v2189_v55 = vmul.f32 %v2187_v31, %v7481_v2  ;;  %v2194_v24 = vmul.f32 %v2193_v37, %v7477_v61  ;;  %v2195_v16 = vmul.f32 %v2193_v37, %v7481_v2  ;;  %v2200_v54 = vmul.f32 %v2199_v27, %v7477_v61 }
 0x2a2   : > { %v2201_v34 = vmul.f32 %v2199_v27, %v7481_v2  ;;  %v2206_v30 = vmul.f32 %v2205_v38, %v7477_v61  ;;  %v2190_v17 = vadd.f32 %v2188_v44, %v2166_v25  ;;  %v2207_v52 = vmul.f32 %v2205_v38, %v7481_v2  ;;  %v9189_v38 = vld [vmem:[#allocation45_spill] sm:$0xff] }
 0x2a3   : > { %v2191_v32 = vadd.f32 %v2189_v55, %v2167_v6  ;;  %v2196_v42 = vadd.f32 %v2194_v24, %v2172_v62  ;;  %v2197_v36 = vadd.f32 %v2195_v16, %v2173_v29  ;;  %v2202_v11 = vadd.f32 %v2200_v54, %v2178_v13 }
 0x2a4   : > { %v2203_v33 = vadd.f32 %v2201_v34, %v2179_v10  ;;  %v2208_v20 = vadd.f32 %v2206_v30, %v2184_v7  ;;  %v2209_v41 = vadd.f32 %v2207_v52, %v2185_v60  ;;  %v2235_v27 = vstv %s7447_s26  ;;  %s7736_s26 = sld [smem:[#allocation10 + $0x5b]] }
 0x2a5   : > { %v2241_v31 = vstv %s7457_s6  ;;  %v2247_v37 = vstv %s7463_s24  ;;  %v2253_v25 = vstv %s7473_s28  ;;  %vm9187_vm5 = vcmp.lt.s32.totalorder %v9122_v49, 112  ;;  %s7741_s6 = sld [smem:[#allocation10 + $0x7f]] }
 0x2a6   : > { %v7512_v62 = vsel %vm9187_vm5, %v2051_v5, %v2053_v51  ;;  %vm9188_vm6 = vmmov %vm9187_vm5  ;;  %v2214_v6 = vadd.f32 %v2212_v0, %v2190_v17  ;;  %vm9190_vm7 = vcmp.lt.s32.totalorder %v9189_v38, 240  ;;  %v2215_v10 = vadd.f32 %v2213_v48, %v2191_v32  ;;  %v2061_v17 = vpop.permute.xlu1 %2060  ;;  %s7744_s24 = sld [smem:[#allocation10 + $0x14]] }
 0x2a7   : > { %v2055_v29 = vsel %vm9188_vm6, %v2053_v51, %v2051_v5  ;;  %v2220_v7 = vadd.f32 %v2218_v23, %v2196_v42  ;;  %v2221_v60 = vadd.f32 %v2219_v1, %v2197_v36  ;;  %v2226_v44 = vadd.f32 %v2224_v53, %v2202_v11  ;;  %v2059_v11 = vpop.permute.xlu0 %2058  ;;  %s7750_s28 = sld [smem:[#allocation10 + $0x38]] }
 0x2a8   : > { %v7520_v13 = vsel %vm9190_vm7, %v2055_v29, 0.0  ;;  %v2227_v55 = vadd.f32 %v2225_v12, %v2203_v33  ;;  %v2232_v24 = vadd.f32 %v2230_v8, %v2208_v20  ;;  %v2233_v16 = vadd.f32 %v2231_v21, %v2209_v41 }
 0x2a9   : > { %v2236_v54 = vmul.f32 %v2235_v27, %v7512_v62  ;;  %v2237_v5 = vmul.f32 %v2235_v27, %v7520_v13  ;;  %v2242_v0 = vmul.f32 %v2241_v31, %v7512_v62  ;;  %v2243_v34 = vmul.f32 %v2241_v31, %v7520_v13 }
 0x2aa   : > { %v2248_v48 = vmul.f32 %v2247_v37, %v7512_v62  ;;  %v2249_v23 = vmul.f32 %v2247_v37, %v7520_v13  ;;  %v2254_v53 = vmul.f32 %v2253_v25, %v7512_v62  ;;  %v2255_v1 = vmul.f32 %v2253_v25, %v7520_v13 }
 0x2ab   : > { %v2238_v12 = vadd.f32 %v2236_v54, %v2214_v6  ;;  %v2239_v8 = vadd.f32 %v2237_v5, %v2215_v10  ;;  %v2244_v21 = vadd.f32 %v2242_v0, %v2220_v7  ;;  %v2245_v30 = vadd.f32 %v2243_v34, %v2221_v60 }
 0x2ac   : > { %v2250_v32 = vadd.f32 %v2248_v48, %v2226_v44  ;;  %v2251_v42 = vadd.f32 %v2249_v23, %v2227_v55  ;;  %v2256_v52 = vadd.f32 %v2254_v53, %v2232_v24  ;;  %v2257_v36 = vadd.f32 %v2255_v1, %v2233_v16 }
 0x2ad   : > { %v2259_v33 = vstv %s7497_s7  ;;  %v2265_v20 = vstv %s7500_s14  ;;  %v2271_v51 = vstv %s7502_s0  ;;  %v2277_v41 = vstv %s7507_s11  ;;  %s7756_s7 = sld [smem:[#allocation10 + $0x5c]] }
 0x2ae   : > { %v2062_v27 = vsel %vm9191_vm8, %v2059_v11, %v2061_v17  ;;  %v2063_v31 = vsel %vm9192_vm9, %v2061_v17, %v2059_v11  ;;  %v9193_v37 = vstv %s6937_s1  ;;  %v9194_v29 = vstv %s9121_s23  ;;  %s7588_s1 = sld [smem:[#allocation10 + $0x32]] }
 0x2af   : > { %v2416_v25 = vmul.f32 %v9193_v37, %v7180_v28  ;;  %v2452_v6 = vmul.f32 %v9194_v29, %v7353_v39  ;;  %v7548_v38 = vsel %vm4654_vm4, %v2062_v27, 0.0  ;;  %v7552_v7 = vsel %vm6313_vm15, %v2063_v31, 0.0  ;;  %s7701_s23 = sld [smem:[#allocation10 + $0x12]] }
 0x2b0   : > { %v2463_v60 = vstv %s7516_s17  ;;  %v2523_v44 = vstv %s7522_s18  ;;  %v2260_v55 = vmul.f32 %v2259_v33, %v7548_v38  ;;  %v2261_v49 = vmul.f32 %v2259_v33, %v7552_v7  ;;  %s7761_s14 = sld [smem:[#allocation10 + $0x80]] }
 0x2b1   : > { %v2266_v24 = vmul.f32 %v2265_v20, %v7548_v38  ;;  %v2267_v16 = vmul.f32 %v2265_v20, %v7552_v7  ;;  %v2272_v54 = vmul.f32 %v2271_v51, %v7548_v38  ;;  %v2273_v18 = vmul.f32 %v2271_v51, %v7552_v7  ;;  %s7764_s0 = sld [smem:[#allocation10 + $0x15]] }
 0x2b2   : > { %v2278_v5 = vmul.f32 %v2277_v41, %v7548_v38  ;;  %v2279_v0 = vmul.f32 %v2277_v41, %v7552_v7  ;;  %v2262_v34 = vadd.f32 %v2260_v55, %v2238_v12  ;;  %v2263_v48 = vadd.f32 %v2261_v49, %v2239_v8  ;;  %s7770_s11 = sld [smem:[#allocation10 + $0x39]] }
 0x2b3   : > { %v2268_v23 = vadd.f32 %v2266_v24, %v2244_v21  ;;  %v2269_v53 = vadd.f32 %v2267_v16, %v2245_v30  ;;  %v2274_v1 = vadd.f32 %v2272_v54, %v2250_v32  ;;  %v2275_v17 = vadd.f32 %v2273_v18, %v2251_v42  ;;  %s7776_s17 = sld [smem:[#allocation10 + $0x5d]] }
 0x2b4   : > { %v2280_v11 = vadd.f32 %v2278_v5, %v2256_v52  ;;  %v2281_v33 = vadd.f32 %v2279_v0, %v2257_v36  ;;  %v9196_v27 = vrot.slane %v7137_v45, 1  ;;  %v9197_v20 = vrot.slane %v7140_v4, 1  ;;  %s7781_s18 = sld [smem:[#allocation10 + $0x81]] }
 0x2b5   : > { %v9198_v51 = vrot.slane %v7143_v9, 1  ;;  %v9199_v10 = vrot.slane %v7146_v40, 1  ;;  %v9200_v12 = vrot.slane %v7152_v26, 1  ;;  %v9201_v21 = vrot.slane %v7149_v47, 1 }
 0x2b6   : > { %v2292_v31 = vadd.f32 %v9196_v27, %v2262_v34  ;;  %v2293_v37 = vadd.f32 %v9197_v20, %v2263_v48  ;;  %v9202_v32 = vrot.slane %v7155_v57, 1  ;;  %v9203_v45 = vrot.slane %v7158_v14, 1 }
 0x2b7   : > { %v2304_v29 = vadd.f32 %v9198_v51, %v2268_v23  ;;  %v2305_v41 = vadd.f32 %v9199_v10, %v2269_v53  ;;  %v2317_v8 = vadd.f32 %v9200_v12, %v2275_v17  ;;  %v2316_v30 = vadd.f32 %v9201_v21, %v2274_v1  ;;  %v9218_v1 = vld [vmem:[#allocation174_spill] sm:$0xff] }
 0x2b8   : > { %v2328_v42 = vadd.f32 %v9202_v32, %v2280_v11  ;;  %v2329_v52 = vadd.f32 %v9203_v45, %v2281_v33  ;;  %v9204_v4 = vrot.slane %v7291_v50, 1  ;;  %v9205_v9 = vrot.slane %v7302_v15, 1  ;;  %v9230_v32 = vld [vmem:[#allocation58_spill] sm:$0xff] }
 0x2b9   : > { %v9206_v40 = vrot.slane %v7310_v22, 1  ;;  %v9207_v26 = vrot.slane %v7315_v56, 1  ;;  %v9208_v47 = vrot.slane %v7321_v59, 1  ;;  %v9209_v14 = vrot.slane %v7328_v43, 1  ;;  %v9216_v43 = vld [vmem:[#allocation173_spill] sm:$0xff] }
 0x2ba   : > { %v2340_v36 = vadd.f32 %v9204_v4, %v2292_v31  ;;  %v2341_v55 = vadd.f32 %v9205_v9, %v2293_v37  ;;  %v9210_v50 = vrot.slane %v7333_v63, 1  ;;  %v9211_v15 = vrot.slane %v7341_v46, 1 }
 0x2bb   : > { %v2352_v49 = vadd.f32 %v9206_v40, %v2304_v29  ;;  %v2353_v24 = vadd.f32 %v9207_v26, %v2305_v41  ;;  %v2364_v57 = vadd.f32 %v9208_v47, %v2316_v30  ;;  %v2365_v16 = vadd.f32 %v9209_v14, %v2317_v8  ;;  %v9228_v41 = vld [vmem:[#allocation57_spill] sm:$0xff]  ;;  %v9235_v40 = vld [vmem:[#allocation88_spill] sm:$0xff] }
 0x2bc   : > { %v2376_v54 = vadd.f32 %v9210_v50, %v2328_v42  ;;  %v2377_v18 = vadd.f32 %v9211_v15, %v2329_v52  ;;  %v9212_v22 = vrot.slane %v7228_v3, 1  ;;  %v9213_v56 = vrot.slane %v7233_v58, 1  ;;  %v9220_v3 = vld [vmem:[#allocation175_spill] sm:$0xff]  ;;  %v9222_v58 = vld [vmem:[#allocation54_spill] sm:$0xff]  ;;  %v9232_v52 = vld [vmem:[#allocation53_spill] sm:$0xff] }
 0x2bd   : > { %v9214_v34 = vrot.slane %v7238_v19, 1  ;;  %v9215_v59 = vrot.slane %v7243_v35, 1  ;;  %v9217_v63 = vrot.slane %v9216_v43, 1  ;;  %v9219_v46 = vrot.slane %v9218_v1, 1  ;;  %v9224_v19 = vld [vmem:[#allocation55_spill] sm:$0xff]  ;;  %v9226_v35 = vld [vmem:[#allocation56_spill] sm:$0xff] }
 0x2be   : > { %v2388_v5 = vadd.f32 %v9212_v22, %v2340_v36  ;;  %v2389_v0 = vadd.f32 %v9213_v56, %v2341_v55  ;;  %v2420_v11 = vrot.slane %v2416_v25, 1  ;;  %v9221_v33 = vrot.slane %v9220_v3, 1  ;;  %v9233_v36 = vld [vmem:[#allocation87_spill] sm:$0xff]  ;;  %v9241_v15 = vld [vmem:[#allocation108_spill] sm:$0xff] }
 0x2bf   : > { %v2400_v48 = vadd.f32 %v9214_v34, %v2352_v49  ;;  %v2401_v23 = vadd.f32 %v9215_v59, %v2353_v24  ;;  %v2412_v53 = vadd.f32 %v9217_v63, %v2364_v57  ;;  %v2413_v17 = vadd.f32 %v9219_v46, %v2365_v16  ;;  %v9237_v24 = vld [vmem:[#allocation89_spill] sm:$0xff]  ;;  %v9239_v16 = vld [vmem:[#allocation106_spill] sm:$0xff] }
 0x2c0   : > { %v2425_v27 = vadd.f32 %v9221_v33, %v2377_v18  ;;  %v9223_v31 = vrot.slane %v9222_v58, 1  ;;  %v9225_v37 = vrot.slane %v9224_v19, 1  ;;  %v9227_v29 = vrot.slane %v9226_v35, 1 }
 0x2c1   : > { %v9229_v12 = vrot.slane %v9228_v41, 1  ;;  %v2424_v21 = vadd.f32 %v2420_v11, %v2376_v54  ;;  %v2456_v30 = vrot.slane %v2452_v6, 1  ;;  %v9231_v25 = vrot.slane %v9230_v32, 1  ;;  %v9245_v11 = vld [vmem:[#allocation109_spill] sm:$0xff] }
 0x2c2   : > { %v2436_v20 = vadd.f32 %v9223_v31, %v2388_v5  ;;  %v2437_v51 = vadd.f32 %v9225_v37, %v2389_v0  ;;  %v2448_v10 = vadd.f32 %v9227_v29, %v2400_v48  ;;  %v2464_v45 = vmul.f32 %v2463_v60, %v7353_v39  ;;  %v9243_v48 = vld [vmem:[#allocation107_spill] sm:$0xff] }
 0x2c3   : > { %v2449_v8 = vadd.f32 %v9229_v12, %v2401_v23  ;;  %v2461_v42 = vadd.f32 %v9231_v25, %v2413_v17  ;;  %v2465_v4 = vmul.f32 %v2463_v60, %v9232_v52  ;;  %v9234_v9 = vrot.slane %v9233_v36, 1 }
 0x2c4   : > { %v9236_v49 = vrot.slane %v9235_v40, 1  ;;  %v9238_v47 = vrot.slane %v9237_v24, 1  ;;  %v2460_v57 = vadd.f32 %v2456_v30, %v2412_v53  ;;  %v2468_v14 = vrot.slane %v2464_v45, 1 }
 0x2c5   : > { %v2484_v55 = vadd.f32 %v9234_v9, %v2436_v20  ;;  %v9240_v50 = vrot.slane %v9239_v16, 1  ;;  %v9242_v18 = vrot.slane %v9241_v15, 1  ;;  %v2469_v22 = vrot.slane %v2465_v4, 1  ;;  %v9247_v20 = vld [vmem:[#allocation110_spill] sm:$0xff]  ;;  %v9250_v4 = vld [vmem:[#allocation60_spill] sm:$0xff] }
 0x2c6   : > { %v2485_v26 = vadd.f32 %v9236_v49, %v2437_v51  ;;  %v2496_v6 = vadd.f32 %v9238_v47, %v2448_v10  ;;  %v2524_v5 = vmul.f32 %v2523_v44, %v7477_v61  ;;  %v2525_v56 = vmul.f32 %v2523_v44, %v7481_v2 }
 0x2c7   : > { %v2497_v54 = vadd.f32 %v9240_v50, %v2449_v8  ;;  %v2509_v60 = vadd.f32 %v9242_v18, %v2461_v42  ;;  %v2535_v0 = vstv %s7588_s1  ;;  %v2472_v34 = vadd.f32 %v2468_v14, %v2424_v21  ;;  %v9249_v42 = vld [vmem:[#allocation59_spill] sm:$0xff]  ;;  %s7784_s1 = sld [smem:[#allocation10 + $0x17]] }
 0x2c8   : > { %v9244_v59 = vrot.slane %v9243_v48, 1  ;;  %v2536_v43 = vmul.f32 %v2535_v0, %v7477_v61  ;;  %v2537_v63 = vmul.f32 %v2535_v0, %v7481_v2  ;;  %v2473_v53 = vadd.f32 %v2469_v22, %v2425_v27 }
 0x2c9   : > { %v2528_v1 = vrot.slane %v2524_v5, 1  ;;  %v2529_v46 = vrot.slane %v2525_v56, 1  ;;  %v2547_v17 = vstv %s7606_s21  ;;  %v9246_v3 = vrot.slane %v9245_v11, 1  ;;  %s7794_s21 = sld [smem:[#allocation10 + $0x3b]] }
 0x2ca   : > { %v2508_v23 = vadd.f32 %v9244_v59, %v2460_v57  ;;  %v2540_v44 = vrot.slane %v2536_v43, 1  ;;  %v2541_v58 = vrot.slane %v2537_v63, 1  ;;  %v2548_v31 = vmul.f32 %v2547_v17, %v7477_v61 }
 0x2cb   : > { %v2520_v33 = vadd.f32 %v9246_v3, %v2472_v34  ;;  %v9248_v19 = vrot.slane %v9247_v20, 1  ;;  %v2532_v51 = vadd.f32 %v2528_v1, %v2484_v55  ;;  %v2533_v27 = vadd.f32 %v2529_v46, %v2485_v26 }
 0x2cc   : > { %v2549_v35 = vmul.f32 %v2547_v17, %v7481_v2  ;;  %v2544_v29 = vadd.f32 %v2540_v44, %v2496_v6  ;;  %v2545_v10 = vadd.f32 %v2541_v58, %v2497_v54  ;;  %v2552_v41 = vrot.slane %v2548_v31, 1 }
 0x2cd   : > { %v2521_v37 = vadd.f32 %v9248_v19, %v2473_v53  ;;  %v2559_v12 = vstv %s7625_s10  ;;  %v2571_v32 = vstv %s7634_s15  ;;  %v2583_v9 = vstv %s7640_s22  ;;  %s7799_s10 = sld [smem:[#allocation10 + $0x5f]] }
 0x2ce   : > { %v2553_v8 = vrot.slane %v2549_v35, 1  ;;  %v2560_v21 = vmul.f32 %v2559_v12, %v7477_v61  ;;  %v2561_v30 = vmul.f32 %v2559_v12, %v7481_v2  ;;  %v2556_v25 = vadd.f32 %v2552_v41, %v2508_v23  ;;  %s7804_s15 = sld [smem:[#allocation10 + $0x83]] }
 0x2cf   : > { %v2572_v45 = vmul.f32 %v2571_v32, %v9249_v42  ;;  %v2573_v36 = vmul.f32 %v2571_v32, %v9250_v4  ;;  %v2584_v26 = vmul.f32 %v2583_v9, %v9249_v42  ;;  %v2585_v6 = vmul.f32 %v2583_v9, %v9250_v4  ;;  %s7808_s22 = sld [smem:[#allocation10 + $0x18]] }
 0x2d0   : > { %v2557_v55 = vadd.f32 %v2553_v8, %v2509_v60  ;;  %v2564_v40 = vrot.slane %v2560_v21, 1  ;;  %v2565_v49 = vrot.slane %v2561_v30, 1  ;;  %v2595_v57 = vstv %s7653_s8  ;;  %s7816_s8 = sld [smem:[#allocation10 + $0x3c]] }
 0x2d1   : > { %v2576_v24 = vrot.slane %v2572_v45, 1  ;;  %v2577_v47 = vrot.slane %v2573_v36, 1  ;;  %v2588_v50 = vrot.slane %v2584_v26, 1  ;;  %v2596_v54 = vmul.f32 %v2595_v57, %v9249_v42 }
 0x2d2   : > { %v2568_v14 = vadd.f32 %v2564_v40, %v2520_v33  ;;  %v2569_v16 = vadd.f32 %v2565_v49, %v2521_v37  ;;  %v2589_v60 = vrot.slane %v2585_v6, 1  ;;  %v2597_v22 = vmul.f32 %v2595_v57, %v9250_v4 }
 0x2d3   : > { %v2580_v15 = vadd.f32 %v2576_v24, %v2532_v51  ;;  %v2581_v18 = vadd.f32 %v2577_v47, %v2533_v27  ;;  %v2592_v5 = vadd.f32 %v2588_v50, %v2544_v29  ;;  %v2600_v56 = vrot.slane %v2596_v54, 1 }
 0x2d4   : > { %v2607_v0 = vstv %s7659_s9  ;;  %v2619_v34 = vstv %s7664_s12  ;;  %v2593_v48 = vadd.f32 %v2589_v60, %v2545_v10  ;;  %v2601_v59 = vrot.slane %v2597_v22, 1  ;;  %s7826_s9 = sld [smem:[#allocation10 + $0x60]] }
 0x2d5   : > { %v2608_v23 = vmul.f32 %v2607_v0, %v9249_v42  ;;  %v2609_v43 = vmul.f32 %v2607_v0, %v9250_v4  ;;  %v2604_v63 = vadd.f32 %v2600_v56, %v2556_v25  ;;  %v2620_v53 = vmul.f32 %v2619_v34, %v7512_v62  ;;  %s7835_s12 = sld [smem:[#allocation10 + $0x84]] }
 0x2d6   : > { %v2621_v1 = vmul.f32 %v2619_v34, %v7520_v13  ;;  %v2631_v46 = vstv %s7670_s13  ;;  %v2605_v17 = vadd.f32 %v2601_v59, %v2557_v55  ;;  %v2643_v20 = vstv %s7676_s2  ;;  %s7838_s13 = sld [smem:[#allocation10 + $0x19]] }
 0x2d7   : > { %v2612_v11 = vrot.slane %v2608_v23, 1  ;;  %v2613_v3 = vrot.slane %v2609_v43, 1  ;;  %v2632_v33 = vmul.f32 %v2631_v46, %v7512_v62  ;;  %v2624_v44 = vrot.slane %v2620_v53, 1  ;;  %s7844_s2 = sld [smem:[#allocation10 + $0x3d]] }
 0x2d8   : > { %v2625_v58 = vrot.slane %v2621_v1, 1  ;;  %v2633_v31 = vmul.f32 %v2631_v46, %v7520_v13  ;;  %v2644_v27 = vmul.f32 %v2643_v20, %v7512_v62  ;;  %v2645_v41 = vmul.f32 %v2643_v20, %v7520_v13 }
 0x2d9   : > { %v2616_v19 = vadd.f32 %v2612_v11, %v2568_v14  ;;  %v2617_v37 = vadd.f32 %v2613_v3, %v2569_v16  ;;  %v2636_v51 = vrot.slane %v2632_v33, 1  ;;  %v2628_v35 = vadd.f32 %v2624_v44, %v2580_v15  ;;  %v9252_v3 = vld [vmem:[#allocation153_spill] sm:$0xff] }
 0x2da   : > { %v2629_v29 = vadd.f32 %v2625_v58, %v2581_v18  ;;  %v2637_v10 = vrot.slane %v2633_v31, 1  ;;  %v2648_v8 = vrot.slane %v2644_v27, 1  ;;  %v2655_v21 = vstv %s7681_s3  ;;  %s7850_s3 = sld [smem:[#allocation10 + $0x61]] }
 0x2db   : > { %v2640_v12 = vadd.f32 %v2636_v51, %v2592_v5  ;;  %v2667_v30 = vstv %s7684_s4  ;;  %v2649_v25 = vrot.slane %v2645_v41, 1  ;;  %v2656_v45 = vmul.f32 %v2655_v21, %v7512_v62  ;;  %s7855_s4 = sld [smem:[#allocation10 + $0x85]] }
 0x2dc   : > { %v2641_v32 = vadd.f32 %v2637_v10, %v2593_v48  ;;  %v2657_v36 = vmul.f32 %v2655_v21, %v7520_v13  ;;  %v2652_v9 = vadd.f32 %v2648_v8, %v2604_v63  ;;  %v2668_v55 = vmul.f32 %v2667_v30, %v7548_v38 }
 0x2dd   : > { %v2669_v40 = vmul.f32 %v2667_v30, %v7552_v7  ;;  %v2679_v49 = vstv %s7690_s19  ;;  %v2653_v26 = vadd.f32 %v2649_v25, %v2605_v17  ;;  %v2660_v24 = vrot.slane %v2656_v45, 1  ;;  %v9251_v17 = vld [vmem:[#allocation135_spill] sm:$0xff]  ;;  %s7858_s19 = sld [smem:[#allocation10 + $0x1a]] }
 0x2de   : > { %v2661_v47 = vrot.slane %v2657_v36, 1  ;;  %v2680_v6 = vmul.f32 %v2679_v49, %v7548_v38  ;;  %v2672_v57 = vrot.slane %v2668_v55, 1  ;;  %v2681_v16 = vmul.f32 %v2679_v49, %v7552_v7 }
 0x2df   : > { %v2673_v14 = vrot.slane %v2669_v40, 1  ;;  %v2691_v50 = vstv %s7696_s16  ;;  %v2664_v54 = vadd.f32 %v2660_v24, %v2616_v19  ;;  %v2703_v59 = vstv %s7704_s27  ;;  %s7864_s16 = sld [smem:[#allocation10 + $0x3e]] }
 0x2e0   : > { %v2665_v15 = vadd.f32 %v2661_v47, %v2617_v37  ;;  %v2684_v18 = vrot.slane %v2680_v6, 1  ;;  %v2692_v60 = vmul.f32 %v2691_v50, %v7548_v38  ;;  %v2676_v22 = vadd.f32 %v2672_v57, %v2628_v35  ;;  %v9253_v47 = vld [vmem:[#allocation172_spill] sm:$0xff]  ;;  %v9254_v57 = vld [vmem:[#allocation154_spill] sm:$0xff]  ;;  %s7875_s27 = sld [smem:[#allocation10 + $0x1b]] }
 0x2e1   : > { %v2677_v5 = vadd.f32 %v2673_v14, %v2629_v29  ;;  %v2685_v56 = vrot.slane %v2681_v16, 1  ;;  %v2693_v0 = vmul.f32 %v2691_v50, %v7552_v7  ;;  %v2715_v23 = vstv %s7701_s23  ;;  %s7870_s23 = sld [smem:[#allocation10 + $0x62]] }
 0x2e2   : > { %v2688_v34 = vadd.f32 %v2684_v18, %v2640_v12  ;;  %v2696_v48 = vrot.slane %v2692_v60, 1  ;;  %v2704_v53 = vmul.f32 %v2703_v59, %v7548_v38  ;;  %v2705_v1 = vmul.f32 %v2703_v59, %v7552_v7 }
 0x2e3   : > { %v2689_v43 = vadd.f32 %v2685_v56, %v2641_v32  ;;  %v2697_v63 = vrot.slane %v2693_v0, 1  ;;  %v2716_v11 = vmul.f32 %v2715_v23, %v9251_v17  ;;  %v2717_v33 = vmul.f32 %v2715_v23, %v9252_v3 }
 0x2e4   : > { %v2700_v46 = vadd.f32 %v2696_v48, %v2652_v9  ;;  %v2727_v44 = vstv %s7710_s5  ;;  %v2708_v31 = vrot.slane %v2704_v53, 1  ;;  %v2709_v20 = vrot.slane %v2705_v1, 1  ;;  %s7878_s5 = sld [smem:[#allocation10 + $0x86]] }
 0x2e5   : > { %v2701_v58 = vadd.f32 %v2697_v63, %v2653_v26  ;;  %v2728_v19 = vmul.f32 %v2727_v44, %v9251_v17  ;;  %v2720_v37 = vrot.slane %v2716_v11, 2  ;;  %v2721_v51 = vrot.slane %v2717_v33, 2 }
 0x2e6   : > { %v2729_v27 = vmul.f32 %v2727_v44, %v9252_v3  ;;  %v2739_v35 = vstv %s7716_s20  ;;  %v2712_v29 = vadd.f32 %v2708_v31, %v2664_v54  ;;  %v2713_v10 = vadd.f32 %v2709_v20, %v2665_v15  ;;  %s7884_s20 = sld [smem:[#allocation10 + $0x3f]] }
 0x2e7   : > { %v2732_v41 = vrot.slane %v2728_v19, 2  ;;  %v2740_v12 = vmul.f32 %v2739_v35, %v9251_v17  ;;  %v2724_v8 = vadd.f32 %v2720_v37, %v2676_v22  ;;  %v2725_v21 = vadd.f32 %v2721_v51, %v2677_v5  ;;  %v9255_v51 = vld [vmem:[#allocation171_spill] sm:$0xff] }
 0x2e8   : > { %v2733_v30 = vrot.slane %v2729_v27, 2  ;;  %v2741_v32 = vmul.f32 %v2739_v35, %v9252_v3  ;;  %v2751_v36 = vstv %s7721_s25  ;;  %v2763_v9 = vstv %s7724_s29  ;;  %s7890_s25 = sld [smem:[#allocation10 + $0x63]] }
 0x2e9   : > { %v2736_v25 = vadd.f32 %v2732_v41, %v2688_v34  ;;  %v2744_v45 = vrot.slane %v2740_v12, 2  ;;  %v2752_v49 = vmul.f32 %v2751_v36, %v9251_v17  ;;  %v2753_v26 = vmul.f32 %v2751_v36, %v9252_v3  ;;  %s7895_s29 = sld [smem:[#allocation10 + $0x87]] }
 0x2ea   : > { %v2737_v55 = vadd.f32 %v2733_v30, %v2689_v43  ;;  %v2745_v40 = vrot.slane %v2741_v32, 2  ;;  %v2764_v6 = vmul.f32 %v2763_v9, %v9253_v47  ;;  %v2765_v14 = vmul.f32 %v2763_v9, %v9254_v57 }
 0x2eb   : > { %v2748_v24 = vadd.f32 %v2744_v45, %v2700_v46  ;;  %v2775_v16 = vstv %s7730_s30  ;;  %v2756_v54 = vrot.slane %v2752_v49, 2  ;;  %v2757_v15 = vrot.slane %v2753_v26, 2  ;;  %s7898_s30 = sld [smem:[#allocation10 + $0x1c]] }
 0x2ec   : > { %v2749_v50 = vadd.f32 %v2745_v40, %v2701_v58  ;;  %v2776_v18 = vmul.f32 %v2775_v16, %v9253_v47  ;;  %v2768_v60 = vrot.slane %v2764_v6, 2  ;;  %v2769_v22 = vrot.slane %v2765_v14, 2 }
 0x2ed   : > { %v2777_v5 = vmul.f32 %v2775_v16, %v9254_v57  ;;  %v2787_v56 = vstv %s7736_s26  ;;  %v2760_v0 = vadd.f32 %v2756_v54, %v2712_v29  ;;  %v2761_v34 = vadd.f32 %v2757_v15, %v2713_v10  ;;  %s7904_s26 = sld [smem:[#allocation10 + $0x40]] }
 0x2ee   : > { %v2780_v48 = vrot.slane %v2776_v18, 2  ;;  %v2788_v59 = vmul.f32 %v2787_v56, %v9253_v47  ;;  %v2772_v23 = vadd.f32 %v2768_v60, %v2724_v8  ;;  %v2773_v43 = vadd.f32 %v2769_v22, %v2725_v21 }
 0x2ef   : > { %v2781_v63 = vrot.slane %v2777_v5, 2  ;;  %v2789_v53 = vmul.f32 %v2787_v56, %v9254_v57  ;;  %v2799_v11 = vstv %s7741_s6  ;;  %v2811_v33 = vstv %s7744_s24  ;;  %s7910_s6 = sld [smem:[#allocation10 + $0x64]] }
 0x2f0   : > { %v2784_v1 = vadd.f32 %v2780_v48, %v2736_v25  ;;  %v2792_v46 = vrot.slane %v2788_v59, 2  ;;  %v2800_v31 = vmul.f32 %v2799_v11, %v9253_v47  ;;  %v2801_v20 = vmul.f32 %v2799_v11, %v9254_v57  ;;  %s7915_s24 = sld [smem:[#allocation10 + $0x88]] }
 0x2f1   : > { %v2785_v44 = vadd.f32 %v2781_v63, %v2737_v55  ;;  %v2793_v58 = vrot.slane %v2789_v53, 2  ;;  %v2812_v37 = vmul.f32 %v2811_v33, %v7180_v28  ;;  %v2813_v27 = vmul.f32 %v2811_v33, %v9255_v51 }
 0x2f2   : > { %v2796_v19 = vadd.f32 %v2792_v46, %v2748_v24  ;;  %v2823_v35 = vstv %s7750_s28  ;;  %v2804_v10 = vrot.slane %v2800_v31, 2  ;;  %v2805_v41 = vrot.slane %v2801_v20, 2  ;;  %s7918_s28 = sld [smem:[#allocation10 + $0x1d]] }
 0x2f3   : > { %v2797_v29 = vadd.f32 %v2793_v58, %v2749_v50  ;;  %v2824_v12 = vmul.f32 %v2823_v35, %v7180_v28  ;;  %v2816_v8 = vrot.slane %v2812_v37, 2  ;;  %v2817_v21 = vrot.slane %v2813_v27, 2 }
 0x2f4   : > { %v2825_v30 = vmul.f32 %v2823_v35, %v9255_v51  ;;  %v2835_v32 = vstv %s7756_s7  ;;  %v2808_v25 = vadd.f32 %v2804_v10, %v2760_v0  ;;  %v2809_v45 = vadd.f32 %v2805_v41, %v2761_v34  ;;  %s7924_s7 = sld [smem:[#allocation10 + $0x41]] }
 0x2f5   : > { %v2828_v36 = vrot.slane %v2824_v12, 2  ;;  %v2836_v9 = vmul.f32 %v2835_v32, %v7180_v28  ;;  %v2820_v55 = vadd.f32 %v2816_v8, %v2772_v23  ;;  %v2821_v40 = vadd.f32 %v2817_v21, %v2773_v43  ;;  %v9256_v21 = vld [vmem:[#allocation111_spill] sm:$0xff] }
 0x2f6   : > { %v2829_v49 = vrot.slane %v2825_v30, 2  ;;  %v2837_v26 = vmul.f32 %v2835_v32, %v9255_v51  ;;  %v2847_v14 = vstv %s7761_s14  ;;  %v2859_v16 = vstv %s7764_s0  ;;  %s7930_s14 = sld [smem:[#allocation10 + $0x65]] }
 0x2f7   : > { %v2832_v24 = vadd.f32 %v2828_v36, %v2784_v1  ;;  %v2840_v6 = vrot.slane %v2836_v9, 2  ;;  %v2848_v15 = vmul.f32 %v2847_v14, %v7180_v28  ;;  %v2849_v18 = vmul.f32 %v2847_v14, %v9255_v51  ;;  %v9259_v36 = vld [vmem:[#allocation134_spill] sm:$0xff]  ;;  %v9262_v14 = vld [vmem:[#allocation129_spill] sm:$0xff]  ;;  %s7935_s0 = sld [smem:[#allocation10 + $0x89]] }
 0x2f8   : > { %v2833_v50 = vadd.f32 %v2829_v49, %v2785_v44  ;;  %v2841_v54 = vrot.slane %v2837_v26, 2  ;;  %v2860_v22 = vmul.f32 %v2859_v16, %v7353_v39  ;;  %v2861_v5 = vmul.f32 %v2859_v16, %v9232_v52  ;;  %v9260_v26 = vld [vmem:[#allocation128_spill] sm:$0xff] }
 0x2f9   : > { %v2844_v60 = vadd.f32 %v2840_v6, %v2796_v19  ;;  %v2871_v56 = vstv %s7770_s11  ;;  %v2852_v34 = vrot.slane %v2848_v15, 2  ;;  %v2853_v48 = vrot.slane %v2849_v18, 2  ;;  %s7938_s11 = sld [smem:[#allocation10 + $0x1e]] }
 0x2fa   : > { %v2845_v0 = vadd.f32 %v2841_v54, %v2797_v29  ;;  %v2872_v59 = vmul.f32 %v2871_v56, %v7353_v39  ;;  %v2864_v23 = vrot.slane %v2860_v22, 2  ;;  %v2865_v43 = vrot.slane %v2861_v5, 2  ;;  %v9264_v5 = vld [vmem:[#allocation130_spill] sm:$0xff] }
 0x2fb   : > { %v2873_v63 = vmul.f32 %v2871_v56, %v9232_v52  ;;  %v2883_v53 = vstv %s7776_s17  ;;  %v2856_v1 = vadd.f32 %v2852_v34, %v2808_v25  ;;  %v2857_v46 = vadd.f32 %v2853_v48, %v2809_v45  ;;  %v9258_v25 = vld [vmem:[#allocation133_spill] sm:$0xff]  ;;  %v9266_v48 = vld [vmem:[#allocation131_spill] sm:$0xff]  ;;  %s7944_s17 = sld [smem:[#allocation10 + $0x42]] }
 0x2fc   : > { %v2876_v11 = vrot.slane %v2872_v59, 2  ;;  %v2884_v33 = vmul.f32 %v2883_v53, %v7353_v39  ;;  %v2868_v44 = vadd.f32 %v2864_v23, %v2820_v55  ;;  %v2869_v58 = vadd.f32 %v2865_v43, %v2821_v40 }
 0x2fd   : > { %v2877_v31 = vrot.slane %v2873_v63, 2  ;;  %v2885_v20 = vmul.f32 %v2883_v53, %v9232_v52  ;;  %v2895_v27 = vstv %s7781_s18  ;;  %v2955_v35 = vstv %s7784_s1  ;;  %s7950_s18 = sld [smem:[#allocation10 + $0x66]] }
 0x2fe   : > { %v2880_v19 = vadd.f32 %v2876_v11, %v2832_v24  ;;  %v2888_v37 = vrot.slane %v2884_v33, 2  ;;  %v2896_v41 = vmul.f32 %v2895_v27, %v7353_v39  ;;  %v2897_v12 = vmul.f32 %v2895_v27, %v9232_v52  ;;  %v9268_v11 = vld [vmem:[#allocation132_spill] sm:$0xff]  ;;  %s7955_s1 = sld [smem:[#allocation10 + $0x1f]] }
 0x2ff   : > { %v2881_v29 = vadd.f32 %v2877_v31, %v2833_v50  ;;  %v2889_v10 = vrot.slane %v2885_v20, 2  ;;  %v9257_v30 = vrot.slane %v9256_v21, 2  ;;  %v2948_v45 = vrot.slane %v9258_v25, 2 }
 0x300   : > { %v2892_v8 = vadd.f32 %v2888_v37, %v2844_v60  ;;  %v2949_v9 = vrot.slane %v9259_v36, 2  ;;  %v2900_v40 = vrot.slane %v2896_v41, 2  ;;  %v2901_v49 = vrot.slane %v2897_v12, 2 }
 0x301   : > { %v2916_v32 = vadd.f32 %v9257_v30, %v2868_v44  ;;  %v2893_v55 = vadd.f32 %v2889_v10, %v2845_v0  ;;  %v9261_v24 = vrot.slane %v9260_v26, 2  ;;  %v9263_v16 = vrot.slane %v9262_v14, 2 }
 0x302   : > { %v2956_v54 = vmul.f32 %v2955_v35, %v7477_v61  ;;  %v2957_v15 = vmul.f32 %v2955_v35, %v7481_v2  ;;  %v2967_v18 = vstv %s7794_s21  ;;  %v2904_v60 = vadd.f32 %v2900_v40, %v2856_v1  ;;  %s7958_s21 = sld [smem:[#allocation10 + $0x8a]] }
 0x303   : > { %v2917_v6 = vadd.f32 %v9261_v24, %v2869_v58  ;;  %v2928_v50 = vadd.f32 %v9263_v16, %v2880_v19  ;;  %v2905_v22 = vadd.f32 %v2901_v49, %v2857_v46  ;;  %v9265_v56 = vrot.slane %v9264_v5, 2 }
 0x304   : > { %v2968_v34 = vmul.f32 %v2967_v18, %v7477_v61  ;;  %v9267_v59 = vrot.slane %v9266_v48, 2  ;;  %v2960_v43 = vrot.slane %v2956_v54, 2  ;;  %v2969_v63 = vmul.f32 %v2967_v18, %v7481_v2 }
 0x305   : > { %v2929_v0 = vadd.f32 %v9265_v56, %v2881_v29  ;;  %v2979_v53 = vstv %s7799_s10  ;;  %v9269_v33 = vrot.slane %v9268_v11, 2  ;;  %v2952_v46 = vadd.f32 %v2948_v45, %v2904_v60  ;;  %s7964_s10 = sld [smem:[#allocation10 + $0x43]] }
 0x306   : > { %v2940_v23 = vadd.f32 %v9267_v59, %v2892_v8  ;;  %v2961_v44 = vrot.slane %v2957_v15, 2  ;;  %v2980_v58 = vmul.f32 %v2979_v53, %v7477_v61  ;;  %v2953_v31 = vadd.f32 %v2949_v9, %v2905_v22 }
 0x307   : > { %v2941_v1 = vadd.f32 %v9269_v33, %v2893_v55  ;;  %v2964_v20 = vadd.f32 %v2960_v43, %v2916_v32  ;;  %v2972_v19 = vrot.slane %v2968_v34, 2  ;;  %v2981_v37 = vmul.f32 %v2979_v53, %v7481_v2 }
 0x308   : > { %v2965_v27 = vadd.f32 %v2961_v44, %v2917_v6  ;;  %v2973_v35 = vrot.slane %v2969_v63, 2  ;;  %v2991_v29 = vstv %s7804_s15  ;;  %v3003_v10 = vstv %s7808_s22  ;;  %s7970_s15 = sld [smem:[#allocation10 + $0x67]] }
 0x309   : > { %v2976_v41 = vadd.f32 %v2972_v19, %v2928_v50  ;;  %v2984_v12 = vrot.slane %v2980_v58, 2  ;;  %v2992_v8 = vmul.f32 %v2991_v29, %v7477_v61  ;;  %v2993_v21 = vmul.f32 %v2991_v29, %v7481_v2  ;;  %s7975_s22 = sld [smem:[#allocation10 + $0x8b]] }
 0x30a   : > { %v2977_v30 = vadd.f32 %v2973_v35, %v2929_v0  ;;  %v3004_v32 = vmul.f32 %v3003_v10, %v9249_v42  ;;  %v3005_v25 = vmul.f32 %v3003_v10, %v9250_v4  ;;  %v3015_v45 = vstv %s7816_s8  ;;  %s7978_s8 = sld [smem:[#allocation10 + $0x20]] }
 0x30b   : > { %v2985_v36 = vrot.slane %v2981_v37, 2  ;;  %v2988_v9 = vadd.f32 %v2984_v12, %v2940_v23  ;;  %v2996_v55 = vrot.slane %v2992_v8, 2  ;;  %v3016_v40 = vmul.f32 %v3015_v45, %v9249_v42 }
 0x30c   : > { %v2997_v49 = vrot.slane %v2993_v21, 2  ;;  %v3008_v26 = vrot.slane %v3004_v32, 2  ;;  %v3017_v24 = vmul.f32 %v3015_v45, %v9250_v4  ;;  %v3027_v6 = vstv %s7826_s9  ;;  %s7984_s9 = sld [smem:[#allocation10 + $0x44]] }
 0x30d   : > { %v2989_v14 = vadd.f32 %v2985_v36, %v2941_v1  ;;  %v3000_v16 = vadd.f32 %v2996_v55, %v2952_v46  ;;  %v3009_v50 = vrot.slane %v3005_v25, 2  ;;  %v3028_v54 = vmul.f32 %v3027_v6, %v9249_v42 }
 0x30e   : > { %v3001_v15 = vadd.f32 %v2997_v49, %v2953_v31  ;;  %v3012_v18 = vadd.f32 %v3008_v26, %v2964_v20  ;;  %v3020_v60 = vrot.slane %v3016_v40, 2  ;;  %v3029_v22 = vmul.f32 %v3027_v6, %v9250_v4 }
 0x30f   : > { %v3013_v5 = vadd.f32 %v3009_v50, %v2965_v27  ;;  %v3021_v56 = vrot.slane %v3017_v24, 2  ;;  %v3039_v0 = vstv %s7835_s12  ;;  %v3051_v34 = vstv %s7838_s13  ;;  %s7990_s12 = sld [smem:[#allocation10 + $0x68]] }
 0x310   : > { %v3024_v48 = vadd.f32 %v3020_v60, %v2976_v41  ;;  %v3032_v59 = vrot.slane %v3028_v54, 2  ;;  %v3040_v23 = vmul.f32 %v3039_v0, %v9249_v42  ;;  %v3041_v43 = vmul.f32 %v3039_v0, %v9250_v4  ;;  %s7995_s13 = sld [smem:[#allocation10 + $0x8c]] }
 0x311   : > { %v3025_v63 = vadd.f32 %v3021_v56, %v2977_v30  ;;  %v3052_v53 = vmul.f32 %v3051_v34, %v7512_v62  ;;  %v3053_v11 = vmul.f32 %v3051_v34, %v7520_v13  ;;  %v3063_v33 = vstv %s7844_s2  ;;  %s7998_s2 = sld [smem:[#allocation10 + $0x21]] }
 0x312   : > { %v3033_v1 = vrot.slane %v3029_v22, 2  ;;  %v3036_v46 = vadd.f32 %v3032_v59, %v2988_v9  ;;  %v3044_v44 = vrot.slane %v3040_v23, 2  ;;  %v3064_v58 = vmul.f32 %v3063_v33, %v7512_v62 }
 0x313   : > { %v3045_v31 = vrot.slane %v3041_v43, 2  ;;  %v3056_v20 = vrot.slane %v3052_v53, 2  ;;  %v3065_v19 = vmul.f32 %v3063_v33, %v7520_v13  ;;  %v3075_v37 = vstv %s7850_s3  ;;  %s8004_s3 = sld [smem:[#allocation10 + $0x45]] }
 0x314   : > { %v3037_v27 = vadd.f32 %v3033_v1, %v2989_v14  ;;  %v3048_v35 = vadd.f32 %v3044_v44, %v3000_v16  ;;  %v3057_v29 = vrot.slane %v3053_v11, 2  ;;  %v3076_v10 = vmul.f32 %v3075_v37, %v7512_v62 }
 0x315   : > { %v3049_v41 = vadd.f32 %v3045_v31, %v3001_v15  ;;  %v3060_v12 = vadd.f32 %v3056_v20, %v3012_v18  ;;  %v3068_v8 = vrot.slane %v3064_v58, 2  ;;  %v3077_v21 = vmul.f32 %v3075_v37, %v7520_v13 }
 0x316   : > { %v3061_v30 = vadd.f32 %v3057_v29, %v3013_v5  ;;  %v3069_v32 = vrot.slane %v3065_v19, 2  ;;  %v3087_v25 = vstv %s7855_s4  ;;  %v3099_v45 = vstv %s7858_s19  ;;  %s8010_s4 = sld [smem:[#allocation10 + $0x69]] }
 0x317   : > { %v3072_v36 = vadd.f32 %v3068_v8, %v3024_v48  ;;  %v3080_v9 = vrot.slane %v3076_v10, 2  ;;  %v3088_v55 = vmul.f32 %v3087_v25, %v7512_v62  ;;  %v3089_v40 = vmul.f32 %v3087_v25, %v7520_v13  ;;  %s8015_s19 = sld [smem:[#allocation10 + $0x8d]] }
 0x318   : > { %v3073_v49 = vadd.f32 %v3069_v32, %v3025_v63  ;;  %v3100_v26 = vmul.f32 %v3099_v45, %v7548_v38  ;;  %v3101_v24 = vmul.f32 %v3099_v45, %v7552_v7  ;;  %v3111_v6 = vstv %s7864_s16  ;;  %s8018_s16 = sld [smem:[#allocation10 + $0x22]] }
 0x319   : > { %v3081_v14 = vrot.slane %v3077_v21, 2  ;;  %v3084_v16 = vadd.f32 %v3080_v9, %v3036_v46  ;;  %v3092_v50 = vrot.slane %v3088_v55, 2  ;;  %v3112_v54 = vmul.f32 %v3111_v6, %v7548_v38 }
 0x31a   : > { %v3093_v15 = vrot.slane %v3089_v40, 2  ;;  %v3104_v18 = vrot.slane %v3100_v26, 2  ;;  %v3113_v60 = vmul.f32 %v3111_v6, %v7552_v7  ;;  %v3123_v22 = vstv %s7870_s23  ;;  %s8024_s23 = sld [smem:[#allocation10 + $0x46]] }
 0x31b   : > { %v3085_v5 = vadd.f32 %v3081_v14, %v3037_v27  ;;  %v3096_v56 = vadd.f32 %v3092_v50, %v3048_v35  ;;  %v3105_v0 = vrot.slane %v3101_v24, 2  ;;  %v3124_v34 = vmul.f32 %v3123_v22, %v7548_v38 }
 0x31c   : > { %v3097_v48 = vadd.f32 %v3093_v15, %v3049_v41  ;;  %v3108_v59 = vadd.f32 %v3104_v18, %v3060_v12  ;;  %v3116_v23 = vrot.slane %v3112_v54, 2  ;;  %v3125_v43 = vmul.f32 %v3123_v22, %v7552_v7 }
 0x31d   : > { %v3109_v63 = vadd.f32 %v3105_v0, %v3061_v30  ;;  %v3117_v53 = vrot.slane %v3113_v60, 2  ;;  %v3135_v11 = vstv %s7878_s5  ;;  %v3147_v33 = vstv %s7875_s27  ;;  %s8030_s27 = sld [smem:[#allocation10 + $0x6a]] }
 0x31e   : > { %v3120_v1 = vadd.f32 %v3116_v23, %v3072_v36  ;;  %v3128_v46 = vrot.slane %v3124_v34, 2  ;;  %v3136_v44 = vmul.f32 %v3135_v11, %v7548_v38  ;;  %v3137_v58 = vmul.f32 %v3135_v11, %v7552_v7  ;;  %s8035_s5 = sld [smem:[#allocation10 + $0x8e]] }
 0x31f   : > { %v3121_v31 = vadd.f32 %v3117_v53, %v3073_v49  ;;  %v3148_v20 = vmul.f32 %v3147_v33, %v9251_v17  ;;  %v3149_v19 = vmul.f32 %v3147_v33, %v9252_v3  ;;  %v3159_v37 = vstv %s7884_s20  ;;  %s8038_s20 = sld [smem:[#allocation10 + $0x23]] }
 0x320   : > { %v3129_v27 = vrot.slane %v3125_v43, 2  ;;  %v3132_v35 = vadd.f32 %v3128_v46, %v3084_v16  ;;  %v3140_v29 = vrot.slane %v3136_v44, 2  ;;  %v3160_v10 = vmul.f32 %v3159_v37, %v9251_v17 }
 0x321   : > { %v3141_v41 = vrot.slane %v3137_v58, 2  ;;  %v3152_v12 = vrot.slane %v3148_v20, 3  ;;  %v3161_v8 = vmul.f32 %v3159_v37, %v9252_v3  ;;  %v3171_v21 = vstv %s7890_s25  ;;  %s8044_s25 = sld [smem:[#allocation10 + $0x47]] }
 0x322   : > { %v3133_v30 = vadd.f32 %v3129_v27, %v3085_v5  ;;  %v3144_v32 = vadd.f32 %v3140_v29, %v3096_v56  ;;  %v3153_v25 = vrot.slane %v3149_v19, 3  ;;  %v3172_v45 = vmul.f32 %v3171_v21, %v9251_v17 }
 0x323   : > { %v3145_v36 = vadd.f32 %v3141_v41, %v3097_v48  ;;  %v3156_v9 = vadd.f32 %v3152_v12, %v3108_v59  ;;  %v3164_v55 = vrot.slane %v3160_v10, 3  ;;  %v3173_v40 = vmul.f32 %v3171_v21, %v9252_v3 }
 0x324   : > { %v3157_v49 = vadd.f32 %v3153_v25, %v3109_v63  ;;  %v3165_v26 = vrot.slane %v3161_v8, 3  ;;  %v3183_v24 = vstv %s7895_s29  ;;  %v3195_v6 = vstv %s7898_s30  ;;  %s8050_s29 = sld [smem:[#allocation10 + $0x6b]] }
 0x325   : > { %v3168_v14 = vadd.f32 %v3164_v55, %v3120_v1  ;;  %v3176_v16 = vrot.slane %v3172_v45, 3  ;;  %v3184_v50 = vmul.f32 %v3183_v24, %v9251_v17  ;;  %v3185_v54 = vmul.f32 %v3183_v24, %v9252_v3  ;;  %s8056_s30 = sld [smem:[#allocation10 + $0x8f]] }
 0x326   : > { %v3169_v15 = vadd.f32 %v3165_v26, %v3121_v31  ;;  %v3196_v18 = vmul.f32 %v3195_v6, %v9253_v47  ;;  %v3197_v60 = vmul.f32 %v3195_v6, %v9254_v57  ;;  %v3207_v22 = vstv %s7904_s26  ;;  %s8060_s26 = sld [smem:[#allocation11]] }
 0x327   : > { %v3177_v5 = vrot.slane %v3173_v40, 3  ;;  %v3180_v56 = vadd.f32 %v3176_v16, %v3132_v35  ;;  %v3188_v0 = vrot.slane %v3184_v50, 3  ;;  %v3208_v34 = vmul.f32 %v3207_v22, %v9253_v47 }
 0x328   : > { %v3189_v48 = vrot.slane %v3185_v54, 3  ;;  %v3200_v17 = vrot.slane %v3196_v18, 3  ;;  %v3209_v3 = vmul.f32 %v3207_v22, %v9254_v57  ;;  %v3219_v59 = vstv %s7910_s6  ;;  %s8064_s6 = sld [smem:[#allocation11 + $0x1]] }
 0x329   : > { %v3181_v23 = vadd.f32 %v3177_v5, %v3133_v30  ;;  %v3192_v43 = vadd.f32 %v3188_v0, %v3144_v32  ;;  %v3201_v63 = vrot.slane %v3197_v60, 3  ;;  %v3220_v53 = vmul.f32 %v3219_v59, %v9253_v47 }
 0x32a   : > { %v3193_v11 = vadd.f32 %v3189_v48, %v3145_v36  ;;  %v3204_v33 = vadd.f32 %v3200_v17, %v3156_v9  ;;  %v3212_v1 = vrot.slane %v3208_v34, 3  ;;  %v3221_v46 = vmul.f32 %v3219_v59, %v9254_v57 }
 0x32b   : > { %v3205_v44 = vadd.f32 %v3201_v63, %v3157_v49  ;;  %v3213_v58 = vrot.slane %v3209_v3, 3  ;;  %v3231_v31 = vstv %s7915_s24  ;;  %v3243_v20 = vstv %s7918_s28  ;;  %s8069_s24 = sld [smem:[#allocation11 + $0x2]] }
 0x32c   : > { %v3216_v19 = vadd.f32 %v3212_v1, %v3168_v14  ;;  %v3224_v37 = vrot.slane %v3220_v53, 3  ;;  %v3232_v27 = vmul.f32 %v3231_v31, %v9253_v47  ;;  %v3233_v35 = vmul.f32 %v3231_v31, %v9254_v57  ;;  %s8072_s28 = sld [smem:[#allocation11 + $0x3]] }
 0x32d   : > { %v3217_v29 = vadd.f32 %v3213_v58, %v3169_v15  ;;  %v3244_v10 = vmul.f32 %v3243_v20, %v7180_v28  ;;  %v3245_v41 = vmul.f32 %v3243_v20, %v9255_v51  ;;  %v3255_v12 = vstv %s7924_s7  ;;  %s9272_s7 = sld [smem:[#allocation24_spill]] }
 0x32e   : > { %v3225_v8 = vrot.slane %v3221_v46, 3  ;;  %v3228_v21 = vadd.f32 %v3224_v37, %v3180_v56  ;;  %v3236_v30 = vrot.slane %v3232_v27, 3  ;;  %v3256_v32 = vmul.f32 %v3255_v12, %v7180_v28 }
 0x32f   : > { %v3237_v25 = vrot.slane %v3233_v35, 3  ;;  %v3248_v47 = vrot.slane %v3244_v10, 3  ;;  %v3257_v57 = vmul.f32 %v3255_v12, %v9255_v51  ;;  %v3267_v45 = vstv %s7930_s14  ;;  %v9270_v12 = vld [vmem:[#allocation85_spill] sm:$0xff]  ;;  %s9273_s14 = sld [smem:[#allocation29_spill]] }
 0x330   : > { %v3229_v36 = vadd.f32 %v3225_v8, %v3181_v23  ;;  %v3240_v9 = vadd.f32 %v3236_v30, %v3192_v43  ;;  %v3249_v55 = vrot.slane %v3245_v41, 3  ;;  %v3268_v40 = vmul.f32 %v3267_v45, %v7180_v28 }
 0x331   : > { %v3241_v49 = vadd.f32 %v3237_v25, %v3193_v11  ;;  %v3252_v26 = vadd.f32 %v3248_v47, %v3204_v33  ;;  %v3260_v24 = vrot.slane %v3256_v32, 3  ;;  %v3269_v6 = vmul.f32 %v3267_v45, %v9255_v51 }
 0x332   : > { %v3253_v14 = vadd.f32 %v3249_v55, %v3205_v44  ;;  %v3261_v16 = vrot.slane %v3257_v57, 3  ;;  %v3279_v50 = vstv %s7935_s0  ;;  %v3291_v54 = vstv %s7938_s11 }
 0x333   : > { %v3264_v15 = vadd.f32 %v3260_v24, %v3216_v19  ;;  %v3272_v18 = vrot.slane %v3268_v40, 3  ;;  %v3280_v60 = vmul.f32 %v3279_v50, %v7180_v28  ;;  %v3281_v22 = vmul.f32 %v3279_v50, %v9255_v51  ;;  %s4072_s0 = sshll.u32 %s9272_s7, 3 }
 0x334   : > { %v3265_v5 = vadd.f32 %v3261_v16, %v3217_v29  ;;  %v3292_v56 = vmul.f32 %v3291_v54, %v7353_v39  ;;  %v3293_v0 = vmul.f32 %v3291_v54, %v9232_v52  ;;  %v3303_v34 = vstv %s7944_s17 }
 0x335   : > { %v3273_v48 = vrot.slane %v3269_v6, 3  ;;  %v3276_v17 = vadd.f32 %v3272_v18, %v3228_v21  ;;  %v3284_v3 = vrot.slane %v3280_v60, 3  ;;  %v3304_v59 = vmul.f32 %v3303_v34, %v7353_v39  ;;  %v9271_v21 = vld [vmem:[#allocation86_spill] sm:$0xff] }
 0x336   : > { %v3285_v23 = vrot.slane %v3281_v22, 3  ;;  %v3296_v28 = vrot.slane %v3292_v56, 3  ;;  %v3305_v51 = vmul.f32 %v3303_v34, %v9232_v52  ;;  %v3315_v43 = vstv %s7950_s18  ;;  %s9274_s18 = sld [smem:[#allocation205_spill]] }
 0x337   : > { %v3277_v63 = vadd.f32 %v3273_v48, %v3229_v36  ;;  %v3288_v53 = vadd.f32 %v3284_v3, %v3240_v9  ;;  %v3297_v11 = vrot.slane %v3293_v0, 3  ;;  %v3316_v33 = vmul.f32 %v3315_v43, %v7353_v39 }
 0x338   : > { %v3289_v1 = vadd.f32 %v3285_v23, %v3241_v49  ;;  %v3300_v46 = vadd.f32 %v3296_v28, %v3252_v26  ;;  %v3308_v44 = vrot.slane %v3304_v59, 3  ;;  %v3317_v58 = vmul.f32 %v3315_v43, %v9232_v52 }
 0x339   : > { %v3301_v31 = vadd.f32 %v3297_v11, %v3253_v14  ;;  %v3309_v20 = vrot.slane %v3305_v51, 3  ;;  %v3327_v19 = vstv %s7958_s21  ;;  %v3339_v37 = vstv %s7955_s1 }
 0x33a   : > { %v3312_v27 = vadd.f32 %v3308_v44, %v3264_v15  ;;  %v3320_v35 = vrot.slane %v3316_v33, 3  ;;  %v3328_v29 = vmul.f32 %v3327_v19, %v7353_v39  ;;  %v3329_v10 = vmul.f32 %v3327_v19, %v9232_v52 }
 0x33b   : > { %v3313_v41 = vadd.f32 %v3309_v20, %v3265_v5  ;;  %v3340_v8 = vmul.f32 %v3339_v37, %v9270_v12  ;;  %v3341_v30 = vmul.f32 %v3339_v37, %v9271_v21  ;;  %v3351_v32 = vstv %s7964_s10 }
 0x33c   : > { %v3321_v25 = vrot.slane %v3317_v58, 3  ;;  %v3324_v47 = vadd.f32 %v3320_v35, %v3276_v17  ;;  %v3332_v57 = vrot.slane %v3328_v29, 3  ;;  %v3352_v45 = vmul.f32 %v3351_v32, %v9270_v12  ;;  %s9275_s1 = smov %s9274_s18  ;;  %s3638_s21 = scalar_lea.hbm %s9274_s18, %s4072_s0 }
 0x33d   : > { %v3333_v36 = vrot.slane %v3329_v10, 3  ;;  %v3344_v39 = vrot.slane %v3340_v8, 3  ;;  %v3353_v52 = vmul.f32 %v3351_v32, %v9271_v21  ;;  %v3363_v9 = vstv %s7970_s15  ;;  %s9277_s15 = sshll.u32 %s9273_s14, 3 }
 0x33e   : > { %v3325_v55 = vadd.f32 %v3321_v25, %v3277_v63  ;;  %v3336_v40 = vadd.f32 %v3332_v57, %v3288_v53  ;;  %v3345_v49 = vrot.slane %v3341_v30, 3  ;;  %v3364_v26 = vmul.f32 %v3363_v9, %v9270_v12 }
 0x33f   : > { %v3337_v24 = vadd.f32 %v3333_v36, %v3289_v1  ;;  %v3348_v6 = vadd.f32 %v3344_v39, %v3300_v46  ;;  %v3356_v14 = vrot.slane %v3352_v45, 3  ;;  %v3365_v16 = vmul.f32 %v3363_v9, %v9271_v21 }
 0x340   : > { %v3349_v50 = vadd.f32 %v3345_v49, %v3301_v31  ;;  %v3357_v54 = vrot.slane %v3353_v52, 3  ;;  %v3375_v15 = vstv %s7975_s22  ;;  %v3387_v18 = vstv %s7978_s8  ;;  %s295_s22 = scalar_lea.vmem [#allocation13], %s9277_s15 }
 0x341   : > { %v3360_v60 = vadd.f32 %v3356_v14, %v3312_v27  ;;  %v3368_v22 = vrot.slane %v3364_v26, 3  ;;  %v3376_v5 = vmul.f32 %v3375_v15, %v9270_v12  ;;  %v3377_v56 = vmul.f32 %v3375_v15, %v9271_v21  ;;  %s3640_s8 = sshll.u32 %s295_s22, 4  ;;  %s3641_s8 = int_to_ptr.vmem [resolvable:$true] %s3640_s8 }
 0x342   : > { %v3361_v0 = vadd.f32 %v3357_v54, %v3313_v41  ;;  %v3388_v34 = vmul.f32 %v3387_v18, %v7477_v61  ;;  %v3389_v48 = vmul.f32 %v3387_v18, %v7481_v2  ;;  %v3399_v17 = vstv %s7984_s9  ;;  %s3642_s9 = sshll.u32 %s3638_s21, 4  ;;  %s3643_s9 = int_to_ptr.hbm [resolvable:$true] %s3642_s9 }
 0x343   : > { %v3369_v3 = vrot.slane %v3365_v16, 3  ;;  %v3372_v59 = vadd.f32 %v3368_v22, %v3324_v47  ;;  %v3380_v23 = vrot.slane %v3376_v5, 3  ;;  %v3400_v28 = vmul.f32 %v3399_v17, %v7477_v61 }
 0x344   : > { %v3381_v51 = vrot.slane %v3377_v56, 3  ;;  %v3392_v43 = vrot.slane %v3388_v34, 3  ;;  %v3401_v63 = vmul.f32 %v3399_v17, %v7481_v2  ;;  %v3411_v53 = vstv %s7990_s12  ;;  %s3627_s12 = scalar_lea.sflag [#allocation4], %s9273_s14 }
 0x345   : > { %v3373_v11 = vadd.f32 %v3369_v3, %v3325_v55  ;;  %v3384_v33 = vadd.f32 %v3380_v23, %v3336_v40  ;;  %v3393_v1 = vrot.slane %v3389_v48, 3  ;;  %v3412_v46 = vmul.f32 %v3411_v53, %v7477_v61 }
 0x346   : > { %v3385_v44 = vadd.f32 %v3381_v51, %v3337_v24  ;;  %v3396_v58 = vadd.f32 %v3392_v43, %v3348_v6  ;;  %v3404_v31 = vrot.slane %v3400_v28, 3  ;;  %v3413_v20 = vmul.f32 %v3411_v53, %v7481_v2 }
 0x347   : > { %v3397_v19 = vadd.f32 %v3393_v1, %v3349_v50  ;;  %v3405_v37 = vrot.slane %v3401_v63, 3  ;;  %v3423_v27 = vstv %s7995_s13  ;;  %v3435_v35 = vstv %s7998_s2  ;;  %s4272_s13 = sshra.s32 %s3643_s9, 4  ;;  %s4273_s13 = int_to_ptr.hbm [resolvable:$true] %s4272_s13 }
 0x348   : > { %v3408_v29 = vadd.f32 %v3404_v31, %v3360_v60  ;;  %v3416_v10 = vrot.slane %v3412_v46, 3  ;;  %v3424_v41 = vmul.f32 %v3423_v27, %v7477_v61  ;;  %v3425_v12 = vmul.f32 %v3423_v27, %v7481_v2  ;;  %s4274_s2 = scalar_lea.hbm %s4273_s13, 8  ;;  %p4279_p12 = scmp.lt.s32.totalorder %s4273_s13, %s9275_s1 }
 0x349   : > { %v3409_v8 = vadd.f32 %v3405_v37, %v3361_v0  ;;  %v3436_v21 = vmul.f32 %v3435_v35, %v9249_v42  ;;  %v3437_v30 = vmul.f32 %v3435_v35, %v9250_v4  ;;  %v3447_v32 = vstv %s8004_s3  ;;  %p4275_p1 = scmp.ne.s32.totalorder %s4273_s13, %s4274_s2 }
 0x34a   : > { %v3417_v25 = vrot.slane %v3413_v20, 3  ;;  %v3420_v47 = vadd.f32 %v3416_v10, %v3372_v59  ;;  %v3428_v57 = vrot.slane %v3424_v41, 3  ;;  %v3448_v45 = vmul.f32 %v3447_v32, %v9249_v42 }
 0x34b   : > { %v3429_v36 = vrot.slane %v3425_v12, 3  ;;  %v3440_v61 = vrot.slane %v3436_v21, 3  ;;  %v3449_v2 = vmul.f32 %v3447_v32, %v9250_v4  ;;  %v3459_v39 = vstv %s8010_s4  ;;  %p4276_p3 = pnand %p4275_p1, %p4459_p5 }
 0x34c   : > { %v3421_v52 = vadd.f32 %v3417_v25, %v3373_v11  ;;  %v3432_v9 = vadd.f32 %v3428_v57, %v3384_v33  ;;  %v3441_v55 = vrot.slane %v3437_v30, 3  ;;  %v3460_v40 = vmul.f32 %v3459_v39, %v9249_v42 }
 0x34d   : > { %v3433_v49 = vadd.f32 %v3429_v36, %v3385_v44  ;;  %v3444_v26 = vadd.f32 %v3440_v61, %v3396_v58  ;;  %v3452_v24 = vrot.slane %v3448_v45, 3  ;;  %v3461_v6 = vmul.f32 %v3459_v39, %v9250_v4  ;;  %p4277_p4 = pneg %p4276_p3 }
 0x34e   : > { %v3445_v14 = vadd.f32 %v3441_v55, %v3397_v19  ;;  %v3453_v16 = vrot.slane %v3449_v2, 3  ;;  %v3471_v50 = vstv %s8015_s19  ;;  %v3483_v54 = vstv %s8018_s16  ;;  %s4278_s19 = scalar_lea.hbm %s9275_s1, 16 }
 0x34f   : > { %v3456_v15 = vadd.f32 %v3452_v24, %v3408_v29  ;;  %v3464_v18 = vrot.slane %v3460_v40, 3  ;;  %v3472_v60 = vmul.f32 %v3471_v50, %v9249_v42  ;;  %v3473_v22 = vmul.f32 %v3471_v50, %v9250_v4  ;;  %p4280_p7 = scmp.lt.s32.totalorder %s4278_s19, %s4274_s2 }
 0x350   : > { %v3457_v5 = vadd.f32 %v3453_v16, %v3409_v8  ;;  %v3484_v56 = vmul.f32 %v3483_v54, %v7512_v62  ;;  %v3485_v0 = vmul.f32 %v3483_v54, %v7520_v13  ;;  %v3495_v34 = vstv %s8024_s23 }
 0x351   : > { %v3465_v48 = vrot.slane %v3461_v6, 3  ;;  %v3468_v17 = vadd.f32 %v3464_v18, %v3420_v47  ;;  %v3476_v3 = vrot.slane %v3472_v60, 3  ;;  %v3496_v59 = vmul.f32 %v3495_v34, %v7512_v62  ;;  %p4281_p8 = por %p4280_p7, %p4279_p12 }
 0x352   : > { %v3477_v23 = vrot.slane %v3473_v22, 3  ;;  %v3488_v42 = vrot.slane %v3484_v56, 3  ;;  %v3497_v4 = vmul.f32 %v3495_v34, %v7520_v13  ;;  %v3507_v28 = vstv %s8030_s27 }
 0x353   : > { %v3469_v51 = vadd.f32 %v3465_v48, %v3421_v52  ;;  %v3480_v43 = vadd.f32 %v3476_v3, %v3432_v9  ;;  %v3489_v63 = vrot.slane %v3485_v0, 3  ;;  %v3508_v53 = vmul.f32 %v3507_v28, %v7512_v62  ;;  %p4282_p9 = pnand %p4281_p8, %p4277_p4 }
 0x354   : > { %v3481_v11 = vadd.f32 %v3477_v23, %v3433_v49  ;;  %v3492_v33 = vadd.f32 %v3488_v42, %v3444_v26  ;;  %v3500_v1 = vrot.slane %v3496_v59, 3  ;;  %v3509_v46 = vmul.f32 %v3507_v28, %v7520_v13 }
 0x355   : > { %v3493_v44 = vadd.f32 %v3489_v63, %v3445_v14  ;;  %v3501_v58 = vrot.slane %v3497_v4, 3  ;;  %v3519_v31 = vstv %s8035_s5  ;;  %v3531_v20 = vstv %s8038_s20 }
 0x356   : > { %v3512_v19 = vrot.slane %v3508_v53, 3  ;;  %v3513_v37 = vrot.slane %v3509_v46, 3  ;;  %v3520_v27 = vmul.f32 %v3519_v31, %v7512_v62  ;;  %v3521_v35 = vmul.f32 %v3519_v31, %v7520_v13 }
 0x357   : > { %v3504_v29 = vadd.f32 %v3500_v1, %v3456_v15  ;;  %v3532_v10 = vmul.f32 %v3531_v20, %v7548_v38  ;;  %v3533_v41 = vmul.f32 %v3531_v20, %v7552_v7  ;;  %v3543_v12 = vstv %s8044_s25 }
 0x358   : > { %v3505_v8 = vadd.f32 %v3501_v58, %v3457_v5  ;;  %v3516_v21 = vadd.f32 %v3512_v19, %v3468_v17  ;;  %v3517_v30 = vadd.f32 %v3513_v37, %v3469_v51  ;;  %v3544_v32 = vmul.f32 %v3543_v12, %v7548_v38  ;;  %v9278_v37 = vld [vmem:[#allocation30_spill] sm:$0xff] }
 0x359   : > { %v3524_v62 = vrot.slane %v3520_v27, 3  ;;  %v3525_v13 = vrot.slane %v3521_v35, 3  ;;  %v3545_v25 = vmul.f32 %v3543_v12, %v7552_v7  ;;  %v3555_v47 = vstv %s8050_s29 }
 0x35a   : > { %v3536_v57 = vrot.slane %v3532_v10, 3  ;;  %v3537_v45 = vrot.slane %v3533_v41, 3  ;;  %v3548_v36 = vrot.slane %v3544_v32, 3  ;;  %v3556_v61 = vmul.f32 %v3555_v47, %v7548_v38 }
 0x35b   : > { %v3528_v2 = vadd.f32 %v3524_v62, %v3480_v43  ;;  %v3529_v39 = vadd.f32 %v3525_v13, %v3481_v11  ;;  %v3549_v52 = vrot.slane %v3545_v25, 3  ;;  %v3557_v9 = vmul.f32 %v3555_v47, %v7552_v7 }
 0x35c   : > { %v3540_v55 = vadd.f32 %v3536_v57, %v3492_v33  ;;  %v3552_v40 = vadd.f32 %v3548_v36, %v3504_v29  ;;  %v3560_v49 = vrot.slane %v3556_v61, 3  ;;  %v3567_v26 = vstv %s8056_s30 }
 0x35d   : > { %v3553_v24 = vadd.f32 %v3549_v52, %v3505_v8  ;;  %v3561_v6 = vrot.slane %v3557_v9, 3  ;;  %v3568_v14 = vmul.f32 %v3567_v26, %v7548_v38  ;;  %v3569_v16 = vmul.f32 %v3567_v26, %v7552_v7 }
 0x35e   : > { %v3541_v50 = vadd.f32 %v3537_v45, %v3493_v44  ;;  %v3564_v54 = vadd.f32 %v3560_v49, %v3516_v21  ;;  %v3579_v15 = vstv %s8060_s26  ;;  %v3583_v18 = vstv %s8064_s6 }
 0x35f   : > { %v3565_v60 = vadd.f32 %v3561_v6, %v3517_v30  ;;  %v3572_v22 = vrot.slane %v3568_v14, 3  ;;  %v3573_v5 = vrot.slane %v3569_v16, 3  ;;  %v3584_v56 = vadd.f32 %v3583_v18, %v3552_v40 }
 0x360   : > { %v3585_v0 = vadd.f32 %v3583_v18, %v3553_v24  ;;  %v3587_v34 = vstv %s8069_s24  ;;  %v3591_v48 = vstv %s8072_s28  ;;  %v3580_v42 = vadd.f32 %v3579_v15, %v3540_v55 }
 0x361   : > { %v3576_v17 = vadd.f32 %v3572_v22, %v3528_v2  ;;  %v3577_v3 = vadd.f32 %v3573_v5, %v3529_v39  ;;  %v3588_v59 = vadd.f32 %v3587_v34, %v3564_v54  ;;  %v3589_v23 = vadd.f32 %v3587_v34, %v3565_v60 }
 0x362   : > { %v3581_v38 = vadd.f32 %v3579_v15, %v3541_v50  ;;  %v3596_v4 = vrot.slane %v3584_v56, 7  ;;  %v3597_v7 = vrot.slane %v3585_v0, 7  ;;  %vm3621_vm4 = vcmask 1043456  }
 0x363   : > { %v3592_v28 = vadd.f32 %v3591_v48, %v3576_v17  ;;  %v3593_v51 = vadd.f32 %v3591_v48, %v3577_v3  ;;  %v3602_v43 = vrot.slane %v3588_v59, 6  ;;  %v3603_v63 = vrot.slane %v3589_v23, 6 }
 0x364   : > { %v3612_v53 = vsel %vm1991_vm11, %v3580_v42, %v3596_v4  ;;  %v3613_v11 = vsel %vm1991_vm11, %v3581_v38, %v3597_v7 }
 0x365   : > { %v3609_v33 = vrot.slane %v3593_v51, 5  ;;  %v3615_v1 = vsel %vm1994_vm12, %v3613_v11, %v3603_v63  ;;  %v3614_v46 = vsel %vm1994_vm12, %v3612_v53, %v3602_v43  ;;  %v3608_v44 = vrot.slane %v3592_v28, 5 }
 0x367   : > { %v3617_v58 = vsel %vm1997_vm13, %v3615_v1, %v3609_v33  ;;  %v3616_v20 = vsel %vm1997_vm13, %v3614_v46, %v3608_v44 }
 0x368   : > { %v3620_v31 = vrot.slane %v3617_v58, 4 }
 0x36a   : > { %v3622_v19 = vsel %vm3621_vm4, %v3616_v20, %v3620_v31 }
 0x36b   : > { %v3624_v27 = vadd.f32 %v3622_v19, %v9278_v37 }
 0x36d   : > { %3625 = vst [vmem:[%s295_s22] sm:$0xff] %v3624_v27 }
 0x36e   : > { %4285 = shalt.err (!%p4282_p9)
}
 0x36f   : > { %4091 = dma.vmem_to_hbm [thread:$0]  (%p4459_p5), %s3641_s8, 128, %s3643_s9, %s3627_s12  }
 0x370 PF: > { %s9279_s27 = sld [smem:[#allocation20_spill]] }
 0x371   : > { %s9281_s20 = sld [smem:[#allocation23_spill]] }
 0x376   : > { %s3654_s25 = sand.u32 1, %s9279_s27  }
 0x377   : > { %p9282_p10 = scmp.ge.s32.totalorder %s9281_s20, 2  ;;  %s3655_s29 = scalar_lea.sflag [#allocation4], %s3654_s25 }
 0x379   : > { %p4111_p13 = pnand %p9282_p10, %p4463_p6 }
 0x37b   : > { %p4112_p11 = pneg %p4111_p13 }
 0x37d   : > { %4323 = dma.done.wait (%p4112_p11), %s3655_s29, 128  }
 0x37e   : > { %4325 = vsyncadd (%p4112_p11), %s3655_s29, 4294967168  ;;  %s9283_s21 = sld [smem:[#allocation25_spill]] }
 0x37f   : > { %s9284_s18 = sld [smem:[#allocation21_spill]] }
 0x380   : > { %s9285_s19 = sld [smem:[#allocation22_spill]] }
 0x381   : > { %s9286_s20 = sld [smem:[#allocation26_spill]] }
 0x384   : > { %p22_p0 = scmp.ge.s32.totalorder %s9283_s21, 4  }
 0x386   :  { %24 = sbr.rel (!%p22_p0) target bundleno = 16 (0x10), region = 103 }
 0x38b   :  { %3661 = vsyncpa [#allocation3], 1 }
 0x38c   :  { %3663 = vsyncpa [#allocation3 + $0x1], 1 }
 0x38d   :  { %3664 = vsyncpa [#allocation4], 1 }
 0x38e   :  { %3666 = vsyncpa [#allocation4 + $0x1], 1 }
 0x38f   :  { %3667 = vsyncpa [#allocation5], 1 }
 0x390   :  { %3669 = vsyncpa [#allocation5 + $0x1], 1 }
 0x391   :  { %3670 = vsyncpa [#allocation9], 1 }
 0x392   :  { %3671 = vsyncpa [#allocation6], 1 }
 0x393   :  { %3673 = vsyncpa [#allocation6 + $0x1], 1 }
 0x394   :  { %3674 = vsyncpa [#allocation12], 1 }

</bundles_post_ra>
